<compile_context>
chip_gen: v7x
topology: tpu7x:2x2x1
jax: 0.10.0
libtpu: 0.0.40
codegen_flags: <defaults>
</compile_context>

<pallas_src>
import jax
import jax.numpy as jnp
from jax import lax
from jax.experimental import pallas as pl
from jax.experimental.pallas import tpu as pltpu


# ---------------------------------------------------------------------------
# Kernels
# ---------------------------------------------------------------------------

def _embedding_kernel(idx_ref, table_ref, out_ref):
    # idx_ref: [R, 1] int32, table_ref: [V, E] f32, out_ref: [R, E] f32
    R = idx_ref.shape[0]
    V = table_ref.shape[0]
    ids = idx_ref[...]                                           # [R, 1]
    iota = lax.broadcasted_iota(jnp.int32, (R, V), 1)            # [R, V]
    onehot = (iota == ids).astype(table_ref.dtype)               # [R, V]
    out_ref[...] = jnp.dot(
        onehot, table_ref[...], preferred_element_type=jnp.float32
    ).astype(out_ref.dtype)


def _lstm_dir_kernel(x_ref, wih_ref, whh_ref, b_ref, hseq_ref):
    # One directional LSTM pass (forward in the order x_ref is given).
    # x_ref: [T, B, Din], wih_ref: [Din, 4H], whh_ref: [H, 4H], b_ref: [1, 4H]
    # hseq_ref: [T, B, H]   (hidden state at every time step)
    T, B, _ = x_ref.shape
    H = whh_ref.shape[0]
    wih = wih_ref[...]
    whh = whh_ref[...]
    b = b_ref[...]

    def step(t, carry):
        h, c = carry
        gates = (jnp.dot(x_ref[t], wih, preferred_element_type=jnp.float32)
                 + jnp.dot(h, whh, preferred_element_type=jnp.float32)
                 + b)                                            # [B, 4H]
        i = jax.nn.sigmoid(gates[:, 0 * H:1 * H])                # PyTorch gate order i,f,g,o
        f = jax.nn.sigmoid(gates[:, 1 * H:2 * H])
        g = jnp.tanh(gates[:, 2 * H:3 * H])
        o = jax.nn.sigmoid(gates[:, 3 * H:4 * H])
        c_new = f * c + i * g
        h_new = o * jnp.tanh(c_new)
        hseq_ref[t] = h_new.astype(hseq_ref.dtype)
        return (h_new, c_new)

    zeros = jnp.zeros((B, H), jnp.float32)
    lax.fori_loop(0, T, step, (zeros, zeros))


def _lstm_final_head_kernel(x_ref, wih_ref, whh_ref, b_ref, w1_ref, w2_ref, out_ref):
    # Last layer, backward direction (x_ref is the time-REVERSED layer input),
    # fused with BinaryOutputLayer. Only the final hidden state is needed, so no
    # per-step output is written.
    # x_ref: [T, B, 2H], wih_ref: [2H, 4H], whh_ref: [H, 4H], b_ref: [1, 4H]
    # w1_ref: [H, H//2], w2_ref: [1, H//2], out_ref: [B, 1]
    T, B, _ = x_ref.shape
    H = whh_ref.shape[0]
    wih = wih_ref[...]
    whh = whh_ref[...]
    b = b_ref[...]

    def step(t, carry):
        h, c = carry
        gates = (jnp.dot(x_ref[t], wih, preferred_element_type=jnp.float32)
                 + jnp.dot(h, whh, preferred_element_type=jnp.float32)
                 + b)
        i = jax.nn.sigmoid(gates[:, 0 * H:1 * H])
        f = jax.nn.sigmoid(gates[:, 1 * H:2 * H])
        g = jnp.tanh(gates[:, 2 * H:3 * H])
        o = jax.nn.sigmoid(gates[:, 3 * H:4 * H])
        c_new = f * c + i * g
        h_new = o * jnp.tanh(c_new)
        return (h_new, c_new)

    zeros = jnp.zeros((B, H), jnp.float32)
    h_fin, _ = lax.fori_loop(0, T, step, (zeros, zeros))         # == hidden_state[-1]

    # BinaryOutputLayer: Linear -> ReLU -> Linear(->1) -> Sigmoid.
    h2 = jnp.maximum(
        jnp.dot(h_fin, w1_ref[...], preferred_element_type=jnp.float32), 0.0)
    # N=1 second matmul done as a VPU reduction (no MXU pass for one column).
    z = jnp.sum(h2 * w2_ref[...], axis=-1, keepdims=True)        # [B, 1]
    out_ref[...] = jax.nn.sigmoid(z).astype(out_ref.dtype)


# ---------------------------------------------------------------------------
# pallas_call wrappers (tiny problem: full arrays resident in VMEM, no grid)
# ---------------------------------------------------------------------------

_VMEM_SPEC = pl.BlockSpec(memory_space=pltpu.MemorySpace.VMEM)


def _embedding(idx2d, table):
    R = idx2d.shape[0]
    _, E = table.shape
    return pl.pallas_call(
        _embedding_kernel,
        out_shape=jax.ShapeDtypeStruct((R, E), table.dtype),
        in_specs=[_VMEM_SPEC, _VMEM_SPEC],
        out_specs=_VMEM_SPEC,
    )(idx2d, table)


def _lstm_direction(x_seq, wih_t, whh_t, b):
    T, B, _ = x_seq.shape
    H = whh_t.shape[0]
    return pl.pallas_call(
        _lstm_dir_kernel,
        out_shape=jax.ShapeDtypeStruct((T, B, H), jnp.float32),
        in_specs=[_VMEM_SPEC] * 4,
        out_specs=_VMEM_SPEC,
    )(x_seq, wih_t, whh_t, b)


def _lstm_final_head(x_seq_rev, wih_t, whh_t, b, w1_t, w2_row):
    T, B, _ = x_seq_rev.shape
    return pl.pallas_call(
        _lstm_final_head_kernel,
        out_shape=jax.ShapeDtypeStruct((B, 1), jnp.float32),
        in_specs=[_VMEM_SPEC] * 6,
        out_specs=_VMEM_SPEC,
    )(x_seq_rev, wih_t, whh_t, b, w1_t, w2_row)


def lstm_model_pallas(idx, emb_table, lstm_params, w1_t, w2_row):
    """Full LSTMModel forward. idx: [B, T] int32 token ids -> [B, 1] f32."""
    B, T = idx.shape
    _, E = emb_table.shape
    num_layers = len(lstm_params)

    # Embedding + seq-major transpose (transpose/flip/concat plumbing stays in XLA).
    emb_flat = _embedding(idx.reshape(B * T, 1).astype(jnp.int32), emb_table)   # [B*T, E]
    x_seq = emb_flat.reshape(B, T, E).transpose(1, 0, 2)                        # [T, B, E]

    out = None
    for layer, (p_fwd, p_bwd) in enumerate(lstm_params):
        if layer < num_layers - 1:
            h_fwd = _lstm_direction(x_seq, *p_fwd)               # [T, B, H]
            h_bwd_rev = _lstm_direction(x_seq[::-1], *p_bwd)     # backward pass over reversed seq
            x_seq = jnp.concatenate([h_fwd, h_bwd_rev[::-1]], axis=-1)          # [T, B, 2H]
        else:
            # hidden_state[-1] == final hidden of the LAST layer's BACKWARD direction.
            # The last layer's forward pass / per-step outputs feed nothing -> skipped.
            out = _lstm_final_head(x_seq[::-1], *p_bwd, w1_t, w2_row)
    return out


# ---------------------------------------------------------------------------
# Pure-JAX reference (mirrors PyTorch nn.LSTM semantics) + param init
# ---------------------------------------------------------------------------

_PREC = lax.Precision.HIGHEST


def _lstm_dir_ref(x_seq, wih_t, whh_t, b):
    T, B, _ = x_seq.shape
    H = whh_t.shape[0]

    def step(carry, x_t):
        h, c = carry
        gates = (jnp.dot(x_t, wih_t, precision=_PREC)
                 + jnp.dot(h, whh_t, precision=_PREC) + b)
        i = jax.nn.sigmoid(gates[:, :H])
        f = jax.nn.sigmoid(gates[:, H:2 * H])
        g = jnp.tanh(gates[:, 2 * H:3 * H])
        o = jax.nn.sigmoid(gates[:, 3 * H:])
        c = f * c + i * g
        h = o * jnp.tanh(c)
        return (h, c), h

    init = (jnp.zeros((B, H), jnp.float32), jnp.zeros((B, H), jnp.float32))
    (h_fin, _), h_seq = lax.scan(step, init, x_seq)
    return h_seq, h_fin


def lstm_model_ref(idx, emb_table, lstm_params, w1_t, w2_row):
    emb = emb_table[idx]                                         # [B, T, E]
    x_seq = jnp.transpose(emb, (1, 0, 2))                        # [T, B, E]
    h_last = None
    for (p_fwd, p_bwd) in lstm_params:
        hf_seq, _ = _lstm_dir_ref(x_seq, *p_fwd)
        hb_seq_rev, hb_fin = _lstm_dir_ref(x_seq[::-1], *p_bwd)
        x_seq = jnp.concatenate([hf_seq, hb_seq_rev[::-1]], axis=-1)
        h_last = hb_fin                                          # hidden_state[-1]
    h2 = jnp.maximum(jnp.dot(h_last, w1_t, precision=_PREC), 0.0)
    z = jnp.sum(h2 * w2_row, axis=-1, keepdims=True)
    return jax.nn.sigmoid(z)


def _uniform(key, shape, bound):
    return jax.random.uniform(key, shape, jnp.float32, minval=-bound, maxval=bound)


def init_lstm_model_params(key, n_class, emb_size, hidden, num_layers):
    """PyTorch-style init: Embedding ~ N(0,1); LSTM/Linear ~ U(+-1/sqrt(fan))."""
    keys = iter(jax.random.split(key, 1 + num_layers * 2 * 3 + 2))
    emb_table = jax.random.normal(next(keys), (n_class, emb_size), jnp.float32)
    bound = 1.0 / float(hidden) ** 0.5
    lstm_params = []
    for layer in range(num_layers):
        d_in = emb_size if layer == 0 else 2 * hidden
        dirs = []
        for _ in range(2):  # (forward, backward)
            wih_t = _uniform(next(keys), (d_in, 4 * hidden), bound)   # W_ih^T
            whh_t = _uniform(next(keys), (hidden, 4 * hidden), bound)  # W_hh^T
            bias = _uniform(next(keys), (1, 4 * hidden), 2.0 * bound)  # b_ih + b_hh combined
            dirs.append((wih_t, whh_t, bias))
        lstm_params.append(tuple(dirs))
    h2 = hidden // 2
    w1_t = _uniform(next(keys), (hidden, h2), 1.0 / float(hidden) ** 0.5)
    w2_row = _uniform(next(keys), (1, h2), 1.0 / float(h2) ** 0.5)
    return emb_table, lstm_params, w1_t, w2_row


# ---------------------------------------------------------------------------
# Demo / correctness check
# ---------------------------------------------------------------------------

if __name__ == "__main__":
    key = jax.random.PRNGKey(0)
    k_idx, k_par = jax.random.split(key)

    # Module defaults: embedding_size=hidden_size=128, 3 layers, bidirectional.
    n_class, emb_size, hidden, num_layers = 32, 128, 128, 3
    batch, seq_len = 4, 8

    idx = jax.random.randint(k_idx, (batch, seq_len), 0, n_class, dtype=jnp.int32)
    emb_table, lstm_params, w1_t, w2_row = init_lstm_model_params(
        k_par, n_class, emb_size, hidden, num_layers)

    run = jax.jit(lstm_model_pallas)
    out = jax.block_until_ready(run(idx, emb_table, lstm_params, w1_t, w2_row))

    ref = lstm_model_ref(idx, emb_table, lstm_params, w1_t, w2_row)
    assert out.shape == (batch, 1)
    assert jnp.allclose(out, ref, atol=2e-3, rtol=2e-3), (out, ref)

    print("KERNEL_OK")
</pallas_src>

<mosaic_0001>
module attributes {stable_mosaic.version = 11 : i64} {
  func.func @_embedding_kernel(%arg0: memref<32x1xi32, #tpu.memory_space<vmem>>, %arg1: memref<32x128xf32, #tpu.memory_space<vmem>>, %arg2: memref<32x128xf32, #tpu.memory_space<vmem>>) attributes {dimension_semantics = [], scalar_prefetch = 0 : i64, scratch_operands = 0 : i64, tpu.core_type = #tpu.core_type<tc>} {
    %c0 = arith.constant 0 : index
    %c0_0 = arith.constant 0 : index
    %0 = vector.load %arg0[%c0, %c0_0] : memref<32x1xi32, #tpu.memory_space<vmem>>, vector<32x1xi32>
    %1 = tpu.iota {dimensions = array<i32: 1>} : vector<32x32xi32>
    %2 = vector.broadcast %0 : vector<32x1xi32> to vector<32x32xi32>
    %3 = arith.cmpi eq, %1, %2 : vector<32x32xi32>
    %4 = arith.extui %3 : vector<32x32xi1> to vector<32x32xi32>
    %5 = arith.sitofp %4 : vector<32x32xi32> to vector<32x32xf32>
    %c0_1 = arith.constant 0 : index
    %c0_2 = arith.constant 0 : index
    %6 = vector.load %arg1[%c0_1, %c0_2] : memref<32x128xf32, #tpu.memory_space<vmem>>, vector<32x128xf32>
    %cst = arith.constant dense<0.000000e+00> : vector<32x128xf32>
    %7 = tpu.matmul %5, %6, %cst {dimension_numbers = #tpu.dot_dimension_numbers<[1], [0], [0], [1], [0, 0, 1, 1], [], []>} : vector<32x32xf32>, vector<32x128xf32>, vector<32x128xf32> -> vector<32x128xf32>
    %c0_3 = arith.constant 0 : index
    %c0_4 = arith.constant 0 : index
    %8 = vector.load %arg2[%c0_3, %c0_4] : memref<32x128xf32, #tpu.memory_space<vmem>>, vector<32x128xf32>
    tpu.vector_store %arg2[%c0_3, %c0_4], %7 {strides = array<i32>} : memref<32x128xf32, #tpu.memory_space<vmem>>, vector<32x128xf32>,
    return
  }
}

module attributes {stable_mosaic.version = 11 : i64} {
  func.func @_lstm_dir_kernel(%arg0: memref<8x4x128xf32, #tpu.memory_space<vmem>>, %arg1: memref<128x512xf32, #tpu.memory_space<vmem>>, %arg2: memref<128x512xf32, #tpu.memory_space<vmem>>, %arg3: memref<1x512xf32, #tpu.memory_space<vmem>>, %arg4: memref<8x4x128xf32, #tpu.memory_space<vmem>>) attributes {dimension_semantics = [], scalar_prefetch = 0 : i64, scratch_operands = 0 : i64, tpu.core_type = #tpu.core_type<tc>} {
    %c0 = arith.constant 0 : index
    %c0_0 = arith.constant 0 : index
    %0 = vector.load %arg1[%c0, %c0_0] : memref<128x512xf32, #tpu.memory_space<vmem>>, vector<128x512xf32>
    %c0_1 = arith.constant 0 : index
    %c0_2 = arith.constant 0 : index
    %1 = vector.load %arg2[%c0_1, %c0_2] : memref<128x512xf32, #tpu.memory_space<vmem>>, vector<128x512xf32>
    %c0_3 = arith.constant 0 : index
    %c0_4 = arith.constant 0 : index
    %2 = vector.load %arg3[%c0_3, %c0_4] : memref<1x512xf32, #tpu.memory_space<vmem>>, vector<1x512xf32>
    %cst = arith.constant 0.000000e+00 : f32
    %3 = vector.broadcast %cst : f32 to vector<4x128xf32>
    %c0_i32 = arith.constant 0 : i32
    %c8_i32 = arith.constant 8 : i32
    %4 = arith.addi %c0_i32, %c8_i32 : i32
    %c1_i32 = arith.constant 1 : i32
    %5:2 = scf.for %arg5 = %c0_i32 to %4 step %c1_i32 iter_args(%arg6 = %3, %arg7 = %3) -> (vector<4x128xf32>, vector<4x128xf32>)  : i32 {
      %6 = arith.index_cast %arg5 : i32 to index
      %c0_6 = arith.constant 0 : index
      %c0_7 = arith.constant 0 : index
      %7 = vector.load %arg0[%6, %c0_6, %c0_7] : memref<8x4x128xf32, #tpu.memory_space<vmem>>, vector<1x4x128xf32>
      %8 = vector.shape_cast %7 : vector<1x4x128xf32> to vector<4x128xf32>
      %cst_8 = arith.constant dense<0.000000e+00> : vector<4x512xf32>
      %9 = tpu.matmul %8, %0, %cst_8 {dimension_numbers = #tpu.dot_dimension_numbers<[1], [0], [0], [1], [0, 0, 1, 1], [], []>} : vector<4x128xf32>, vector<128x512xf32>, vector<4x512xf32> -> vector<4x512xf32>
      %cst_9 = arith.constant dense<0.000000e+00> : vector<4x512xf32>
      %10 = tpu.matmul %arg6, %1, %cst_9 {dimension_numbers = #tpu.dot_dimension_numbers<[1], [0], [0], [1], [0, 0, 1, 1], [], []>} : vector<4x128xf32>, vector<128x512xf32>, vector<4x512xf32> -> vector<4x512xf32>
      %11 = arith.addf %9, %10 : vector<4x512xf32>
      %12 = vector.broadcast %2 : vector<1x512xf32> to vector<4x512xf32>
      %13 = arith.addf %11, %12 : vector<4x512xf32>
      %14 = vector.extract_strided_slice %13 {offsets = [0, 0], sizes = [4, 128], strides = [1, 1]} : vector<4x512xf32> to vector<4x128xf32>
      %15 = arith.negf %14 : vector<4x128xf32>
      %16 = math.exp %15 : vector<4x128xf32>
      %cst_10 = arith.constant 1.000000e+00 : f32
      %17 = vector.broadcast %cst_10 : f32 to vector<4x128xf32>
      %18 = arith.addf %17, %16 : vector<4x128xf32>
      %19 = arith.divf %17, %18 : vector<4x128xf32>
      %20 = vector.extract_strided_slice %13 {offsets = [0, 128], sizes = [4, 128], strides = [1, 1]} : vector<4x512xf32> to vector<4x128xf32>
      %21 = arith.negf %20 : vector<4x128xf32>
      %22 = math.exp %21 : vector<4x128xf32>
      %cst_11 = arith.constant 1.000000e+00 : f32
      %23 = vector.broadcast %cst_11 : f32 to vector<4x128xf32>
      %24 = arith.addf %23, %22 : vector<4x128xf32>
      %25 = arith.divf %23, %24 : vector<4x128xf32>
      %26 = vector.extract_strided_slice %13 {offsets = [0, 256], sizes = [4, 128], strides = [1, 1]} : vector<4x512xf32> to vector<4x128xf32>
      %27 = math.tanh %26 : vector<4x128xf32>
      %28 = vector.extract_strided_slice %13 {offsets = [0, 384], sizes = [4, 128], strides = [1, 1]} : vector<4x512xf32> to vector<4x128xf32>
      %29 = arith.negf %28 : vector<4x128xf32>
      %30 = math.exp %29 : vector<4x128xf32>
      %cst_12 = arith.constant 1.000000e+00 : f32
      %31 = vector.broadcast %cst_12 : f32 to vector<4x128xf32>
      %32 = arith.addf %31, %30 : vector<4x128xf32>
      %33 = arith.divf %31, %32 : vector<4x128xf32>
      %34 = arith.mulf %25, %arg7 : vector<4x128xf32>
      %35 = arith.mulf %19, %27 : vector<4x128xf32>
      %36 = arith.addf %34, %35 : vector<4x128xf32>
      %37 = math.tanh %36 : vector<4x128xf32>
      %38 = arith.mulf %33, %37 : vector<4x128xf32>
      %39 = arith.index_cast %arg5 : i32 to index
      %c0_13 = arith.constant 0 : index
      %c0_14 = arith.constant 0 : index
      %40 = vector.load %arg4[%39, %c0_13, %c0_14] : memref<8x4x128xf32, #tpu.memory_space<vmem>>, vector<1x4x128xf32>
      %41 = vector.shape_cast %40 : vector<1x4x128xf32> to vector<4x128xf32>
      %42 = vector.shape_cast %38 : vector<4x128xf32> to vector<1x4x128xf32>
      tpu.vector_store %arg4[%39, %c0_13, %c0_14], %42 {strides = array<i32>} : memref<8x4x128xf32, #tpu.memory_space<vmem>>, vector<1x4x128xf32>,
      scf.yield %38, %36 : vector<4x128xf32>, vector<4x128xf32>
    }
    %c8_i32_5 = arith.constant 8 : i32
    return
  }
}

module attributes {stable_mosaic.version = 11 : i64} {
  func.func @_lstm_dir_kernel(%arg0: memref<8x4x128xf32, #tpu.memory_space<vmem>>, %arg1: memref<128x512xf32, #tpu.memory_space<vmem>>, %arg2: memref<128x512xf32, #tpu.memory_space<vmem>>, %arg3: memref<1x512xf32, #tpu.memory_space<vmem>>, %arg4: memref<8x4x128xf32, #tpu.memory_space<vmem>>) attributes {dimension_semantics = [], scalar_prefetch = 0 : i64, scratch_operands = 0 : i64, tpu.core_type = #tpu.core_type<tc>} {
    %c0 = arith.constant 0 : index
    %c0_0 = arith.constant 0 : index
    %0 = vector.load %arg1[%c0, %c0_0] : memref<128x512xf32, #tpu.memory_space<vmem>>, vector<128x512xf32>
    %c0_1 = arith.constant 0 : index
    %c0_2 = arith.constant 0 : index
    %1 = vector.load %arg2[%c0_1, %c0_2] : memref<128x512xf32, #tpu.memory_space<vmem>>, vector<128x512xf32>
    %c0_3 = arith.constant 0 : index
    %c0_4 = arith.constant 0 : index
    %2 = vector.load %arg3[%c0_3, %c0_4] : memref<1x512xf32, #tpu.memory_space<vmem>>, vector<1x512xf32>
    %cst = arith.constant 0.000000e+00 : f32
    %3 = vector.broadcast %cst : f32 to vector<4x128xf32>
    %c0_i32 = arith.constant 0 : i32
    %c8_i32 = arith.constant 8 : i32
    %4 = arith.addi %c0_i32, %c8_i32 : i32
    %c1_i32 = arith.constant 1 : i32
    %5:2 = scf.for %arg5 = %c0_i32 to %4 step %c1_i32 iter_args(%arg6 = %3, %arg7 = %3) -> (vector<4x128xf32>, vector<4x128xf32>)  : i32 {
      %6 = arith.index_cast %arg5 : i32 to index
      %c0_6 = arith.constant 0 : index
      %c0_7 = arith.constant 0 : index
      %7 = vector.load %arg0[%6, %c0_6, %c0_7] : memref<8x4x128xf32, #tpu.memory_space<vmem>>, vector<1x4x128xf32>
      %8 = vector.shape_cast %7 : vector<1x4x128xf32> to vector<4x128xf32>
      %cst_8 = arith.constant dense<0.000000e+00> : vector<4x512xf32>
      %9 = tpu.matmul %8, %0, %cst_8 {dimension_numbers = #tpu.dot_dimension_numbers<[1], [0], [0], [1], [0, 0, 1, 1], [], []>} : vector<4x128xf32>, vector<128x512xf32>, vector<4x512xf32> -> vector<4x512xf32>
      %cst_9 = arith.constant dense<0.000000e+00> : vector<4x512xf32>
      %10 = tpu.matmul %arg6, %1, %cst_9 {dimension_numbers = #tpu.dot_dimension_numbers<[1], [0], [0], [1], [0, 0, 1, 1], [], []>} : vector<4x128xf32>, vector<128x512xf32>, vector<4x512xf32> -> vector<4x512xf32>
      %11 = arith.addf %9, %10 : vector<4x512xf32>
      %12 = vector.broadcast %2 : vector<1x512xf32> to vector<4x512xf32>
      %13 = arith.addf %11, %12 : vector<4x512xf32>
      %14 = vector.extract_strided_slice %13 {offsets = [0, 0], sizes = [4, 128], strides = [1, 1]} : vector<4x512xf32> to vector<4x128xf32>
      %15 = arith.negf %14 : vector<4x128xf32>
      %16 = math.exp %15 : vector<4x128xf32>
      %cst_10 = arith.constant 1.000000e+00 : f32
      %17 = vector.broadcast %cst_10 : f32 to vector<4x128xf32>
      %18 = arith.addf %17, %16 : vector<4x128xf32>
      %19 = arith.divf %17, %18 : vector<4x128xf32>
      %20 = vector.extract_strided_slice %13 {offsets = [0, 128], sizes = [4, 128], strides = [1, 1]} : vector<4x512xf32> to vector<4x128xf32>
      %21 = arith.negf %20 : vector<4x128xf32>
      %22 = math.exp %21 : vector<4x128xf32>
      %cst_11 = arith.constant 1.000000e+00 : f32
      %23 = vector.broadcast %cst_11 : f32 to vector<4x128xf32>
      %24 = arith.addf %23, %22 : vector<4x128xf32>
      %25 = arith.divf %23, %24 : vector<4x128xf32>
      %26 = vector.extract_strided_slice %13 {offsets = [0, 256], sizes = [4, 128], strides = [1, 1]} : vector<4x512xf32> to vector<4x128xf32>
      %27 = math.tanh %26 : vector<4x128xf32>
      %28 = vector.extract_strided_slice %13 {offsets = [0, 384], sizes = [4, 128], strides = [1, 1]} : vector<4x512xf32> to vector<4x128xf32>
      %29 = arith.negf %28 : vector<4x128xf32>
      %30 = math.exp %29 : vector<4x128xf32>
      %cst_12 = arith.constant 1.000000e+00 : f32
      %31 = vector.broadcast %cst_12 : f32 to vector<4x128xf32>
      %32 = arith.addf %31, %30 : vector<4x128xf32>
      %33 = arith.divf %31, %32 : vector<4x128xf32>
      %34 = arith.mulf %25, %arg7 : vector<4x128xf32>
      %35 = arith.mulf %19, %27 : vector<4x128xf32>
      %36 = arith.addf %34, %35 : vector<4x128xf32>
      %37 = math.tanh %36 : vector<4x128xf32>
      %38 = arith.mulf %33, %37 : vector<4x128xf32>
      %39 = arith.index_cast %arg5 : i32 to index
      %c0_13 = arith.constant 0 : index
      %c0_14 = arith.constant 0 : index
      %40 = vector.load %arg4[%39, %c0_13, %c0_14] : memref<8x4x128xf32, #tpu.memory_space<vmem>>, vector<1x4x128xf32>
      %41 = vector.shape_cast %40 : vector<1x4x128xf32> to vector<4x128xf32>
      %42 = vector.shape_cast %38 : vector<4x128xf32> to vector<1x4x128xf32>
      tpu.vector_store %arg4[%39, %c0_13, %c0_14], %42 {strides = array<i32>} : memref<8x4x128xf32, #tpu.memory_space<vmem>>, vector<1x4x128xf32>,
      scf.yield %38, %36 : vector<4x128xf32>, vector<4x128xf32>
    }
    %c8_i32_5 = arith.constant 8 : i32
    return
  }
}

module attributes {stable_mosaic.version = 11 : i64} {
  func.func @_lstm_dir_kernel(%arg0: memref<8x4x256xf32, #tpu.memory_space<vmem>>, %arg1: memref<256x512xf32, #tpu.memory_space<vmem>>, %arg2: memref<128x512xf32, #tpu.memory_space<vmem>>, %arg3: memref<1x512xf32, #tpu.memory_space<vmem>>, %arg4: memref<8x4x128xf32, #tpu.memory_space<vmem>>) attributes {dimension_semantics = [], scalar_prefetch = 0 : i64, scratch_operands = 0 : i64, tpu.core_type = #tpu.core_type<tc>} {
    %c0 = arith.constant 0 : index
    %c0_0 = arith.constant 0 : index
    %0 = vector.load %arg1[%c0, %c0_0] : memref<256x512xf32, #tpu.memory_space<vmem>>, vector<256x512xf32>
    %c0_1 = arith.constant 0 : index
    %c0_2 = arith.constant 0 : index
    %1 = vector.load %arg2[%c0_1, %c0_2] : memref<128x512xf32, #tpu.memory_space<vmem>>, vector<128x512xf32>
    %c0_3 = arith.constant 0 : index
    %c0_4 = arith.constant 0 : index
    %2 = vector.load %arg3[%c0_3, %c0_4] : memref<1x512xf32, #tpu.memory_space<vmem>>, vector<1x512xf32>
    %cst = arith.constant 0.000000e+00 : f32
    %3 = vector.broadcast %cst : f32 to vector<4x128xf32>
    %c0_i32 = arith.constant 0 : i32
    %c8_i32 = arith.constant 8 : i32
    %4 = arith.addi %c0_i32, %c8_i32 : i32
    %c1_i32 = arith.constant 1 : i32
    %5:2 = scf.for %arg5 = %c0_i32 to %4 step %c1_i32 iter_args(%arg6 = %3, %arg7 = %3) -> (vector<4x128xf32>, vector<4x128xf32>)  : i32 {
      %6 = arith.index_cast %arg5 : i32 to index
      %c0_6 = arith.constant 0 : index
      %c0_7 = arith.constant 0 : index
      %7 = vector.load %arg0[%6, %c0_6, %c0_7] : memref<8x4x256xf32, #tpu.memory_space<vmem>>, vector<1x4x256xf32>
      %8 = vector.shape_cast %7 : vector<1x4x256xf32> to vector<4x256xf32>
      %cst_8 = arith.constant dense<0.000000e+00> : vector<4x512xf32>
      %9 = tpu.matmul %8, %0, %cst_8 {dimension_numbers = #tpu.dot_dimension_numbers<[1], [0], [0], [1], [0, 0, 1, 1], [], []>} : vector<4x256xf32>, vector<256x512xf32>, vector<4x512xf32> -> vector<4x512xf32>
      %cst_9 = arith.constant dense<0.000000e+00> : vector<4x512xf32>
      %10 = tpu.matmul %arg6, %1, %cst_9 {dimension_numbers = #tpu.dot_dimension_numbers<[1], [0], [0], [1], [0, 0, 1, 1], [], []>} : vector<4x128xf32>, vector<128x512xf32>, vector<4x512xf32> -> vector<4x512xf32>
      %11 = arith.addf %9, %10 : vector<4x512xf32>
      %12 = vector.broadcast %2 : vector<1x512xf32> to vector<4x512xf32>
      %13 = arith.addf %11, %12 : vector<4x512xf32>
      %14 = vector.extract_strided_slice %13 {offsets = [0, 0], sizes = [4, 128], strides = [1, 1]} : vector<4x512xf32> to vector<4x128xf32>
      %15 = arith.negf %14 : vector<4x128xf32>
      %16 = math.exp %15 : vector<4x128xf32>
      %cst_10 = arith.constant 1.000000e+00 : f32
      %17 = vector.broadcast %cst_10 : f32 to vector<4x128xf32>
      %18 = arith.addf %17, %16 : vector<4x128xf32>
      %19 = arith.divf %17, %18 : vector<4x128xf32>
      %20 = vector.extract_strided_slice %13 {offsets = [0, 128], sizes = [4, 128], strides = [1, 1]} : vector<4x512xf32> to vector<4x128xf32>
      %21 = arith.negf %20 : vector<4x128xf32>
      %22 = math.exp %21 : vector<4x128xf32>
      %cst_11 = arith.constant 1.000000e+00 : f32
      %23 = vector.broadcast %cst_11 : f32 to vector<4x128xf32>
      %24 = arith.addf %23, %22 : vector<4x128xf32>
      %25 = arith.divf %23, %24 : vector<4x128xf32>
      %26 = vector.extract_strided_slice %13 {offsets = [0, 256], sizes = [4, 128], strides = [1, 1]} : vector<4x512xf32> to vector<4x128xf32>
      %27 = math.tanh %26 : vector<4x128xf32>
      %28 = vector.extract_strided_slice %13 {offsets = [0, 384], sizes = [4, 128], strides = [1, 1]} : vector<4x512xf32> to vector<4x128xf32>
      %29 = arith.negf %28 : vector<4x128xf32>
      %30 = math.exp %29 : vector<4x128xf32>
      %cst_12 = arith.constant 1.000000e+00 : f32
      %31 = vector.broadcast %cst_12 : f32 to vector<4x128xf32>
      %32 = arith.addf %31, %30 : vector<4x128xf32>
      %33 = arith.divf %31, %32 : vector<4x128xf32>
      %34 = arith.mulf %25, %arg7 : vector<4x128xf32>
      %35 = arith.mulf %19, %27 : vector<4x128xf32>
      %36 = arith.addf %34, %35 : vector<4x128xf32>
      %37 = math.tanh %36 : vector<4x128xf32>
      %38 = arith.mulf %33, %37 : vector<4x128xf32>
      %39 = arith.index_cast %arg5 : i32 to index
      %c0_13 = arith.constant 0 : index
      %c0_14 = arith.constant 0 : index
      %40 = vector.load %arg4[%39, %c0_13, %c0_14] : memref<8x4x128xf32, #tpu.memory_space<vmem>>, vector<1x4x128xf32>
      %41 = vector.shape_cast %40 : vector<1x4x128xf32> to vector<4x128xf32>
      %42 = vector.shape_cast %38 : vector<4x128xf32> to vector<1x4x128xf32>
      tpu.vector_store %arg4[%39, %c0_13, %c0_14], %42 {strides = array<i32>} : memref<8x4x128xf32, #tpu.memory_space<vmem>>, vector<1x4x128xf32>,
      scf.yield %38, %36 : vector<4x128xf32>, vector<4x128xf32>
    }
    %c8_i32_5 = arith.constant 8 : i32
    return
  }
}

module attributes {stable_mosaic.version = 11 : i64} {
  func.func @_lstm_final_head_kernel(%arg0: memref<8x4x256xf32, #tpu.memory_space<vmem>>, %arg1: memref<256x512xf32, #tpu.memory_space<vmem>>, %arg2: memref<128x512xf32, #tpu.memory_space<vmem>>, %arg3: memref<1x512xf32, #tpu.memory_space<vmem>>, %arg4: memref<128x64xf32, #tpu.memory_space<vmem>>, %arg5: memref<1x64xf32, #tpu.memory_space<vmem>>, %arg6: memref<4x1xf32, #tpu.memory_space<vmem>>) attributes {dimension_semantics = [], scalar_prefetch = 0 : i64, scratch_operands = 0 : i64, tpu.core_type = #tpu.core_type<tc>} {
    %c0 = arith.constant 0 : index
    %c0_0 = arith.constant 0 : index
    %0 = vector.load %arg1[%c0, %c0_0] : memref<256x512xf32, #tpu.memory_space<vmem>>, vector<256x512xf32>
    %c0_1 = arith.constant 0 : index
    %c0_2 = arith.constant 0 : index
    %1 = vector.load %arg2[%c0_1, %c0_2] : memref<128x512xf32, #tpu.memory_space<vmem>>, vector<128x512xf32>
    %c0_3 = arith.constant 0 : index
    %c0_4 = arith.constant 0 : index
    %2 = vector.load %arg3[%c0_3, %c0_4] : memref<1x512xf32, #tpu.memory_space<vmem>>, vector<1x512xf32>
    %cst = arith.constant 0.000000e+00 : f32
    %3 = vector.broadcast %cst : f32 to vector<4x128xf32>
    %c0_i32 = arith.constant 0 : i32
    %c8_i32 = arith.constant 8 : i32
    %4 = arith.addi %c0_i32, %c8_i32 : i32
    %c1_i32 = arith.constant 1 : i32
    %5:2 = scf.for %arg7 = %c0_i32 to %4 step %c1_i32 iter_args(%arg8 = %3, %arg9 = %3) -> (vector<4x128xf32>, vector<4x128xf32>)  : i32 {
      %21 = arith.index_cast %arg7 : i32 to index
      %c0_16 = arith.constant 0 : index
      %c0_17 = arith.constant 0 : index
      %22 = vector.load %arg0[%21, %c0_16, %c0_17] : memref<8x4x256xf32, #tpu.memory_space<vmem>>, vector<1x4x256xf32>
      %23 = vector.shape_cast %22 : vector<1x4x256xf32> to vector<4x256xf32>
      %cst_18 = arith.constant dense<0.000000e+00> : vector<4x512xf32>
      %24 = tpu.matmul %23, %0, %cst_18 {dimension_numbers = #tpu.dot_dimension_numbers<[1], [0], [0], [1], [0, 0, 1, 1], [], []>} : vector<4x256xf32>, vector<256x512xf32>, vector<4x512xf32> -> vector<4x512xf32>
      %cst_19 = arith.constant dense<0.000000e+00> : vector<4x512xf32>
      %25 = tpu.matmul %arg8, %1, %cst_19 {dimension_numbers = #tpu.dot_dimension_numbers<[1], [0], [0], [1], [0, 0, 1, 1], [], []>} : vector<4x128xf32>, vector<128x512xf32>, vector<4x512xf32> -> vector<4x512xf32>
      %26 = arith.addf %24, %25 : vector<4x512xf32>
      %27 = vector.broadcast %2 : vector<1x512xf32> to vector<4x512xf32>
      %28 = arith.addf %26, %27 : vector<4x512xf32>
      %29 = vector.extract_strided_slice %28 {offsets = [0, 0], sizes = [4, 128], strides = [1, 1]} : vector<4x512xf32> to vector<4x128xf32>
      %30 = arith.negf %29 : vector<4x128xf32>
      %31 = math.exp %30 : vector<4x128xf32>
      %cst_20 = arith.constant 1.000000e+00 : f32
      %32 = vector.broadcast %cst_20 : f32 to vector<4x128xf32>
      %33 = arith.addf %32, %31 : vector<4x128xf32>
      %34 = arith.divf %32, %33 : vector<4x128xf32>
      %35 = vector.extract_strided_slice %28 {offsets = [0, 128], sizes = [4, 128], strides = [1, 1]} : vector<4x512xf32> to vector<4x128xf32>
      %36 = arith.negf %35 : vector<4x128xf32>
      %37 = math.exp %36 : vector<4x128xf32>
      %cst_21 = arith.constant 1.000000e+00 : f32
      %38 = vector.broadcast %cst_21 : f32 to vector<4x128xf32>
      %39 = arith.addf %38, %37 : vector<4x128xf32>
      %40 = arith.divf %38, %39 : vector<4x128xf32>
      %41 = vector.extract_strided_slice %28 {offsets = [0, 256], sizes = [4, 128], strides = [1, 1]} : vector<4x512xf32> to vector<4x128xf32>
      %42 = math.tanh %41 : vector<4x128xf32>
      %43 = vector.extract_strided_slice %28 {offsets = [0, 384], sizes = [4, 128], strides = [1, 1]} : vector<4x512xf32> to vector<4x128xf32>
      %44 = arith.negf %43 : vector<4x128xf32>
      %45 = math.exp %44 : vector<4x128xf32>
      %cst_22 = arith.constant 1.000000e+00 : f32
      %46 = vector.broadcast %cst_22 : f32 to vector<4x128xf32>
      %47 = arith.addf %46, %45 : vector<4x128xf32>
      %48 = arith.divf %46, %47 : vector<4x128xf32>
      %49 = arith.mulf %40, %arg9 : vector<4x128xf32>
      %50 = arith.mulf %34, %42 : vector<4x128xf32>
      %51 = arith.addf %49, %50 : vector<4x128xf32>
      %52 = math.tanh %51 : vector<4x128xf32>
      %53 = arith.mulf %48, %52 : vector<4x128xf32>
      scf.yield %53, %51 : vector<4x128xf32>, vector<4x128xf32>
    }
    %c8_i32_5 = arith.constant 8 : i32
    %c0_6 = arith.constant 0 : index
    %c0_7 = arith.constant 0 : index
    %6 = vector.load %arg4[%c0_6, %c0_7] : memref<128x64xf32, #tpu.memory_space<vmem>>, vector<128x64xf32>
    %cst_8 = arith.constant dense<0.000000e+00> : vector<4x64xf32>
    %7 = tpu.matmul %5#0, %6, %cst_8 {dimension_numbers = #tpu.dot_dimension_numbers<[1], [0], [0], [1], [0, 0, 1, 1], [], []>} : vector<4x128xf32>, vector<128x64xf32>, vector<4x64xf32> -> vector<4x64xf32>
    %cst_9 = arith.constant 0.000000e+00 : f32
    %8 = vector.broadcast %cst_9 : f32 to vector<4x64xf32>
    %9 = arith.maximumf %7, %8 : vector<4x64xf32>
    %c0_10 = arith.constant 0 : index
    %c0_11 = arith.constant 0 : index
    %10 = vector.load %arg5[%c0_10, %c0_11] : memref<1x64xf32, #tpu.memory_space<vmem>>, vector<1x64xf32>
    %11 = vector.broadcast %10 : vector<1x64xf32> to vector<4x64xf32>
    %12 = arith.mulf %9, %11 : vector<4x64xf32>
    %cst_12 = arith.constant dense<0.000000e+00> : vector<4xf32>
    %13 = vector.multi_reduction <add>, %12, %cst_12 [1] : vector<4x64xf32> to vector<4xf32>
    %14 = vector.shape_cast %13 : vector<4xf32> to vector<4x1xf32>
    %15 = arith.negf %14 : vector<4x1xf32>
    %16 = math.exp %15 : vector<4x1xf32>
    %cst_13 = arith.constant 1.000000e+00 : f32
    %17 = vector.broadcast %cst_13 : f32 to vector<4x1xf32>
    %18 = arith.addf %17, %16 : vector<4x1xf32>
    %19 = arith.divf %17, %18 : vector<4x1xf32>
    %c0_14 = arith.constant 0 : index
    %c0_15 = arith.constant 0 : index
    %20 = vector.load %arg6[%c0_14, %c0_15] : memref<4x1xf32, #tpu.memory_space<vmem>>, vector<4x1xf32>
    tpu.vector_store %arg6[%c0_14, %c0_15], %19 {strides = array<i32>} : memref<4x1xf32, #tpu.memory_space<vmem>>, vector<4x1xf32>,
    return
  }
}

</mosaic_0001>

<bundles_post_ra>
// kernel: lstm_model_pallas.6
= control target key start
LH: loop header
LB: loop body
LE: loop exit
PB: predicated region body
PF: predicated region fallthrough
CT: control target
= control target key end

     0   :  { %v197_v0 = vmov 0   ;;  %v15_v11 = vlaneseq  ;;  %vm45_vm0 = vcmask 261120   ;;  %v198_v15 = vmov 0.0   ;;  %s250_s0 = inlined_call_operand.vmem [shape: s32[32,1], index: 0, kind: input, shape index: {}]   ;;  %s251_s1 = inlined_call_operand.vmem [shape: f32[32,128], index: 1, kind: input, shape index: {}]   ;;  %s252_s2 = inlined_call_operand.vmem [shape: f32[32,128], index: 2, kind: output, shape index: {}]  }
   0x1   :  { %196 = vset.pattern.permute.xlu1 %v197_v0  ;;  %195 = vset.pattern.permute.xlu0 %v197_v0  ;;  %v12_v1 = vld [vmem:[%s250_s0 + $0x8] sm:$0xff]  ;;  %v11_v2 = vld [vmem:[%s250_s0] sm:$0xff]  ;;  %v14_v3 = vld [vmem:[%s250_s0 + $0x18] sm:$0xff] }
   0x2   :  { %21 = vperm.xlu1 %196, %v12_v1   ;;  %18 = vperm.xlu0 %195, %v11_v2   ;;  %v41_v4 = vld [vmem:[%s251_s1] sm:$0xff]  ;;  %v42_v5 = vld [vmem:[%s251_s1 + $0x8] sm:$0xff]  ;;  %v13_v6 = vld [vmem:[%s250_s0 + $0x10] sm:$0xff]  ;;  %v16_v12 = vand.u32 127, %v15_v11 }
   0x3   :  { %v181_v7 = vpack.c.bf16 %v42_v5, %v41_v4  ;;  %v43_v8 = vld [vmem:[%s251_s1 + $0x10] sm:$0xff]  ;;  %v44_v9 = vld [vmem:[%s251_s1 + $0x18] sm:$0xff] }
   0x4   :  { %v185_v10 = vpack.c.bf16 %v44_v9, %v43_v8 }
   0x5   :  { %182 = vmatprep.subr.bf16.mxu0 %v181_v7  ;;  %189 = vmatprep.subr.bf16.mxu1 %v181_v7 }
   0x6   :  { %27 = vperm.xlu1 %196, %v14_v3   ;;  %24 = vperm.xlu0 %195, %v13_v6  }
   0x7   :  { %184 = vmatpush3.bf16.msra.mxu0 %v181_v7  ;;  %191 = vmatpush3.bf16.msra.mxu1 %v181_v7 }
   0x8   :  { %186 = vmatprep.subr.bf16.mxu0 %v185_v10  ;;  %190 = vmatprep.subr.bf16.mxu1 %v185_v10 }
   0xb   :  { %188 = vmatpush3.bf16.msra.mxu0 %v185_v10  ;;  %192 = vmatpush3.bf16.msra.mxu1 %v185_v10 }
  0x81   :  { %v22_v13 = vpop.permute.xlu1 %21  ;;  %v19_v14 = vpop.permute.xlu0 %18 }
  0x82   :  { %vm30_vm1 = vcmp.eq.s32.totalorder %v16_v12, %v22_v13  ;;  %vm29_vm2 = vcmp.eq.s32.totalorder %v16_v12, %v19_v14 }
  0x83   :  { %v152_v16 = vsel %vm30_vm1, 1.0, %v198_v15  ;;  %v151_v17 = vsel %vm29_vm2, 1.0, %v198_v15 }
  0x84   :  { %175 = vmatprep.mubr.msk.f32.mxu0 %vm45_vm0, %v151_v17 }
  0x85   :  { %v28_v18 = vpop.permute.xlu1 %27  ;;  %176 = vmatmul.mubr.msk.f32.vlgmr.msra.gmra.mrb[0].mxu0 %vm45_vm0, %v152_v16  ;;  %v25_v19 = vpop.permute.xlu0 %24 }
  0x86   :  { %vm32_vm3 = vcmp.eq.s32.totalorder %v16_v12, %v28_v18  ;;  %vm31_vm4 = vcmp.eq.s32.totalorder %v16_v12, %v25_v19 }
  0x87   :  { %v154_v20 = vsel %vm32_vm3, 1.0, %v198_v15  ;;  %v153_v21 = vsel %vm31_vm4, 1.0, %v198_v15 }
  0x88   :  { %178 = vmatprep.mubr.msk.f32.mxu1 %vm45_vm0, %v153_v21 }
  0x89   :  { %179 = vmatmul.mubr.msk.f32.vlgmr.msra.gmra.mrb[0].mxu1 %vm45_vm0, %v154_v20 }
 0x158   :  { %v177_v22 = vpop.f32.mrb[0].mxu0 }
 0x159   :  { %144 = vst [vmem:[%s252_s2 + $0x8] sm:$0xff] %v177_v22  ;;  %v124_v23 = vpop.f32.mrb[1].mxu0 }
 0x15a   :  { %143 = vst [vmem:[%s252_s2] sm:$0xff] %v124_v23 }
 0x15c   :  { %v180_v24 = vpop.f32.mrb[0].mxu1 }
 0x15d   :  { %146 = vst [vmem:[%s252_s2 + $0x18] sm:$0xff] %v180_v24  ;;  %v134_v25 = vpop.f32.mrb[1].mxu1 }
 0x15e   :  { %145 = vst [vmem:[%s252_s2 + $0x10] sm:$0xff] %v134_v25 }

// kernel: lstm_model_pallas.8
= control target key start
LH: loop header
LB: loop body
LE: loop exit
PB: predicated region body
PF: predicated region fallthrough
CT: control target
= control target key end

     0   :  { %s1387_s8 = smov 0   ;;  %s1555_s0 = inlined_call_operand.vmem [shape: f32[8,4,128], index: 0, kind: input, shape index: {}]   ;;  %s1556_s1 = inlined_call_operand.vmem [shape: f32[128,512], index: 1, kind: input, shape index: {}]   ;;  %s1557_s4 = inlined_call_operand.vmem [shape: f32[8,4,128], index: 4, kind: output, shape index: {}]   ;;  %s1558_s2 = inlined_call_operand.vmem [shape: f32[128,512], index: 2, kind: input, shape index: {}]   ;;  %s1559_s3 = inlined_call_operand.vmem [shape: f32[1,512], index: 3, kind: input, shape index: {}]  }
   0x1   :  { %v741_v0 = vld [vmem:[%s1556_s1] sm:$0xff]  ;;  %v746_v1 = vld [vmem:[%s1556_s1 + $0x8] sm:$0xff]  ;;  %v751_v2 = vld [vmem:[%s1556_s1 + $0x10] sm:$0xff] }
   0x2   :  { %1564 = vst [vmem:[#allocation2_spill] sm:$0xff] %v741_v0  ;;  %1565 = vst [vmem:[#allocation3_spill] sm:$0xff] %v746_v1  ;;  %v756_v3 = vld [vmem:[%s1556_s1 + $0x18] sm:$0xff]  ;;  %v761_v4 = vld [vmem:[%s1556_s1 + $0x20] sm:$0xff] }
   0x3   :  { %1566 = vst [vmem:[#allocation4_spill] sm:$0xff] %v751_v2  ;;  %1567 = vst [vmem:[#allocation5_spill] sm:$0xff] %v756_v3  ;;  %v766_v5 = vld [vmem:[%s1556_s1 + $0x28] sm:$0xff]  ;;  %v771_v6 = vld [vmem:[%s1556_s1 + $0x30] sm:$0xff] }
   0x4   :  { %1568 = vst [vmem:[#allocation6_spill] sm:$0xff] %v761_v4  ;;  %1569 = vst [vmem:[#allocation7_spill] sm:$0xff] %v766_v5  ;;  %v776_v7 = vld [vmem:[%s1556_s1 + $0x38] sm:$0xff]  ;;  %v781_v8 = vld [vmem:[%s1556_s1 + $0x40] sm:$0xff] }
   0x5   :  { %1570 = vst [vmem:[#allocation8_spill] sm:$0xff] %v771_v6  ;;  %1571 = vst [vmem:[#allocation9_spill] sm:$0xff] %v776_v7  ;;  %v786_v9 = vld [vmem:[%s1556_s1 + $0x48] sm:$0xff]  ;;  %v791_v10 = vld [vmem:[%s1556_s1 + $0x50] sm:$0xff] }
   0x6   :  { %1572 = vst [vmem:[#allocation10_spill] sm:$0xff] %v781_v8  ;;  %1573 = vst [vmem:[#allocation11_spill] sm:$0xff] %v786_v9  ;;  %v796_v11 = vld [vmem:[%s1556_s1 + $0x58] sm:$0xff]  ;;  %v801_v12 = vld [vmem:[%s1556_s1 + $0x60] sm:$0xff] }
   0x7   :  { %1574 = vst [vmem:[#allocation12_spill] sm:$0xff] %v791_v10  ;;  %1575 = vst [vmem:[#allocation13_spill] sm:$0xff] %v796_v11  ;;  %v806_v13 = vld [vmem:[%s1556_s1 + $0x68] sm:$0xff]  ;;  %v811_v14 = vld [vmem:[%s1556_s1 + $0x70] sm:$0xff] }
   0x8   :  { %1576 = vst [vmem:[#allocation14_spill] sm:$0xff] %v801_v12  ;;  %1577 = vst [vmem:[#allocation15_spill] sm:$0xff] %v806_v13  ;;  %v816_v15 = vld [vmem:[%s1556_s1 + $0x78] sm:$0xff]  ;;  %v821_v16 = vld [vmem:[%s1556_s1 + $0x80] sm:$0xff] }
   0x9   :  { %1578 = vst [vmem:[#allocation16_spill] sm:$0xff] %v811_v14  ;;  %1579 = vst [vmem:[#allocation17_spill] sm:$0xff] %v816_v15  ;;  %v826_v17 = vld [vmem:[%s1556_s1 + $0x88] sm:$0xff]  ;;  %v831_v18 = vld [vmem:[%s1556_s1 + $0x90] sm:$0xff] }
   0xa   :  { %1580 = vst [vmem:[#allocation18_spill] sm:$0xff] %v821_v16  ;;  %1581 = vst [vmem:[#allocation19_spill] sm:$0xff] %v826_v17  ;;  %v836_v19 = vld [vmem:[%s1556_s1 + $0x98] sm:$0xff]  ;;  %v841_v20 = vld [vmem:[%s1556_s1 + $0xa0] sm:$0xff] }
   0xb   :  { %1582 = vst [vmem:[#allocation20_spill] sm:$0xff] %v831_v18  ;;  %1583 = vst [vmem:[#allocation21_spill] sm:$0xff] %v836_v19  ;;  %v846_v21 = vld [vmem:[%s1556_s1 + $0xa8] sm:$0xff]  ;;  %v851_v22 = vld [vmem:[%s1556_s1 + $0xb0] sm:$0xff] }
   0xc   :  { %1584 = vst [vmem:[#allocation22_spill] sm:$0xff] %v841_v20  ;;  %1585 = vst [vmem:[#allocation23_spill] sm:$0xff] %v846_v21  ;;  %v856_v23 = vld [vmem:[%s1556_s1 + $0xb8] sm:$0xff]  ;;  %v861_v24 = vld [vmem:[%s1556_s1 + $0xc0] sm:$0xff] }
   0xd   :  { %1586 = vst [vmem:[#allocation24_spill] sm:$0xff] %v851_v22  ;;  %1587 = vst [vmem:[#allocation25_spill] sm:$0xff] %v856_v23  ;;  %v866_v25 = vld [vmem:[%s1556_s1 + $0xc8] sm:$0xff]  ;;  %v871_v26 = vld [vmem:[%s1556_s1 + $0xd0] sm:$0xff] }
   0xe   :  { %1588 = vst [vmem:[#allocation26_spill] sm:$0xff] %v861_v24  ;;  %1589 = vst [vmem:[#allocation27_spill] sm:$0xff] %v866_v25  ;;  %v876_v27 = vld [vmem:[%s1556_s1 + $0xd8] sm:$0xff]  ;;  %v881_v28 = vld [vmem:[%s1556_s1 + $0xe0] sm:$0xff] }
   0xf   :  { %1590 = vst [vmem:[#allocation28_spill] sm:$0xff] %v871_v26  ;;  %1591 = vst [vmem:[#allocation29_spill] sm:$0xff] %v876_v27  ;;  %v886_v29 = vld [vmem:[%s1556_s1 + $0xe8] sm:$0xff]  ;;  %v891_v30 = vld [vmem:[%s1556_s1 + $0xf0] sm:$0xff] }
  0x10   :  { %1592 = vst [vmem:[#allocation30_spill] sm:$0xff] %v881_v28  ;;  %1593 = vst [vmem:[#allocation31_spill] sm:$0xff] %v886_v29  ;;  %v896_v31 = vld [vmem:[%s1556_s1 + $0xf8] sm:$0xff]  ;;  %v901_v32 = vld [vmem:[%s1556_s1 + $0x100] sm:$0xff] }
  0x11   :  { %1594 = vst [vmem:[#allocation32_spill] sm:$0xff] %v891_v30  ;;  %1595 = vst [vmem:[#allocation33_spill] sm:$0xff] %v896_v31  ;;  %v906_v33 = vld [vmem:[%s1556_s1 + $0x108] sm:$0xff]  ;;  %v911_v34 = vld [vmem:[%s1556_s1 + $0x110] sm:$0xff] }
  0x12   :  { %1596 = vst [vmem:[#allocation34_spill] sm:$0xff] %v901_v32  ;;  %1597 = vst [vmem:[#allocation35_spill] sm:$0xff] %v906_v33  ;;  %v916_v35 = vld [vmem:[%s1556_s1 + $0x118] sm:$0xff]  ;;  %v921_v36 = vld [vmem:[%s1556_s1 + $0x120] sm:$0xff] }
  0x13   :  { %1598 = vst [vmem:[#allocation36_spill] sm:$0xff] %v911_v34  ;;  %1599 = vst [vmem:[#allocation37_spill] sm:$0xff] %v916_v35  ;;  %v926_v37 = vld [vmem:[%s1556_s1 + $0x128] sm:$0xff]  ;;  %v931_v38 = vld [vmem:[%s1556_s1 + $0x130] sm:$0xff] }
  0x14   :  { %1600 = vst [vmem:[#allocation38_spill] sm:$0xff] %v921_v36  ;;  %1601 = vst [vmem:[#allocation39_spill] sm:$0xff] %v926_v37  ;;  %v936_v39 = vld [vmem:[%s1556_s1 + $0x138] sm:$0xff]  ;;  %v941_v40 = vld [vmem:[%s1556_s1 + $0x140] sm:$0xff] }
  0x15   :  { %1602 = vst [vmem:[#allocation40_spill] sm:$0xff] %v931_v38  ;;  %1603 = vst [vmem:[#allocation41_spill] sm:$0xff] %v936_v39  ;;  %v946_v41 = vld [vmem:[%s1556_s1 + $0x148] sm:$0xff]  ;;  %v951_v42 = vld [vmem:[%s1556_s1 + $0x150] sm:$0xff] }
  0x16   :  { %1604 = vst [vmem:[#allocation42_spill] sm:$0xff] %v941_v40  ;;  %1605 = vst [vmem:[#allocation43_spill] sm:$0xff] %v946_v41  ;;  %v956_v43 = vld [vmem:[%s1556_s1 + $0x158] sm:$0xff]  ;;  %v961_v44 = vld [vmem:[%s1556_s1 + $0x160] sm:$0xff] }
  0x17   :  { %1606 = vst [vmem:[#allocation44_spill] sm:$0xff] %v951_v42  ;;  %1607 = vst [vmem:[#allocation45_spill] sm:$0xff] %v956_v43  ;;  %v966_v45 = vld [vmem:[%s1556_s1 + $0x168] sm:$0xff]  ;;  %v971_v46 = vld [vmem:[%s1556_s1 + $0x170] sm:$0xff] }
  0x18   :  { %1608 = vst [vmem:[#allocation46_spill] sm:$0xff] %v961_v44  ;;  %1609 = vst [vmem:[#allocation47_spill] sm:$0xff] %v966_v45  ;;  %v976_v47 = vld [vmem:[%s1556_s1 + $0x178] sm:$0xff]  ;;  %v981_v48 = vld [vmem:[%s1556_s1 + $0x180] sm:$0xff] }
  0x19   :  { %1610 = vst [vmem:[#allocation48_spill] sm:$0xff] %v971_v46  ;;  %1611 = vst [vmem:[#allocation49_spill] sm:$0xff] %v976_v47  ;;  %v986_v49 = vld [vmem:[%s1556_s1 + $0x188] sm:$0xff]  ;;  %v991_v50 = vld [vmem:[%s1556_s1 + $0x190] sm:$0xff] }
  0x1a   :  { %1612 = vst [vmem:[#allocation50_spill] sm:$0xff] %v981_v48  ;;  %1613 = vst [vmem:[#allocation51_spill] sm:$0xff] %v986_v49  ;;  %v996_v51 = vld [vmem:[%s1556_s1 + $0x198] sm:$0xff]  ;;  %v1001_v52 = vld [vmem:[%s1556_s1 + $0x1a0] sm:$0xff] }
  0x1b   :  { %1614 = vst [vmem:[#allocation52_spill] sm:$0xff] %v991_v50  ;;  %1615 = vst [vmem:[#allocation53_spill] sm:$0xff] %v996_v51  ;;  %v1006_v53 = vld [vmem:[%s1556_s1 + $0x1a8] sm:$0xff]  ;;  %v1011_v54 = vld [vmem:[%s1556_s1 + $0x1b0] sm:$0xff] }
  0x1c   :  { %1616 = vst [vmem:[#allocation54_spill] sm:$0xff] %v1001_v52  ;;  %1617 = vst [vmem:[#allocation55_spill] sm:$0xff] %v1006_v53  ;;  %v1016_v55 = vld [vmem:[%s1556_s1 + $0x1b8] sm:$0xff]  ;;  %v1021_v56 = vld [vmem:[%s1556_s1 + $0x1c0] sm:$0xff] }
  0x1d   :  { %1618 = vst [vmem:[#allocation56_spill] sm:$0xff] %v1011_v54  ;;  %1619 = vst [vmem:[#allocation57_spill] sm:$0xff] %v1016_v55  ;;  %v1026_v57 = vld [vmem:[%s1556_s1 + $0x1c8] sm:$0xff]  ;;  %v1031_v58 = vld [vmem:[%s1556_s1 + $0x1d0] sm:$0xff] }
  0x1e   :  { %1620 = vst [vmem:[#allocation58_spill] sm:$0xff] %v1021_v56  ;;  %1621 = vst [vmem:[#allocation59_spill] sm:$0xff] %v1026_v57  ;;  %v1036_v59 = vld [vmem:[%s1556_s1 + $0x1d8] sm:$0xff]  ;;  %v1041_v60 = vld [vmem:[%s1556_s1 + $0x1e0] sm:$0xff] }
  0x1f   :  { %1622 = vst [vmem:[#allocation60_spill] sm:$0xff] %v1031_v58  ;;  %1623 = vst [vmem:[#allocation61_spill] sm:$0xff] %v1036_v59  ;;  %v1046_v61 = vld [vmem:[%s1556_s1 + $0x1e8] sm:$0xff]  ;;  %v1051_v62 = vld [vmem:[%s1556_s1 + $0x1f0] sm:$0xff] }
  0x20   :  { %1624 = vst [vmem:[#allocation62_spill] sm:$0xff] %v1041_v60  ;;  %1625 = vst [vmem:[#allocation63_spill] sm:$0xff] %v1046_v61  ;;  %v1056_v63 = vld [vmem:[%s1556_s1 + $0x1f8] sm:$0xff]  ;;  %v1061_v58 = vld [vmem:[%s1558_s2] sm:$0xff] }
  0x21   :  { %1626 = vst [vmem:[#allocation64_spill] sm:$0xff] %v1051_v62  ;;  %1627 = vst [vmem:[#allocation65_spill] sm:$0xff] %v1056_v63  ;;  %v1066_v60 = vld [vmem:[%s1558_s2 + $0x8] sm:$0xff]  ;;  %v1071_v56 = vld [vmem:[%s1558_s2 + $0x10] sm:$0xff] }
  0x22   :  { %1628 = vst [vmem:[#allocation66_spill] sm:$0xff] %v1071_v56  ;;  %v1076_v62 = vld [vmem:[%s1558_s2 + $0x18] sm:$0xff]  ;;  %v1081_v63 = vld [vmem:[%s1558_s2 + $0x20] sm:$0xff]  ;;  %v1086_v59 = vld [vmem:[%s1558_s2 + $0x28] sm:$0xff] }
  0x23   :  { %1629 = vst [vmem:[#allocation67_spill] sm:$0xff] %v1086_v59  ;;  %v1091_v61 = vld [vmem:[%s1558_s2 + $0x30] sm:$0xff]  ;;  %v1096_v57 = vld [vmem:[%s1558_s2 + $0x38] sm:$0xff]  ;;  %v1101_v54 = vld [vmem:[%s1558_s2 + $0x40] sm:$0xff] }
  0x24   :  { %1630 = vst [vmem:[#allocation68_spill] sm:$0xff] %v1096_v57  ;;  %v1106_v50 = vld [vmem:[%s1558_s2 + $0x48] sm:$0xff]  ;;  %v1111_v52 = vld [vmem:[%s1558_s2 + $0x50] sm:$0xff]  ;;  %v1116_v48 = vld [vmem:[%s1558_s2 + $0x58] sm:$0xff] }
  0x25   :  { %1631 = vst [vmem:[#allocation69_spill] sm:$0xff] %v1106_v50  ;;  %v1121_v55 = vld [vmem:[%s1558_s2 + $0x60] sm:$0xff]  ;;  %v1126_v51 = vld [vmem:[%s1558_s2 + $0x68] sm:$0xff]  ;;  %v1131_v53 = vld [vmem:[%s1558_s2 + $0x70] sm:$0xff] }
  0x26   :  { %1632 = vst [vmem:[#allocation70_spill] sm:$0xff] %v1126_v51  ;;  %v1136_v49 = vld [vmem:[%s1558_s2 + $0x78] sm:$0xff]  ;;  %v1141_v46 = vld [vmem:[%s1558_s2 + $0x80] sm:$0xff]  ;;  %v1146_v42 = vld [vmem:[%s1558_s2 + $0x88] sm:$0xff] }
  0x27   :  { %v1151_v44 = vld [vmem:[%s1558_s2 + $0x90] sm:$0xff]  ;;  %v1156_v40 = vld [vmem:[%s1558_s2 + $0x98] sm:$0xff]  ;;  %v1161_v47 = vld [vmem:[%s1558_s2 + $0xa0] sm:$0xff] }
  0x28   :  { %v1166_v43 = vld [vmem:[%s1558_s2 + $0xa8] sm:$0xff]  ;;  %v1171_v45 = vld [vmem:[%s1558_s2 + $0xb0] sm:$0xff]  ;;  %v1176_v41 = vld [vmem:[%s1558_s2 + $0xb8] sm:$0xff] }
  0x29   :  { %v1181_v38 = vld [vmem:[%s1558_s2 + $0xc0] sm:$0xff]  ;;  %v1186_v34 = vld [vmem:[%s1558_s2 + $0xc8] sm:$0xff]  ;;  %v1191_v36 = vld [vmem:[%s1558_s2 + $0xd0] sm:$0xff] }
  0x2a   :  { %v1196_v32 = vld [vmem:[%s1558_s2 + $0xd8] sm:$0xff]  ;;  %v1201_v39 = vld [vmem:[%s1558_s2 + $0xe0] sm:$0xff]  ;;  %v1206_v35 = vld [vmem:[%s1558_s2 + $0xe8] sm:$0xff] }
  0x2b   :  { %v1211_v37 = vld [vmem:[%s1558_s2 + $0xf0] sm:$0xff]  ;;  %v1216_v33 = vld [vmem:[%s1558_s2 + $0xf8] sm:$0xff]  ;;  %v1221_v30 = vld [vmem:[%s1558_s2 + $0x100] sm:$0xff] }
  0x2c   :  { %v1226_v26 = vld [vmem:[%s1558_s2 + $0x108] sm:$0xff]  ;;  %v1231_v28 = vld [vmem:[%s1558_s2 + $0x110] sm:$0xff]  ;;  %v1236_v24 = vld [vmem:[%s1558_s2 + $0x118] sm:$0xff] }
  0x2d   :  { %v1241_v31 = vld [vmem:[%s1558_s2 + $0x120] sm:$0xff]  ;;  %v1246_v27 = vld [vmem:[%s1558_s2 + $0x128] sm:$0xff]  ;;  %v1251_v29 = vld [vmem:[%s1558_s2 + $0x130] sm:$0xff] }
  0x2e   :  { %v1256_v25 = vld [vmem:[%s1558_s2 + $0x138] sm:$0xff]  ;;  %v1261_v22 = vld [vmem:[%s1558_s2 + $0x140] sm:$0xff]  ;;  %v1266_v18 = vld [vmem:[%s1558_s2 + $0x148] sm:$0xff] }
  0x2f   :  { %v1271_v20 = vld [vmem:[%s1558_s2 + $0x150] sm:$0xff]  ;;  %v1276_v16 = vld [vmem:[%s1558_s2 + $0x158] sm:$0xff]  ;;  %v1281_v23 = vld [vmem:[%s1558_s2 + $0x160] sm:$0xff] }
  0x30   :  { %1633 = vst [vmem:[#allocation71_spill] sm:$0xff] %v1276_v16  ;;  %v1286_v19 = vld [vmem:[%s1558_s2 + $0x168] sm:$0xff]  ;;  %v1291_v21 = vld [vmem:[%s1558_s2 + $0x170] sm:$0xff]  ;;  %v1296_v17 = vld [vmem:[%s1558_s2 + $0x178] sm:$0xff] }
  0x31   :  { %v1301_v14 = vld [vmem:[%s1558_s2 + $0x180] sm:$0xff]  ;;  %v1306_v10 = vld [vmem:[%s1558_s2 + $0x188] sm:$0xff]  ;;  %v1311_v12 = vld [vmem:[%s1558_s2 + $0x190] sm:$0xff] }
  0x32   :  { %1634 = vst [vmem:[#allocation72_spill] sm:$0xff] %v1301_v14  ;;  %1635 = vst [vmem:[#allocation73_spill] sm:$0xff] %v1306_v10  ;;  %v1316_v8 = vld [vmem:[%s1558_s2 + $0x198] sm:$0xff]  ;;  %v1321_v15 = vld [vmem:[%s1558_s2 + $0x1a0] sm:$0xff] }
  0x33   :  { %1636 = vst [vmem:[#allocation74_spill] sm:$0xff] %v1311_v12  ;;  %1637 = vst [vmem:[#allocation75_spill] sm:$0xff] %v1316_v8  ;;  %v1326_v11 = vld [vmem:[%s1558_s2 + $0x1a8] sm:$0xff]  ;;  %v1331_v13 = vld [vmem:[%s1558_s2 + $0x1b0] sm:$0xff] }
  0x34   :  { %1638 = vst [vmem:[#allocation76_spill] sm:$0xff] %v1321_v15  ;;  %1639 = vst [vmem:[#allocation77_spill] sm:$0xff] %v1326_v11  ;;  %v1336_v9 = vld [vmem:[%s1558_s2 + $0x1b8] sm:$0xff]  ;;  %v1341_v6 = vld [vmem:[%s1558_s2 + $0x1c0] sm:$0xff] }
  0x35   :  { %1640 = vst [vmem:[#allocation78_spill] sm:$0xff] %v1331_v13  ;;  %1641 = vst [vmem:[#allocation79_spill] sm:$0xff] %v1336_v9  ;;  %v1346_v2 = vld [vmem:[%s1558_s2 + $0x1c8] sm:$0xff]  ;;  %v1351_v4 = vld [vmem:[%s1558_s2 + $0x1d0] sm:$0xff] }
  0x36   :  { %1642 = vst [vmem:[#allocation80_spill] sm:$0xff] %v1341_v6  ;;  %1643 = vst [vmem:[#allocation81_spill] sm:$0xff] %v1346_v2  ;;  %v1356_v0 = vld [vmem:[%s1558_s2 + $0x1d8] sm:$0xff]  ;;  %v1361_v7 = vld [vmem:[%s1558_s2 + $0x1e0] sm:$0xff]  ;;  %v1385_v6 = vmov 0.0  }
  0x37   :  { %1644 = vst [vmem:[#allocation82_spill] sm:$0xff] %v1351_v4  ;;  %1645 = vst [vmem:[#allocation83_spill] sm:$0xff] %v1356_v0  ;;  %v1366_v3 = vld [vmem:[%s1558_s2 + $0x1e8] sm:$0xff]  ;;  %v1371_v5 = vld [vmem:[%s1558_s2 + $0x1f0] sm:$0xff] }
  0x38   :  { %1646 = vst [vmem:[#allocation84_spill] sm:$0xff] %v1361_v7  ;;  %1647 = vst [vmem:[#allocation85_spill] sm:$0xff] %v1366_v3  ;;  %v1376_v1 = vld [vmem:[%s1558_s2 + $0x1f8] sm:$0xff]  ;;  %v1381_v4 = vld [vmem:[%s1559_s3] sm:$0xf]  ;;  %v1383_v7 = vmov 0.0  }
  0x39   :  { %1648 = vst [vmem:[#allocation86_spill] sm:$0xff] %v1371_v5  ;;  %1649 = vst [vmem:[#allocation87_spill] sm:$0xff] %v1376_v1 }
  0x3a   :  { %1650 = vst [vmem:[#allocation88_spill] sm:$0xff] %v1381_v4 }
  0x3b LB: > { %1651 = vst [vmem:[#allocation89_spill] sm:$0xff] %v702_v7  ;;  %1652 = vst [vmem:[#allocation90_spill] sm:$0xff] %v706_v6  ;;  %v1653_v59 = vld [vmem:[#allocation67_spill] sm:$0xff]  ;;  %v1654_v57 = vld [vmem:[#allocation68_spill] sm:$0xff]  ;;  %v517_v1 = vpack.c.bf16 %v1081_v63, %v1061_v58  ;;  %v551_v6 = vpack.c.bf16 %v1136_v49, %v1116_v48  ;;  %s511_s2 = sshll.u32 %s710_s8, 2  ;;  %s151_s8 = sadd.s32 1, %s710_s8   ;;  %s710_s8 = sphi %s1387_s8, %s151_s8   ;;  %v706_v6 = vphi %v1385_v6, %v489_v6   ;;  %v702_v7 = vphi %v1383_v7, %v487_v7  }
  0x3c   : > { %v515_v4 = vpack.c.bf16 %v1653_v59, %v1066_v60  ;;  %v547_v5 = vpack.c.bf16 %v1654_v57, %v1076_v62  ;;  %v1655_v56 = vld [vmem:[#allocation66_spill] sm:$0xff]  ;;  %v1656_v50 = vld [vmem:[#allocation69_spill] sm:$0xff]  ;;  %v521_v59 = vpack.c.bf16 %v1121_v55, %v1101_v54  ;;  %v553_v57 = vpack.c.bf16 %v1131_v53, %v1111_v52  ;;  %v1658_v16 = vld [vmem:[#allocation71_spill] sm:$0xff]  ;;  %s155_s10 = scalar_lea.vmem %s1555_s0, %s511_s2  ;;  %s490_s13 = scalar_lea.vmem %s1557_s4, %s511_s2 }
  0x3d   : > { %v549_v0 = vpack.c.bf16 %v1091_v61, %v1655_v56  ;;  %v1657_v51 = vld [vmem:[#allocation70_spill] sm:$0xff]  ;;  %v523_v56 = vpack.c.bf16 %v1166_v43, %v1146_v42  ;;  %v1659_v10 = vld [vmem:[#allocation73_spill] sm:$0xff]  ;;  %v1661_v8 = vld [vmem:[#allocation75_spill] sm:$0xff]  ;;  %p148_p0 = scmp.ge.s32.totalorder %s151_s8, 8  }
  0x3e   : > { %v519_v7 = vpack.c.bf16 %v1657_v51, %v1656_v50  ;;  %516 = vmatprep.subr.bf16.mxu0 %v515_v4  ;;  %548 = vmatprep.subr.bf16.mxu1 %v547_v5  ;;  %v555_v50 = vpack.c.bf16 %v1176_v41, %v1156_v40  ;;  %v1562_v51 = vmov 0.0   ;;  %v527_v4 = vpack.c.bf16 %v1206_v35, %v1186_v34  ;;  %v1660_v11 = vld [vmem:[#allocation77_spill] sm:$0xff]  ;;  %v1662_v9 = vld [vmem:[#allocation79_spill] sm:$0xff]  ;;  %v1663_v14 = vld [vmem:[#allocation72_spill] sm:$0xff] }
  0x3f   : > { %518 = vmatpush1.bf16.msra.mxu0 %v517_v1  ;;  %550 = vmatpush1.bf16.msra.mxu1 %v549_v0  ;;  %v525_v0 = vpack.c.bf16 %v1161_v47, %v1141_v46  ;;  %v557_v1 = vpack.c.bf16 %v1171_v45, %v1151_v44  ;;  %v559_v5 = vpack.c.bf16 %v1216_v33, %v1196_v32  ;;  %v1664_v15 = vld [vmem:[#allocation76_spill] sm:$0xff]  ;;  %v1665_v12 = vld [vmem:[#allocation74_spill] sm:$0xff]  ;;  %v1667_v2 = vld [vmem:[#allocation81_spill] sm:$0xff] }
  0x40   : > { %520 = vmatprep.subr.bf16.mxu0 %v519_v7  ;;  %552 = vmatprep.subr.bf16.mxu1 %v551_v6  ;;  %v529_v6 = vpack.c.bf16 %v1201_v39, %v1181_v38  ;;  %v561_v7 = vpack.c.bf16 %v1211_v37, %v1191_v36  ;;  %v1666_v13 = vld [vmem:[#allocation78_spill] sm:$0xff]  ;;  %v1668_v3 = vld [vmem:[#allocation85_spill] sm:$0xff] }
  0x41   : > { %221 = vmatprep.mubr.f32.mxu0 %v1562_v51  ;;  %292 = vmatprep.mubr.f32.mxu1 %v1562_v51  ;;  %v1671_v51 = vld [vmem:[#allocation80_spill] sm:$0xff] }
  0x43   : > { %522 = vmatpush1.bf16.msra.mxu0 %v521_v59  ;;  %554 = vmatpush1.bf16.msra.mxu1 %v553_v57  ;;  %v533_v57 = vpack.c.bf16 %v1241_v31, %v1221_v30  ;;  %v565_v59 = vpack.c.bf16 %v1251_v29, %v1231_v28 }
  0x44   : > { %524 = vmatprep.subr.bf16.mxu0 %v523_v56  ;;  %556 = vmatprep.subr.bf16.mxu1 %v555_v50  ;;  %v531_v56 = vpack.c.bf16 %v1246_v27, %v1226_v26  ;;  %v563_v50 = vpack.c.bf16 %v1256_v25, %v1236_v24 }
  0x47   : > { %526 = vmatpush1.bf16.msra.mxu0 %v525_v0  ;;  %558 = vmatpush1.bf16.msra.mxu1 %v557_v1  ;;  %v535_v0 = vpack.c.bf16 %v1286_v19, %v1266_v18  ;;  %v567_v1 = vpack.c.bf16 %v1296_v17, %v1658_v16 }
  0x48   : > { %528 = vmatprep.subr.bf16.mxu0 %v527_v4  ;;  %560 = vmatprep.subr.bf16.mxu1 %v559_v5  ;;  %v537_v4 = vpack.c.bf16 %v1281_v23, %v1261_v22  ;;  %v569_v5 = vpack.c.bf16 %v1291_v21, %v1271_v20 }
  0x4b   : > { %530 = vmatpush1.bf16.msra.mxu0 %v529_v6  ;;  %562 = vmatpush1.bf16.msra.mxu1 %v561_v7  ;;  %v539_v6 = vpack.c.bf16 %v1660_v11, %v1659_v10  ;;  %v571_v7 = vpack.c.bf16 %v1662_v9, %v1661_v8  ;;  %v1672_v8 = vld [vmem:[#allocation84_spill] sm:$0xff]  ;;  %v1674_v9 = vld [vmem:[#allocation86_spill] sm:$0xff]  ;;  %v1675_v11 = vld [vmem:[#allocation3_spill] sm:$0xff] }
  0x4c   : > { %532 = vmatprep.subr.bf16.mxu0 %v531_v56  ;;  %564 = vmatprep.subr.bf16.mxu1 %v563_v50  ;;  %v541_v56 = vpack.c.bf16 %v1664_v15, %v1663_v14  ;;  %v573_v50 = vpack.c.bf16 %v1666_v13, %v1665_v12  ;;  %v1676_v12 = vld [vmem:[#allocation7_spill] sm:$0xff]  ;;  %v1678_v13 = vld [vmem:[#allocation9_spill] sm:$0xff] }
  0x4f   : > { %534 = vmatpush1.bf16.msra.mxu0 %v533_v57  ;;  %566 = vmatpush1.bf16.msra.mxu1 %v565_v59  ;;  %v543_v57 = vpack.c.bf16 %v1668_v3, %v1667_v2  ;;  %v1669_v59 = vld [vmem:[#allocation83_spill] sm:$0xff]  ;;  %v1679_v2 = vld [vmem:[#allocation2_spill] sm:$0xff] }
  0x50   : > { %536 = vmatprep.subr.bf16.mxu0 %v535_v0  ;;  %568 = vmatprep.subr.bf16.mxu1 %v567_v1  ;;  %v1670_v0 = vld [vmem:[#allocation87_spill] sm:$0xff] }
  0x51   : > { %v575_v1 = vpack.c.bf16 %v1670_v0, %v1669_v59  ;;  %v1680_v59 = vld [vmem:[#allocation6_spill] sm:$0xff]  ;;  %v1682_v0 = vld [vmem:[#allocation8_spill] sm:$0xff] }
  0x53   : > { %538 = vmatpush1.bf16.msra.mxu0 %v537_v4  ;;  %570 = vmatpush1.bf16.msra.mxu1 %v569_v5  ;;  %v545_v4 = vpack.c.bf16 %v1672_v8, %v1671_v51  ;;  %v1673_v5 = vld [vmem:[#allocation82_spill] sm:$0xff]  ;;  %v1683_v8 = vld [vmem:[#allocation11_spill] sm:$0xff] }
  0x54   : > { %540 = vmatprep.subr.bf16.mxu0 %v539_v6  ;;  %572 = vmatprep.subr.bf16.mxu1 %v571_v7  ;;  %v577_v10 = vpack.c.bf16 %v1674_v9, %v1673_v5  ;;  %v579_v6 = vpack.c.bf16 %v1676_v12, %v1675_v11  ;;  %v1677_v7 = vld [vmem:[#allocation5_spill] sm:$0xff]  ;;  %v1684_v9 = vld [vmem:[#allocation15_spill] sm:$0xff]  ;;  %v1687_v11 = vld [vmem:[#allocation90_spill] sm:$0xff] }
  0x55   : > { %v611_v14 = vpack.c.bf16 %v1678_v13, %v1677_v7  ;;  %v583_v51 = vpack.c.bf16 %v1684_v9, %v1683_v8  ;;  %v1689_v12 = vld [vmem:[#allocation14_spill] sm:$0xff]  ;;  %v1690_v13 = vld [vmem:[#allocation12_spill] sm:$0xff]  ;;  %v1696_v9 = vmov 0.0  }
  0x57   : > { %542 = vmatpush1.bf16.msra.mxu0 %v541_v56  ;;  %574 = vmatpush1.bf16.msra.mxu1 %v573_v50  ;;  %v581_v56 = vpack.c.bf16 %v1680_v59, %v1679_v2  ;;  %v1681_v50 = vld [vmem:[#allocation4_spill] sm:$0xff] }
  0x58   : > { %544 = vmatprep.subr.bf16.mxu0 %v543_v57  ;;  %576 = vmatprep.subr.bf16.mxu1 %v575_v1  ;;  %v613_v3 = vpack.c.bf16 %v1682_v0, %v1681_v50  ;;  %v1685_v57 = vld [vmem:[#allocation13_spill] sm:$0xff] }
  0x59   : > { %v1686_v1 = vld [vmem:[#allocation17_spill] sm:$0xff] }
  0x5a   : > { %v615_v5 = vpack.c.bf16 %v1686_v1, %v1685_v57  ;;  %v1694_v50 = vld [vmem:[#allocation21_spill] sm:$0xff]  ;;  %v1699_v1 = vld [vmem:[#allocation20_spill] sm:$0xff] }
  0x5b   : > { %546 = vmatpush1.bf16.msra.mxu0 %v545_v4  ;;  %578 = vmatpush1.bf16.msra.mxu1 %v577_v10  ;;  %v1688_v10 = vld [vmem:[#allocation10_spill] sm:$0xff]  ;;  %v1691_v4 = vld [vmem:[#allocation16_spill] sm:$0xff]  ;;  %v1695_v0 = vld [vmem:[#allocation25_spill] sm:$0xff] }
  0x5c   : > { %580 = vmatprep.subr.bf16.mxu0 %v579_v6  ;;  %612 = vmatprep.subr.bf16.mxu1 %v611_v14  ;;  %v585_v2 = vpack.c.bf16 %v1689_v12, %v1688_v10  ;;  %v617_v7 = vpack.c.bf16 %v1691_v4, %v1690_v13  ;;  %v1692_v14 = vld [vmem:[#allocation19_spill] sm:$0xff]  ;;  %v619_v8 = vpack.c.bf16 %v1695_v0, %v1694_v50  ;;  %v1703_v13 = vld [vmem:[#allocation29_spill] sm:$0xff]  ;;  %v1706_v50 = vld [vmem:[#allocation30_spill] sm:$0xff] }
  0x5d   : > { %v1693_v6 = vld [vmem:[#allocation23_spill] sm:$0xff]  ;;  %v1704_v4 = vld [vmem:[#allocation33_spill] sm:$0xff]  ;;  %v1708_v0 = vld [vmem:[#allocation32_spill] sm:$0xff] }
  0x5e   : > { %222 = vmatmul.mubr.f32.vlgmr.msra.gmra.mrb[0].mxu0 %v1687_v11  ;;  %293 = vmatmul.mubr.f32.vlgmr.msra.gmra.mrb[0].mxu1 %v1687_v11  ;;  %v587_v59 = vpack.c.bf16 %v1693_v6, %v1692_v14  ;;  %v1700_v11 = vld [vmem:[#allocation24_spill] sm:$0xff]  ;;  %v623_v14 = vpack.c.bf16 %v1704_v4, %v1703_v13  ;;  %v1705_v6 = vld [vmem:[#allocation26_spill] sm:$0xff] }
  0x5f   : > { %582 = vmatpush1.bf16.msra.mxu0 %v581_v56  ;;  %614 = vmatpush1.bf16.msra.mxu1 %v613_v3  ;;  %v1697_v3 = vld [vmem:[#allocation18_spill] sm:$0xff]  ;;  %v621_v10 = vpack.c.bf16 %v1700_v11, %v1699_v1  ;;  %v1712_v1 = vld [vmem:[#allocation41_spill] sm:$0xff]  ;;  %v1716_v13 = vld [vmem:[#allocation40_spill] sm:$0xff] }
  0x60   : > { %584 = vmatprep.subr.bf16.mxu0 %v583_v51  ;;  %616 = vmatprep.subr.bf16.mxu1 %v615_v5  ;;  %v1698_v56 = vld [vmem:[#allocation22_spill] sm:$0xff]  ;;  %v1701_v51 = vld [vmem:[#allocation27_spill] sm:$0xff] }
  0x61   : > { %363 = vmatprep.mubr.f32.mxu0 %v1696_v9  ;;  %434 = vmatprep.mubr.f32.mxu1 %v1696_v9  ;;  %v589_v57 = vpack.c.bf16 %v1698_v56, %v1697_v3  ;;  %v1702_v5 = vld [vmem:[#allocation31_spill] sm:$0xff] }
  0x62   : > { %v591_v12 = vpack.c.bf16 %v1702_v5, %v1701_v51  ;;  %v1709_v3 = vld [vmem:[#allocation35_spill] sm:$0xff]  ;;  %v1713_v51 = vld [vmem:[#allocation34_spill] sm:$0xff] }
  0x63   : > { %586 = vmatpush1.bf16.msra.mxu0 %v585_v2  ;;  %618 = vmatpush1.bf16.msra.mxu1 %v617_v7  ;;  %v593_v2 = vpack.c.bf16 %v1706_v50, %v1705_v6  ;;  %v1707_v7 = vld [vmem:[#allocation28_spill] sm:$0xff]  ;;  %v1710_v56 = vld [vmem:[#allocation39_spill] sm:$0xff]  ;;  %v1714_v5 = vld [vmem:[#allocation38_spill] sm:$0xff] }
  0x64   : > { %588 = vmatprep.subr.bf16.mxu0 %v587_v59  ;;  %620 = vmatprep.subr.bf16.mxu1 %v619_v8  ;;  %v625_v9 = vpack.c.bf16 %v1708_v0, %v1707_v7  ;;  %v595_v59 = vpack.c.bf16 %v1710_v56, %v1709_v3  ;;  %v1711_v8 = vld [vmem:[#allocation37_spill] sm:$0xff]  ;;  %v1717_v6 = vld [vmem:[#allocation43_spill] sm:$0xff]  ;;  %v1721_v3 = vld [vmem:[#allocation42_spill] sm:$0xff] }
  0x65   : > { %v627_v11 = vpack.c.bf16 %v1712_v1, %v1711_v8  ;;  %v1718_v50 = vld [vmem:[#allocation47_spill] sm:$0xff]  ;;  %v1720_v7 = vld [vmem:[#allocation49_spill] sm:$0xff]  ;;  %v1723_v56 = vld [vmem:[#allocation44_spill] sm:$0xff] }
  0x66   : > { %v1724_v8 = vld [vmem:[#allocation48_spill] sm:$0xff] }
  0x67   : > { %590 = vmatpush1.bf16.msra.mxu0 %v589_v57  ;;  %622 = vmatpush1.bf16.msra.mxu1 %v621_v10  ;;  %v597_v57 = vpack.c.bf16 %v1714_v5, %v1713_v51  ;;  %v1715_v10 = vld [vmem:[#allocation36_spill] sm:$0xff]  ;;  %v633_v1 = vpack.c.bf16 %v1724_v8, %v1723_v56  ;;  %v1725_v51 = vld [vmem:[#allocation51_spill] sm:$0xff]  ;;  %v1727_v5 = vld [vmem:[#allocation53_spill] sm:$0xff] }
  0x68   : > { %592 = vmatprep.subr.bf16.mxu0 %v591_v12  ;;  %624 = vmatprep.subr.bf16.mxu1 %v623_v14  ;;  %v629_v4 = vpack.c.bf16 %v1716_v13, %v1715_v10  ;;  %v599_v12 = vpack.c.bf16 %v1718_v50, %v1717_v6  ;;  %v1719_v14 = vld [vmem:[#allocation45_spill] sm:$0xff]  ;;  %v1730_v6 = vld [vmem:[#allocation54_spill] sm:$0xff]  ;;  %v1731_v50 = vld [vmem:[#allocation52_spill] sm:$0xff] }
  0x69   : > { %v631_v0 = vpack.c.bf16 %v1720_v7, %v1719_v14  ;;  %v1728_v10 = vld [vmem:[#allocation57_spill] sm:$0xff]  ;;  %v1732_v14 = vld [vmem:[#allocation56_spill] sm:$0xff] }
  0x6a   : > { %v635_v13 = vpack.c.bf16 %v1728_v10, %v1727_v5  ;;  %v637_v7 = vpack.c.bf16 %v1732_v14, %v1731_v50  ;;  %v1736_v56 = vld [vmem:[#allocation65_spill] sm:$0xff]  ;;  %v1740_v5 = vld [vmem:[#allocation64_spill] sm:$0xff] }
  0x6b   : > { %594 = vmatpush1.bf16.msra.mxu0 %v593_v2  ;;  %626 = vmatpush1.bf16.msra.mxu1 %v625_v9  ;;  %v1722_v2 = vld [vmem:[#allocation46_spill] sm:$0xff]  ;;  %v1741_v50 = vld [vmem:[#allocation88_spill] sm:$0xff] }
  0x6c   : > { %596 = vmatprep.subr.bf16.mxu0 %v595_v59  ;;  %628 = vmatprep.subr.bf16.mxu1 %v627_v11  ;;  %v601_v9 = vpack.c.bf16 %v1722_v2, %v1721_v3  ;;  %v1726_v59 = vld [vmem:[#allocation55_spill] sm:$0xff]  ;;  %v1735_v2 = vld [vmem:[#allocation61_spill] sm:$0xff] }
  0x6d   : > { %v603_v11 = vpack.c.bf16 %v1726_v59, %v1725_v51  ;;  %v1733_v3 = vld [vmem:[#allocation59_spill] sm:$0xff]  ;;  %v639_v8 = vpack.c.bf16 %v1736_v56, %v1735_v2  ;;  %v1737_v51 = vld [vmem:[#allocation58_spill] sm:$0xff]  ;;  %v1739_v59 = vld [vmem:[#allocation60_spill] sm:$0xff] }
  0x6e   : > { %v641_v10 = vpack.c.bf16 %v1740_v5, %v1739_v59 }
  0x6f   : > { %598 = vmatpush1.bf16.msra.mxu0 %v597_v57  ;;  %630 = vmatpush1.bf16.msra.mxu1 %v629_v4  ;;  %v1729_v57 = vld [vmem:[#allocation50_spill] sm:$0xff] }
  0x70   : > { %600 = vmatprep.subr.bf16.mxu0 %v599_v12  ;;  %632 = vmatprep.subr.bf16.mxu1 %v631_v0  ;;  %v605_v4 = vpack.c.bf16 %v1730_v6, %v1729_v57  ;;  %v1734_v12 = vld [vmem:[#allocation63_spill] sm:$0xff] }
  0x71   : > { %v607_v0 = vpack.c.bf16 %v1734_v12, %v1733_v3 }
  0x73   : > { %602 = vmatpush1.bf16.msra.mxu0 %v601_v9  ;;  %634 = vmatpush1.bf16.msra.mxu1 %v633_v1  ;;  %v1738_v9 = vld [vmem:[#allocation62_spill] sm:$0xff] }
  0x74   : > { %604 = vmatprep.subr.bf16.mxu0 %v603_v11  ;;  %636 = vmatprep.subr.bf16.mxu1 %v635_v13  ;;  %v609_v1 = vpack.c.bf16 %v1738_v9, %v1737_v51  ;;  %v156_v11 = vld [vmem:[%s155_s10] sm:$0xf]  ;;  %v442_v13 = vlaneseq }
  0x76   : > { %v443_v57 = vshrl.u32 %v442_v13, 7 }
  0x77   : > { %606 = vmatpush1.bf16.msra.mxu0 %v605_v4  ;;  %638 = vmatpush1.bf16.msra.mxu1 %v637_v7 }
  0x78   : > { %608 = vmatprep.subr.bf16.mxu0 %v607_v0  ;;  %640 = vmatprep.subr.bf16.mxu1 %v639_v8  ;;  %v444_v6 = vsub.s32 0, %v443_v57  ;;  %v448_v4 = vsub.s32 1, %v443_v57  ;;  %v456_v0 = vsub.s32 3, %v443_v57  ;;  %v452_v5 = vsub.s32 2, %v443_v57 }
  0x7a   : > { %v445_v14 = vrot.slane %v1741_v50, %v444_v6  ;;  %v449_v7 = vrot.slane %v1741_v50, %v448_v4  ;;  %v457_v59 = vrot.slane %v1741_v50, %v456_v0 }
  0x7b   : > { %610 = vmatpush1.bf16.msra.mxu0 %v609_v1  ;;  %642 = vmatpush1.bf16.msra.mxu1 %v641_v10 }
  0x7e   : > { %364 = vmatmul.mubr.f32.vlgmr.msra.gmra.mrb[0].mxu0 %v156_v11  ;;  %435 = vmatmul.mubr.f32.vlgmr.msra.gmra.mrb[0].mxu1 %v156_v11  ;;  %v453_v11 = vrot.slane %v1741_v50, %v452_v5 }
 0x151   : > { %v365_v3 = vpop.f32.mrb[0].mxu0  ;;  %v436_v12 = vpop.f32.mrb[0].mxu1 }
 0x152   : > { %v462_v2 = vadd.f32 %v445_v14, %v365_v3  ;;  %v367_v56 = vpop.f32.mrb[1].mxu0  ;;  %v438_v8 = vpop.f32.mrb[1].mxu1  ;;  %v464_v6 = vadd.f32 %v453_v11, %v436_v12 }
 0x153   : > { %v463_v51 = vadd.f32 %v449_v7, %v367_v56  ;;  %v465_v10 = vadd.f32 %v457_v59, %v438_v8  ;;  %v1742_v8 = vld [vmem:[#allocation89_spill] sm:$0xff] }
 0x154   : > { %v512_v9 = vmul.f32 -1.442695, %v462_v2 }
 0x155   : > { %v513_v1 = vmul.f32 -1.442695, %v463_v51  ;;  %v514_v13 = vmul.f32 -1.442695, %v465_v10 }
 0x156   : > { %672 = vpow2.f32 %v512_v9 }
 0x157   : > { %674 = vpow2.f32 %v513_v1 }
 0x158   : > { %676 = vpow2.f32 %v514_v13 }
 0x159   : > { %678 = vtanh.f32 %v464_v6 }
 0x160   : > { %v673_v4 = vpop.eup %672 }
 0x161   : > { %v675_v15 = vpop.eup %674  ;;  %v469_v16 = vadd.f32 1.0, %v673_v4 }
 0x162   : > { %v475_v14 = vadd.f32 1.0, %v675_v15  ;;  %v677_v7 = vpop.eup %676 }
 0x163   : > { %680 = vrcp.f32 %v469_v16  ;;  %v679_v3 = vpop.eup %678  ;;  %v482_v56 = vadd.f32 1.0, %v677_v7 }
 0x164   : > { %682 = vrcp.f32 %v475_v14 }
 0x165   : > { %684 = vrcp.f32 %v482_v56 }
 0x16d   : > { %v681_v0 = vpop.eup %680 }
 0x16e   : > { %v683_v2 = vpop.eup %682  ;;  %v486_v57 = vmul.f32 %v681_v0, %v679_v3 }
 0x16f   : > { %v485_v51 = vmul.f32 %v1742_v8, %v683_v2  ;;  %v685_v12 = vpop.eup %684 }
 0x171   : > { %v487_v7 = vadd.f32 %v486_v57, %v485_v51  }
 0x173   : > { %686 = vtanh.f32 %v487_v7 }
 0x17a   :  { %150 = sbr.rel (!%p148_p0) target bundleno = 59 (0x3b), region = 45 }
 0x17d   : > { %v687_v9 = vpop.eup %686 }
 0x17e   : > { %v489_v6 = vmul.f32 %v687_v9, %v685_v12  }
 0x180   : > { %491 = vst [vmem:[%s490_s13] sm:$0xf] %v489_v6 }

// kernel: lstm_model_pallas.7
= control target key start
LH: loop header
LB: loop body
LE: loop exit
PB: predicated region body
PF: predicated region fallthrough
CT: control target
= control target key end

     0   :  { %9 = vsyncpa [#allocation3], 0  ;;  %s1281_s0 = inlined_call_operand.vmem [shape: f32[8,4,128], index: 0, kind: input, shape index: {}]   ;;  %s1282_s1 = inlined_call_operand.hbm [shape: f32[128,512], index: 1, kind: input, shape index: {}]   ;;  %s1283_s2 = inlined_call_operand.hbm [shape: f32[128,512], index: 2, kind: input, shape index: {}]   ;;  %s1284_s3 = inlined_call_operand.vmem [shape: f32[1,512], index: 3, kind: input, shape index: {}]   ;;  %s1285_s4 = inlined_call_operand.vmem [shape: f32[8,4,128], index: 4, kind: output, shape index: {}]  }
   0x1   :  { %10 = vsyncpa [#allocation5], 0  ;;  %s794_s15 = smov [#allocation2]   ;;  %s722_s19 = scalar_lea.hbm %s1282_s1, 8192 }
   0x2   :  { %s18_s16 = sshll.u32 %s794_s15, 4  ;;  %p723_p0 = scmp.ne.s32.totalorder %s1282_s1, %s722_s19  ;;  %s19_s16 = int_to_ptr.vmem [resolvable:$true] %s18_s16 }
   0x3   :  { %p726_p1 = scmp.lt.u32.totalorder %s722_s19, %s1282_s1 }
   0x5   :  { %p728_p2 = pnand %p726_p1, %p723_p0 }
   0x7   :  { %731 = shalt.err (!%p728_p2)
}
   0x8   :  { %s732_s24 = scalar_lea.vmem %s19_s16, 8192  ;;  %p737_p4 = scmp.lt.s32.totalorder %s19_s16, %s19_s16 }
   0x9   :  { %p733_p3 = scmp.ne.s32.totalorder %s19_s16, %s732_s24  ;;  %p738_p5 = scmp.lt.s32.totalorder %s732_s24, %s732_s24 }
   0xb   :  { %p739_p6 = por %p738_p5, %p737_p4 }
   0xd   :  { %p740_p7 = pnand %p739_p6, %p733_p3 }
   0xf   :  { %743 = shalt.err (!%p740_p7)
}
  0x10   :  { %s795_s25 = smov 512   ;;  %s796_s26 = smov 32  }
  0x11   :  { %24 = dma.hbm_to_vmem [thread:$0]  %s1282_s1, 8192, %s19_s16, [#allocation3], %s795_s25, %s795_s25, %s796_s26  }
  0x12   :  { %s797_s29 = smov [#allocation4]   ;;  %s744_s7 = scalar_lea.hbm %s1283_s2, 8192 }
  0x13   :  { %s30_s30 = sshll.u32 %s797_s29, 4  ;;  %p745_p8 = scmp.ne.s32.totalorder %s1283_s2, %s744_s7  ;;  %s31_s30 = int_to_ptr.vmem [resolvable:$true] %s30_s30 }
  0x14   :  { %p748_p9 = scmp.lt.u32.totalorder %s744_s7, %s1283_s2 }
  0x16   :  { %p750_p10 = pnand %p748_p9, %p745_p8 }
  0x18   :  { %753 = shalt.err (!%p750_p10)
}
  0x19   :  { %s754_s12 = scalar_lea.vmem %s31_s30, 8192  ;;  %p759_p12 = scmp.lt.s32.totalorder %s31_s30, %s31_s30 }
  0x1a   :  { %p755_p11 = scmp.ne.s32.totalorder %s31_s30, %s754_s12  ;;  %p760_p13 = scmp.lt.s32.totalorder %s754_s12, %s754_s12 }
  0x1c   :  { %p761_p0 = por %p760_p13, %p759_p12 }
  0x1e   :  { %p762_p1 = pnand %p761_p0, %p755_p11 }
  0x20   :  { %765 = shalt.err (!%p762_p1)
}
  0x21   :  { %36 = dma.hbm_to_vmem [thread:$0]  %s1283_s2, 8192, %s31_s30, [#allocation5], %s795_s25, %s795_s25, %s796_s26  }
  0x22   :  { %778 = dma.done.wait [#allocation3], 8192  }
  0x23   :  { %779 = vsyncadd [#allocation3], 4294959104 }
  0x24   :  { %780 = dma.done.wait [#allocation5], 8192  }
  0x25   :  { %781 = vsyncadd [#allocation5], 4294959104  ;;  %v848_v0 = vld [vmem:[#allocation2] sm:$0xff]  ;;  %v850_v1 = vld [vmem:[#allocation2 + $0x8] sm:$0xff]  ;;  %s1113_s15 = smov 0  }
  0x26   :  { %1290 = vst [vmem:[#allocation8_spill] sm:$0xff] %v848_v0  ;;  %1291 = vst [vmem:[#allocation9_spill] sm:$0xff] %v850_v1  ;;  %v852_v2 = vld [vmem:[#allocation2 + $0x10] sm:$0xff]  ;;  %v854_v3 = vld [vmem:[#allocation2 + $0x18] sm:$0xff] }
  0x27   :  { %1292 = vst [vmem:[#allocation10_spill] sm:$0xff] %v852_v2  ;;  %1293 = vst [vmem:[#allocation11_spill] sm:$0xff] %v854_v3  ;;  %v856_v4 = vld [vmem:[#allocation2 + $0x20] sm:$0xff]  ;;  %v858_v5 = vld [vmem:[#allocation2 + $0x28] sm:$0xff] }
  0x28   :  { %1294 = vst [vmem:[#allocation12_spill] sm:$0xff] %v856_v4  ;;  %1295 = vst [vmem:[#allocation13_spill] sm:$0xff] %v858_v5  ;;  %v860_v6 = vld [vmem:[#allocation2 + $0x30] sm:$0xff]  ;;  %v862_v7 = vld [vmem:[#allocation2 + $0x38] sm:$0xff] }
  0x29   :  { %1296 = vst [vmem:[#allocation14_spill] sm:$0xff] %v860_v6  ;;  %1297 = vst [vmem:[#allocation15_spill] sm:$0xff] %v862_v7  ;;  %v864_v8 = vld [vmem:[#allocation2 + $0x40] sm:$0xff]  ;;  %v866_v9 = vld [vmem:[#allocation2 + $0x48] sm:$0xff] }
  0x2a   :  { %1298 = vst [vmem:[#allocation16_spill] sm:$0xff] %v864_v8  ;;  %1299 = vst [vmem:[#allocation17_spill] sm:$0xff] %v866_v9  ;;  %v868_v10 = vld [vmem:[#allocation2 + $0x50] sm:$0xff]  ;;  %v870_v11 = vld [vmem:[#allocation2 + $0x58] sm:$0xff] }
  0x2b   :  { %1300 = vst [vmem:[#allocation18_spill] sm:$0xff] %v868_v10  ;;  %1301 = vst [vmem:[#allocation19_spill] sm:$0xff] %v870_v11  ;;  %v872_v12 = vld [vmem:[#allocation2 + $0x60] sm:$0xff]  ;;  %v874_v13 = vld [vmem:[#allocation2 + $0x68] sm:$0xff] }
  0x2c   :  { %1302 = vst [vmem:[#allocation20_spill] sm:$0xff] %v872_v12  ;;  %1303 = vst [vmem:[#allocation21_spill] sm:$0xff] %v874_v13  ;;  %v876_v14 = vld [vmem:[#allocation2 + $0x70] sm:$0xff]  ;;  %v878_v15 = vld [vmem:[#allocation2 + $0x78] sm:$0xff] }
  0x2d   :  { %1304 = vst [vmem:[#allocation22_spill] sm:$0xff] %v876_v14  ;;  %1305 = vst [vmem:[#allocation23_spill] sm:$0xff] %v878_v15  ;;  %v880_v16 = vld [vmem:[#allocation2 + $0x80] sm:$0xff]  ;;  %v882_v17 = vld [vmem:[#allocation2 + $0x88] sm:$0xff] }
  0x2e   :  { %1306 = vst [vmem:[#allocation24_spill] sm:$0xff] %v880_v16  ;;  %1307 = vst [vmem:[#allocation25_spill] sm:$0xff] %v882_v17  ;;  %v884_v18 = vld [vmem:[#allocation2 + $0x90] sm:$0xff]  ;;  %v886_v19 = vld [vmem:[#allocation2 + $0x98] sm:$0xff] }
  0x2f   :  { %1308 = vst [vmem:[#allocation26_spill] sm:$0xff] %v884_v18  ;;  %1309 = vst [vmem:[#allocation27_spill] sm:$0xff] %v886_v19  ;;  %v888_v20 = vld [vmem:[#allocation2 + $0xa0] sm:$0xff]  ;;  %v890_v21 = vld [vmem:[#allocation2 + $0xa8] sm:$0xff] }
  0x30   :  { %1310 = vst [vmem:[#allocation28_spill] sm:$0xff] %v888_v20  ;;  %1311 = vst [vmem:[#allocation29_spill] sm:$0xff] %v890_v21  ;;  %v892_v22 = vld [vmem:[#allocation2 + $0xb0] sm:$0xff]  ;;  %v894_v23 = vld [vmem:[#allocation2 + $0xb8] sm:$0xff] }
  0x31   :  { %1312 = vst [vmem:[#allocation30_spill] sm:$0xff] %v892_v22  ;;  %1313 = vst [vmem:[#allocation31_spill] sm:$0xff] %v894_v23  ;;  %v896_v24 = vld [vmem:[#allocation2 + $0xc0] sm:$0xff]  ;;  %v898_v25 = vld [vmem:[#allocation2 + $0xc8] sm:$0xff] }
  0x32   :  { %1314 = vst [vmem:[#allocation32_spill] sm:$0xff] %v896_v24  ;;  %1315 = vst [vmem:[#allocation33_spill] sm:$0xff] %v898_v25  ;;  %v900_v26 = vld [vmem:[#allocation2 + $0xd0] sm:$0xff]  ;;  %v902_v27 = vld [vmem:[#allocation2 + $0xd8] sm:$0xff] }
  0x33   :  { %1316 = vst [vmem:[#allocation34_spill] sm:$0xff] %v900_v26  ;;  %1317 = vst [vmem:[#allocation35_spill] sm:$0xff] %v902_v27  ;;  %v904_v28 = vld [vmem:[#allocation2 + $0xe0] sm:$0xff]  ;;  %v906_v29 = vld [vmem:[#allocation2 + $0xe8] sm:$0xff] }
  0x34   :  { %1318 = vst [vmem:[#allocation36_spill] sm:$0xff] %v904_v28  ;;  %1319 = vst [vmem:[#allocation37_spill] sm:$0xff] %v906_v29  ;;  %v908_v30 = vld [vmem:[#allocation2 + $0xf0] sm:$0xff]  ;;  %v910_v31 = vld [vmem:[#allocation2 + $0xf8] sm:$0xff] }
  0x35   :  { %1320 = vst [vmem:[#allocation38_spill] sm:$0xff] %v908_v30  ;;  %1321 = vst [vmem:[#allocation39_spill] sm:$0xff] %v910_v31  ;;  %v912_v32 = vld [vmem:[#allocation2 + $0x100] sm:$0xff]  ;;  %v914_v33 = vld [vmem:[#allocation2 + $0x108] sm:$0xff] }
  0x36   :  { %1322 = vst [vmem:[#allocation40_spill] sm:$0xff] %v912_v32  ;;  %1323 = vst [vmem:[#allocation41_spill] sm:$0xff] %v914_v33  ;;  %v916_v34 = vld [vmem:[#allocation2 + $0x110] sm:$0xff]  ;;  %v918_v35 = vld [vmem:[#allocation2 + $0x118] sm:$0xff] }
  0x37   :  { %1324 = vst [vmem:[#allocation42_spill] sm:$0xff] %v916_v34  ;;  %1325 = vst [vmem:[#allocation43_spill] sm:$0xff] %v918_v35  ;;  %v920_v36 = vld [vmem:[#allocation2 + $0x120] sm:$0xff]  ;;  %v922_v37 = vld [vmem:[#allocation2 + $0x128] sm:$0xff] }
  0x38   :  { %1326 = vst [vmem:[#allocation44_spill] sm:$0xff] %v920_v36  ;;  %1327 = vst [vmem:[#allocation45_spill] sm:$0xff] %v922_v37  ;;  %v924_v38 = vld [vmem:[#allocation2 + $0x130] sm:$0xff]  ;;  %v926_v39 = vld [vmem:[#allocation2 + $0x138] sm:$0xff] }
  0x39   :  { %1328 = vst [vmem:[#allocation46_spill] sm:$0xff] %v924_v38  ;;  %1329 = vst [vmem:[#allocation47_spill] sm:$0xff] %v926_v39  ;;  %v928_v40 = vld [vmem:[#allocation2 + $0x140] sm:$0xff]  ;;  %v930_v41 = vld [vmem:[#allocation2 + $0x148] sm:$0xff] }
  0x3a   :  { %1330 = vst [vmem:[#allocation48_spill] sm:$0xff] %v928_v40  ;;  %1331 = vst [vmem:[#allocation49_spill] sm:$0xff] %v930_v41  ;;  %v932_v42 = vld [vmem:[#allocation2 + $0x150] sm:$0xff]  ;;  %v934_v43 = vld [vmem:[#allocation2 + $0x158] sm:$0xff] }
  0x3b   :  { %1332 = vst [vmem:[#allocation50_spill] sm:$0xff] %v932_v42  ;;  %1333 = vst [vmem:[#allocation51_spill] sm:$0xff] %v934_v43  ;;  %v936_v44 = vld [vmem:[#allocation2 + $0x160] sm:$0xff]  ;;  %v938_v45 = vld [vmem:[#allocation2 + $0x168] sm:$0xff] }
  0x3c   :  { %1334 = vst [vmem:[#allocation52_spill] sm:$0xff] %v936_v44  ;;  %1335 = vst [vmem:[#allocation53_spill] sm:$0xff] %v938_v45  ;;  %v940_v46 = vld [vmem:[#allocation2 + $0x170] sm:$0xff]  ;;  %v942_v47 = vld [vmem:[#allocation2 + $0x178] sm:$0xff] }
  0x3d   :  { %1336 = vst [vmem:[#allocation54_spill] sm:$0xff] %v940_v46  ;;  %1337 = vst [vmem:[#allocation55_spill] sm:$0xff] %v942_v47  ;;  %v944_v48 = vld [vmem:[#allocation2 + $0x180] sm:$0xff]  ;;  %v946_v49 = vld [vmem:[#allocation2 + $0x188] sm:$0xff] }
  0x3e   :  { %1338 = vst [vmem:[#allocation56_spill] sm:$0xff] %v944_v48  ;;  %1339 = vst [vmem:[#allocation57_spill] sm:$0xff] %v946_v49  ;;  %v948_v50 = vld [vmem:[#allocation2 + $0x190] sm:$0xff]  ;;  %v950_v51 = vld [vmem:[#allocation2 + $0x198] sm:$0xff] }
  0x3f   :  { %1340 = vst [vmem:[#allocation58_spill] sm:$0xff] %v948_v50  ;;  %1341 = vst [vmem:[#allocation59_spill] sm:$0xff] %v950_v51  ;;  %v952_v52 = vld [vmem:[#allocation2 + $0x1a0] sm:$0xff]  ;;  %v954_v53 = vld [vmem:[#allocation2 + $0x1a8] sm:$0xff] }
  0x40   :  { %1342 = vst [vmem:[#allocation60_spill] sm:$0xff] %v952_v52  ;;  %1343 = vst [vmem:[#allocation61_spill] sm:$0xff] %v954_v53  ;;  %v956_v54 = vld [vmem:[#allocation2 + $0x1b0] sm:$0xff]  ;;  %v958_v55 = vld [vmem:[#allocation2 + $0x1b8] sm:$0xff] }
  0x41   :  { %1344 = vst [vmem:[#allocation62_spill] sm:$0xff] %v956_v54  ;;  %1345 = vst [vmem:[#allocation63_spill] sm:$0xff] %v958_v55  ;;  %v960_v56 = vld [vmem:[#allocation2 + $0x1c0] sm:$0xff]  ;;  %v962_v57 = vld [vmem:[#allocation2 + $0x1c8] sm:$0xff] }
  0x42   :  { %1346 = vst [vmem:[#allocation64_spill] sm:$0xff] %v960_v56  ;;  %1347 = vst [vmem:[#allocation65_spill] sm:$0xff] %v962_v57  ;;  %v964_v58 = vld [vmem:[#allocation2 + $0x1d0] sm:$0xff]  ;;  %v966_v59 = vld [vmem:[#allocation2 + $0x1d8] sm:$0xff] }
  0x43   :  { %1348 = vst [vmem:[#allocation66_spill] sm:$0xff] %v964_v58  ;;  %1349 = vst [vmem:[#allocation67_spill] sm:$0xff] %v966_v59  ;;  %v968_v60 = vld [vmem:[#allocation2 + $0x1e0] sm:$0xff]  ;;  %v970_v61 = vld [vmem:[#allocation2 + $0x1e8] sm:$0xff] }
  0x44   :  { %1350 = vst [vmem:[#allocation68_spill] sm:$0xff] %v968_v60  ;;  %1351 = vst [vmem:[#allocation69_spill] sm:$0xff] %v970_v61  ;;  %v972_v62 = vld [vmem:[#allocation2 + $0x1f0] sm:$0xff]  ;;  %v974_v63 = vld [vmem:[#allocation2 + $0x1f8] sm:$0xff] }
  0x45   :  { %1352 = vst [vmem:[#allocation70_spill] sm:$0xff] %v972_v62  ;;  %1353 = vst [vmem:[#allocation71_spill] sm:$0xff] %v974_v63  ;;  %v976_v50 = vld [vmem:[#allocation4] sm:$0xff]  ;;  %v978_v54 = vld [vmem:[#allocation4 + $0x8] sm:$0xff] }
  0x46   :  { %1354 = vst [vmem:[#allocation72_spill] sm:$0xff] %v976_v50  ;;  %1355 = vst [vmem:[#allocation73_spill] sm:$0xff] %v978_v54  ;;  %v980_v52 = vld [vmem:[#allocation4 + $0x10] sm:$0xff]  ;;  %v982_v56 = vld [vmem:[#allocation4 + $0x18] sm:$0xff] }
  0x47   :  { %1356 = vst [vmem:[#allocation74_spill] sm:$0xff] %v980_v52  ;;  %1357 = vst [vmem:[#allocation75_spill] sm:$0xff] %v982_v56  ;;  %v984_v57 = vld [vmem:[#allocation4 + $0x20] sm:$0xff]  ;;  %v986_v58 = vld [vmem:[#allocation4 + $0x28] sm:$0xff] }
  0x48   :  { %v988_v59 = vld [vmem:[#allocation4 + $0x30] sm:$0xff]  ;;  %v990_v60 = vld [vmem:[#allocation4 + $0x38] sm:$0xff]  ;;  %v992_v61 = vld [vmem:[#allocation4 + $0x40] sm:$0xff] }
  0x49   :  { %v994_v62 = vld [vmem:[#allocation4 + $0x48] sm:$0xff]  ;;  %v996_v63 = vld [vmem:[#allocation4 + $0x50] sm:$0xff]  ;;  %v998_v48 = vld [vmem:[#allocation4 + $0x58] sm:$0xff] }
  0x4a   :  { %v1000_v55 = vld [vmem:[#allocation4 + $0x60] sm:$0xff]  ;;  %v1002_v51 = vld [vmem:[#allocation4 + $0x68] sm:$0xff]  ;;  %v1004_v53 = vld [vmem:[#allocation4 + $0x70] sm:$0xff] }
  0x4b   :  { %1358 = vst [vmem:[#allocation76_spill] sm:$0xff] %v1002_v51  ;;  %v1006_v49 = vld [vmem:[#allocation4 + $0x78] sm:$0xff]  ;;  %v1008_v46 = vld [vmem:[#allocation4 + $0x80] sm:$0xff]  ;;  %v1010_v42 = vld [vmem:[#allocation4 + $0x88] sm:$0xff] }
  0x4c   :  { %v1012_v44 = vld [vmem:[#allocation4 + $0x90] sm:$0xff]  ;;  %v1014_v40 = vld [vmem:[#allocation4 + $0x98] sm:$0xff]  ;;  %v1016_v47 = vld [vmem:[#allocation4 + $0xa0] sm:$0xff] }
  0x4d   :  { %v1018_v43 = vld [vmem:[#allocation4 + $0xa8] sm:$0xff]  ;;  %v1020_v45 = vld [vmem:[#allocation4 + $0xb0] sm:$0xff]  ;;  %v1022_v41 = vld [vmem:[#allocation4 + $0xb8] sm:$0xff] }
  0x4e   :  { %v1024_v38 = vld [vmem:[#allocation4 + $0xc0] sm:$0xff]  ;;  %v1026_v34 = vld [vmem:[#allocation4 + $0xc8] sm:$0xff]  ;;  %v1028_v36 = vld [vmem:[#allocation4 + $0xd0] sm:$0xff] }
  0x4f   :  { %v1030_v32 = vld [vmem:[#allocation4 + $0xd8] sm:$0xff]  ;;  %v1032_v39 = vld [vmem:[#allocation4 + $0xe0] sm:$0xff]  ;;  %v1034_v35 = vld [vmem:[#allocation4 + $0xe8] sm:$0xff] }
  0x50   :  { %v1036_v37 = vld [vmem:[#allocation4 + $0xf0] sm:$0xff]  ;;  %v1038_v33 = vld [vmem:[#allocation4 + $0xf8] sm:$0xff]  ;;  %v1040_v30 = vld [vmem:[#allocation4 + $0x100] sm:$0xff] }
  0x51   :  { %v1042_v26 = vld [vmem:[#allocation4 + $0x108] sm:$0xff]  ;;  %v1044_v28 = vld [vmem:[#allocation4 + $0x110] sm:$0xff]  ;;  %v1046_v24 = vld [vmem:[#allocation4 + $0x118] sm:$0xff] }
  0x52   :  { %v1048_v31 = vld [vmem:[#allocation4 + $0x120] sm:$0xff]  ;;  %v1050_v27 = vld [vmem:[#allocation4 + $0x128] sm:$0xff]  ;;  %v1052_v29 = vld [vmem:[#allocation4 + $0x130] sm:$0xff] }
  0x53   :  { %v1054_v25 = vld [vmem:[#allocation4 + $0x138] sm:$0xff]  ;;  %v1056_v22 = vld [vmem:[#allocation4 + $0x140] sm:$0xff]  ;;  %v1058_v18 = vld [vmem:[#allocation4 + $0x148] sm:$0xff] }
  0x54   :  { %v1060_v20 = vld [vmem:[#allocation4 + $0x150] sm:$0xff]  ;;  %v1062_v16 = vld [vmem:[#allocation4 + $0x158] sm:$0xff]  ;;  %v1064_v23 = vld [vmem:[#allocation4 + $0x160] sm:$0xff] }
  0x55   :  { %1359 = vst [vmem:[#allocation77_spill] sm:$0xff] %v1062_v16  ;;  %v1066_v19 = vld [vmem:[#allocation4 + $0x168] sm:$0xff]  ;;  %v1068_v21 = vld [vmem:[#allocation4 + $0x170] sm:$0xff]  ;;  %v1070_v17 = vld [vmem:[#allocation4 + $0x178] sm:$0xff] }
  0x56   :  { %v1072_v14 = vld [vmem:[#allocation4 + $0x180] sm:$0xff]  ;;  %v1074_v10 = vld [vmem:[#allocation4 + $0x188] sm:$0xff]  ;;  %v1076_v12 = vld [vmem:[#allocation4 + $0x190] sm:$0xff] }
  0x57   :  { %1360 = vst [vmem:[#allocation78_spill] sm:$0xff] %v1072_v14  ;;  %1361 = vst [vmem:[#allocation79_spill] sm:$0xff] %v1074_v10  ;;  %v1078_v8 = vld [vmem:[#allocation4 + $0x198] sm:$0xff]  ;;  %v1080_v15 = vld [vmem:[#allocation4 + $0x1a0] sm:$0xff] }
  0x58   :  { %1362 = vst [vmem:[#allocation80_spill] sm:$0xff] %v1076_v12  ;;  %1363 = vst [vmem:[#allocation81_spill] sm:$0xff] %v1078_v8  ;;  %v1082_v11 = vld [vmem:[#allocation4 + $0x1a8] sm:$0xff]  ;;  %v1084_v13 = vld [vmem:[#allocation4 + $0x1b0] sm:$0xff] }
  0x59   :  { %1364 = vst [vmem:[#allocation82_spill] sm:$0xff] %v1080_v15  ;;  %1365 = vst [vmem:[#allocation83_spill] sm:$0xff] %v1082_v11  ;;  %v1086_v9 = vld [vmem:[#allocation4 + $0x1b8] sm:$0xff]  ;;  %v1088_v6 = vld [vmem:[#allocation4 + $0x1c0] sm:$0xff] }
  0x5a   :  { %1366 = vst [vmem:[#allocation84_spill] sm:$0xff] %v1084_v13  ;;  %1367 = vst [vmem:[#allocation85_spill] sm:$0xff] %v1086_v9  ;;  %v1090_v2 = vld [vmem:[#allocation4 + $0x1c8] sm:$0xff]  ;;  %v1092_v4 = vld [vmem:[#allocation4 + $0x1d0] sm:$0xff] }
  0x5b   :  { %1368 = vst [vmem:[#allocation86_spill] sm:$0xff] %v1088_v6  ;;  %1369 = vst [vmem:[#allocation87_spill] sm:$0xff] %v1090_v2  ;;  %v1094_v0 = vld [vmem:[#allocation4 + $0x1d8] sm:$0xff]  ;;  %v1096_v7 = vld [vmem:[#allocation4 + $0x1e0] sm:$0xff]  ;;  %v1109_v6 = vmov 0.0   ;;  %v1111_v2 = vmov 0.0  }
  0x5c   :  { %1370 = vst [vmem:[#allocation88_spill] sm:$0xff] %v1092_v4  ;;  %1371 = vst [vmem:[#allocation89_spill] sm:$0xff] %v1094_v0  ;;  %v1098_v3 = vld [vmem:[#allocation4 + $0x1e8] sm:$0xff]  ;;  %v1100_v5 = vld [vmem:[#allocation4 + $0x1f0] sm:$0xff] }
  0x5d   :  { %1372 = vst [vmem:[#allocation90_spill] sm:$0xff] %v1096_v7  ;;  %1373 = vst [vmem:[#allocation91_spill] sm:$0xff] %v1098_v3  ;;  %v1102_v1 = vld [vmem:[#allocation4 + $0x1f8] sm:$0xff]  ;;  %v1107_v13 = vld [vmem:[%s1284_s3] sm:$0xf] }
  0x5e   :  { %1374 = vst [vmem:[#allocation92_spill] sm:$0xff] %v1100_v5  ;;  %1375 = vst [vmem:[#allocation93_spill] sm:$0xff] %v1102_v1 }
  0x5f   :  { %1376 = vst [vmem:[#allocation94_spill] sm:$0xff] %v1107_v13 }
  0x60 LB: > { %1377 = vst [vmem:[#allocation95_spill] sm:$0xff] %v784_v6  ;;  %1378 = vst [vmem:[#allocation96_spill] sm:$0xff] %v788_v2  ;;  %v1379_v54 = vld [vmem:[#allocation73_spill] sm:$0xff]  ;;  %v1380_v56 = vld [vmem:[#allocation75_spill] sm:$0xff]  ;;  %v581_v2 = vpack.c.bf16 %v1006_v49, %v998_v48  ;;  %s541_s3 = sshll.u32 %s792_s15, 2  ;;  %s179_s15 = sadd.s32 1, %s792_s15   ;;  %s792_s15 = sphi %s1113_s15, %s179_s15   ;;  %v788_v2 = vphi %v1111_v2, %v517_v2   ;;  %v784_v6 = vphi %v1109_v6, %v515_v6  }
  0x61   : > { %v545_v13 = vpack.c.bf16 %v986_v58, %v1379_v54  ;;  %v577_v5 = vpack.c.bf16 %v990_v60, %v1380_v56  ;;  %v1381_v50 = vld [vmem:[#allocation72_spill] sm:$0xff]  ;;  %v1382_v52 = vld [vmem:[#allocation74_spill] sm:$0xff]  ;;  %v551_v54 = vpack.c.bf16 %v1000_v55, %v992_v61  ;;  %v583_v56 = vpack.c.bf16 %v1004_v53, %v996_v63  ;;  %v1384_v16 = vld [vmem:[#allocation77_spill] sm:$0xff]  ;;  %s183_s18 = scalar_lea.vmem %s1281_s0, %s541_s3  ;;  %s518_s21 = scalar_lea.vmem %s1285_s4, %s541_s3 }
  0x62   : > { %v547_v4 = vpack.c.bf16 %v984_v57, %v1381_v50  ;;  %v579_v7 = vpack.c.bf16 %v988_v59, %v1382_v52  ;;  %v1383_v51 = vld [vmem:[#allocation76_spill] sm:$0xff]  ;;  %v553_v50 = vpack.c.bf16 %v1018_v43, %v1010_v42  ;;  %v1288_v52 = vmov 0.0   ;;  %v1385_v10 = vld [vmem:[#allocation79_spill] sm:$0xff]  ;;  %v1387_v8 = vld [vmem:[#allocation81_spill] sm:$0xff]  ;;  %p176_p2 = scmp.ge.s32.totalorder %s179_s15, 8  }
  0x63   : > { %v549_v6 = vpack.c.bf16 %v1383_v51, %v994_v62  ;;  %546 = vmatprep.subr.bf16.mxu0 %v545_v13  ;;  %578 = vmatprep.subr.bf16.mxu1 %v577_v5  ;;  %v585_v51 = vpack.c.bf16 %v1022_v41, %v1014_v40  ;;  %v587_v5 = vpack.c.bf16 %v1020_v45, %v1012_v44  ;;  %v1386_v11 = vld [vmem:[#allocation83_spill] sm:$0xff]  ;;  %v1388_v9 = vld [vmem:[#allocation85_spill] sm:$0xff]  ;;  %v1389_v14 = vld [vmem:[#allocation78_spill] sm:$0xff] }
  0x64   : > { %548 = vmatpush1.bf16.msra.mxu0 %v547_v4  ;;  %580 = vmatpush1.bf16.msra.mxu1 %v579_v7  ;;  %v555_v4 = vpack.c.bf16 %v1016_v47, %v1008_v46  ;;  %v559_v7 = vpack.c.bf16 %v1032_v39, %v1024_v38  ;;  %v591_v13 = vpack.c.bf16 %v1036_v37, %v1028_v36  ;;  %v1390_v15 = vld [vmem:[#allocation82_spill] sm:$0xff]  ;;  %v1391_v12 = vld [vmem:[#allocation80_spill] sm:$0xff]  ;;  %v1394_v3 = vld [vmem:[#allocation91_spill] sm:$0xff] }
  0x65   : > { %550 = vmatprep.subr.bf16.mxu0 %v549_v6  ;;  %582 = vmatprep.subr.bf16.mxu1 %v581_v2  ;;  %v557_v2 = vpack.c.bf16 %v1034_v35, %v1026_v34  ;;  %v589_v6 = vpack.c.bf16 %v1038_v33, %v1030_v32  ;;  %v1395_v0 = vld [vmem:[#allocation89_spill] sm:$0xff] }
  0x66   : > { %249 = vmatprep.mubr.f32.mxu0 %v1288_v52  ;;  %320 = vmatprep.mubr.f32.mxu1 %v1288_v52  ;;  %v1396_v1 = vld [vmem:[#allocation93_spill] sm:$0xff]  ;;  %v1397_v52 = vld [vmem:[#allocation86_spill] sm:$0xff] }
  0x68   : > { %552 = vmatpush1.bf16.msra.mxu0 %v551_v54  ;;  %584 = vmatpush1.bf16.msra.mxu1 %v583_v56  ;;  %v563_v54 = vpack.c.bf16 %v1048_v31, %v1040_v30  ;;  %v595_v56 = vpack.c.bf16 %v1052_v29, %v1044_v28 }
  0x69   : > { %554 = vmatprep.subr.bf16.mxu0 %v553_v50  ;;  %586 = vmatprep.subr.bf16.mxu1 %v585_v51  ;;  %v561_v50 = vpack.c.bf16 %v1050_v27, %v1042_v26  ;;  %v593_v51 = vpack.c.bf16 %v1054_v25, %v1046_v24 }
  0x6c   : > { %556 = vmatpush1.bf16.msra.mxu0 %v555_v4  ;;  %588 = vmatpush1.bf16.msra.mxu1 %v587_v5  ;;  %v565_v4 = vpack.c.bf16 %v1066_v19, %v1058_v18  ;;  %v597_v5 = vpack.c.bf16 %v1070_v17, %v1384_v16 }
  0x6d   : > { %558 = vmatprep.subr.bf16.mxu0 %v557_v2  ;;  %590 = vmatprep.subr.bf16.mxu1 %v589_v6  ;;  %v567_v2 = vpack.c.bf16 %v1064_v23, %v1056_v22  ;;  %v599_v6 = vpack.c.bf16 %v1068_v21, %v1060_v20 }
  0x70   : > { %560 = vmatpush1.bf16.msra.mxu0 %v559_v7  ;;  %592 = vmatpush1.bf16.msra.mxu1 %v591_v13  ;;  %v569_v7 = vpack.c.bf16 %v1386_v11, %v1385_v10  ;;  %v601_v13 = vpack.c.bf16 %v1388_v9, %v1387_v8  ;;  %v1398_v8 = vld [vmem:[#allocation90_spill] sm:$0xff]  ;;  %v1400_v9 = vld [vmem:[#allocation92_spill] sm:$0xff]  ;;  %v1401_v11 = vld [vmem:[#allocation9_spill] sm:$0xff] }
  0x71   : > { %562 = vmatprep.subr.bf16.mxu0 %v561_v50  ;;  %594 = vmatprep.subr.bf16.mxu1 %v593_v51  ;;  %v571_v50 = vpack.c.bf16 %v1390_v15, %v1389_v14  ;;  %v1392_v51 = vld [vmem:[#allocation84_spill] sm:$0xff] }
  0x74   : > { %564 = vmatpush1.bf16.msra.mxu0 %v563_v54  ;;  %596 = vmatpush1.bf16.msra.mxu1 %v595_v56  ;;  %v603_v54 = vpack.c.bf16 %v1392_v51, %v1391_v12  ;;  %v1393_v56 = vld [vmem:[#allocation87_spill] sm:$0xff]  ;;  %v1402_v51 = vld [vmem:[#allocation13_spill] sm:$0xff] }
  0x75   : > { %566 = vmatprep.subr.bf16.mxu0 %v565_v4  ;;  %598 = vmatprep.subr.bf16.mxu1 %v597_v5  ;;  %v573_v4 = vpack.c.bf16 %v1394_v3, %v1393_v56  ;;  %v605_v5 = vpack.c.bf16 %v1396_v1, %v1395_v0  ;;  %v1404_v12 = vld [vmem:[#allocation15_spill] sm:$0xff]  ;;  %v1405_v56 = vld [vmem:[#allocation8_spill] sm:$0xff]  ;;  %v1408_v1 = vld [vmem:[#allocation14_spill] sm:$0xff] }
  0x76   : > { %v1406_v0 = vld [vmem:[#allocation12_spill] sm:$0xff] }
  0x78   : > { %568 = vmatpush1.bf16.msra.mxu0 %v567_v2  ;;  %600 = vmatpush1.bf16.msra.mxu1 %v599_v6  ;;  %v575_v2 = vpack.c.bf16 %v1398_v8, %v1397_v52  ;;  %v1399_v6 = vld [vmem:[#allocation88_spill] sm:$0xff]  ;;  %v1409_v8 = vld [vmem:[#allocation17_spill] sm:$0xff] }
  0x79   : > { %570 = vmatprep.subr.bf16.mxu0 %v569_v7  ;;  %602 = vmatprep.subr.bf16.mxu1 %v601_v13  ;;  %v607_v10 = vpack.c.bf16 %v1400_v9, %v1399_v6  ;;  %v609_v7 = vpack.c.bf16 %v1402_v51, %v1401_v11  ;;  %v1403_v13 = vld [vmem:[#allocation11_spill] sm:$0xff]  ;;  %v1410_v9 = vld [vmem:[#allocation21_spill] sm:$0xff]  ;;  %v1413_v11 = vld [vmem:[#allocation96_spill] sm:$0xff] }
  0x7a   : > { %v641_v14 = vpack.c.bf16 %v1404_v12, %v1403_v13  ;;  %v613_v52 = vpack.c.bf16 %v1410_v9, %v1409_v8  ;;  %v1415_v12 = vld [vmem:[#allocation20_spill] sm:$0xff]  ;;  %v1417_v51 = vld [vmem:[#allocation22_spill] sm:$0xff]  ;;  %v1422_v9 = vmov 0.0  }
  0x7c   : > { %572 = vmatpush1.bf16.msra.mxu0 %v571_v50  ;;  %604 = vmatpush1.bf16.msra.mxu1 %v603_v54  ;;  %v611_v50 = vpack.c.bf16 %v1406_v0, %v1405_v56  ;;  %v1407_v54 = vld [vmem:[#allocation10_spill] sm:$0xff]  ;;  %v1420_v56 = vld [vmem:[#allocation27_spill] sm:$0xff] }
  0x7d   : > { %574 = vmatprep.subr.bf16.mxu0 %v573_v4  ;;  %606 = vmatprep.subr.bf16.mxu1 %v605_v5  ;;  %v643_v3 = vpack.c.bf16 %v1408_v1, %v1407_v54  ;;  %v1411_v4 = vld [vmem:[#allocation19_spill] sm:$0xff] }
  0x7e   : > { %v1412_v5 = vld [vmem:[#allocation23_spill] sm:$0xff] }
  0x7f   : > { %v645_v6 = vpack.c.bf16 %v1412_v5, %v1411_v4  ;;  %v1421_v54 = vld [vmem:[#allocation31_spill] sm:$0xff]  ;;  %v1425_v5 = vld [vmem:[#allocation26_spill] sm:$0xff] }
  0x80   : > { %576 = vmatpush1.bf16.msra.mxu0 %v575_v2  ;;  %608 = vmatpush1.bf16.msra.mxu1 %v607_v10  ;;  %v1414_v10 = vld [vmem:[#allocation16_spill] sm:$0xff]  ;;  %v1416_v2 = vld [vmem:[#allocation18_spill] sm:$0xff]  ;;  %v649_v8 = vpack.c.bf16 %v1421_v54, %v1420_v56 }
  0x81   : > { %610 = vmatprep.subr.bf16.mxu0 %v609_v7  ;;  %642 = vmatprep.subr.bf16.mxu1 %v641_v14  ;;  %v615_v0 = vpack.c.bf16 %v1415_v12, %v1414_v10  ;;  %v647_v1 = vpack.c.bf16 %v1417_v51, %v1416_v2  ;;  %v1418_v14 = vld [vmem:[#allocation25_spill] sm:$0xff]  ;;  %v1429_v2 = vld [vmem:[#allocation35_spill] sm:$0xff]  ;;  %v1432_v56 = vld [vmem:[#allocation36_spill] sm:$0xff] }
  0x82   : > { %v1419_v7 = vld [vmem:[#allocation29_spill] sm:$0xff]  ;;  %v1430_v51 = vld [vmem:[#allocation39_spill] sm:$0xff]  ;;  %v1434_v54 = vld [vmem:[#allocation38_spill] sm:$0xff] }
  0x83   : > { %250 = vmatmul.mubr.f32.vlgmr.msra.gmra.mrb[0].mxu0 %v1413_v11  ;;  %321 = vmatmul.mubr.f32.vlgmr.msra.gmra.mrb[0].mxu1 %v1413_v11  ;;  %v617_v13 = vpack.c.bf16 %v1419_v7, %v1418_v14  ;;  %v1426_v11 = vld [vmem:[#allocation30_spill] sm:$0xff]  ;;  %v653_v14 = vpack.c.bf16 %v1430_v51, %v1429_v2  ;;  %v1431_v7 = vld [vmem:[#allocation32_spill] sm:$0xff] }
  0x84   : > { %612 = vmatpush1.bf16.msra.mxu0 %v611_v50  ;;  %644 = vmatpush1.bf16.msra.mxu1 %v643_v3  ;;  %v1423_v3 = vld [vmem:[#allocation24_spill] sm:$0xff]  ;;  %v651_v10 = vpack.c.bf16 %v1426_v11, %v1425_v5  ;;  %v1438_v5 = vld [vmem:[#allocation47_spill] sm:$0xff]  ;;  %v1442_v2 = vld [vmem:[#allocation46_spill] sm:$0xff] }
  0x85   : > { %614 = vmatprep.subr.bf16.mxu0 %v613_v52  ;;  %646 = vmatprep.subr.bf16.mxu1 %v645_v6  ;;  %v1424_v50 = vld [vmem:[#allocation28_spill] sm:$0xff]  ;;  %v1427_v52 = vld [vmem:[#allocation33_spill] sm:$0xff] }
  0x86   : > { %391 = vmatprep.mubr.f32.mxu0 %v1422_v9  ;;  %462 = vmatprep.mubr.f32.mxu1 %v1422_v9  ;;  %v619_v4 = vpack.c.bf16 %v1424_v50, %v1423_v3  ;;  %v1428_v6 = vld [vmem:[#allocation37_spill] sm:$0xff] }
  0x87   : > { %v621_v12 = vpack.c.bf16 %v1428_v6, %v1427_v52  ;;  %v1435_v3 = vld [vmem:[#allocation41_spill] sm:$0xff]  ;;  %v1439_v52 = vld [vmem:[#allocation40_spill] sm:$0xff] }
  0x88   : > { %616 = vmatpush1.bf16.msra.mxu0 %v615_v0  ;;  %648 = vmatpush1.bf16.msra.mxu1 %v647_v1  ;;  %v623_v0 = vpack.c.bf16 %v1432_v56, %v1431_v7  ;;  %v1433_v1 = vld [vmem:[#allocation34_spill] sm:$0xff]  ;;  %v1436_v50 = vld [vmem:[#allocation45_spill] sm:$0xff]  ;;  %v1440_v6 = vld [vmem:[#allocation44_spill] sm:$0xff] }
  0x89   : > { %618 = vmatprep.subr.bf16.mxu0 %v617_v13  ;;  %650 = vmatprep.subr.bf16.mxu1 %v649_v8  ;;  %v655_v9 = vpack.c.bf16 %v1434_v54, %v1433_v1  ;;  %v625_v13 = vpack.c.bf16 %v1436_v50, %v1435_v3  ;;  %v1437_v8 = vld [vmem:[#allocation43_spill] sm:$0xff]  ;;  %v1443_v7 = vld [vmem:[#allocation49_spill] sm:$0xff]  ;;  %v1447_v3 = vld [vmem:[#allocation48_spill] sm:$0xff] }
  0x8a   : > { %v657_v11 = vpack.c.bf16 %v1438_v5, %v1437_v8  ;;  %v1444_v56 = vld [vmem:[#allocation53_spill] sm:$0xff]  ;;  %v1446_v1 = vld [vmem:[#allocation55_spill] sm:$0xff]  ;;  %v1449_v50 = vld [vmem:[#allocation50_spill] sm:$0xff] }
  0x8b   : > { %v1450_v8 = vld [vmem:[#allocation54_spill] sm:$0xff] }
  0x8c   : > { %620 = vmatpush1.bf16.msra.mxu0 %v619_v4  ;;  %652 = vmatpush1.bf16.msra.mxu1 %v651_v10  ;;  %v627_v4 = vpack.c.bf16 %v1440_v6, %v1439_v52  ;;  %v1441_v10 = vld [vmem:[#allocation42_spill] sm:$0xff]  ;;  %v663_v5 = vpack.c.bf16 %v1450_v8, %v1449_v50  ;;  %v1451_v52 = vld [vmem:[#allocation57_spill] sm:$0xff]  ;;  %v1453_v6 = vld [vmem:[#allocation59_spill] sm:$0xff] }
  0x8d   : > { %622 = vmatprep.subr.bf16.mxu0 %v621_v12  ;;  %654 = vmatprep.subr.bf16.mxu1 %v653_v14  ;;  %v659_v51 = vpack.c.bf16 %v1442_v2, %v1441_v10  ;;  %v629_v12 = vpack.c.bf16 %v1444_v56, %v1443_v7  ;;  %v1445_v14 = vld [vmem:[#allocation51_spill] sm:$0xff]  ;;  %v1456_v7 = vld [vmem:[#allocation60_spill] sm:$0xff]  ;;  %v1457_v56 = vld [vmem:[#allocation58_spill] sm:$0xff] }
  0x8e   : > { %v661_v54 = vpack.c.bf16 %v1446_v1, %v1445_v14  ;;  %v1454_v10 = vld [vmem:[#allocation63_spill] sm:$0xff]  ;;  %v1458_v14 = vld [vmem:[#allocation62_spill] sm:$0xff] }
  0x8f   : > { %v665_v2 = vpack.c.bf16 %v1454_v10, %v1453_v6  ;;  %v667_v1 = vpack.c.bf16 %v1458_v14, %v1457_v56  ;;  %v1462_v50 = vld [vmem:[#allocation71_spill] sm:$0xff]  ;;  %v1466_v6 = vld [vmem:[#allocation70_spill] sm:$0xff] }
  0x90   : > { %624 = vmatpush1.bf16.msra.mxu0 %v623_v0  ;;  %656 = vmatpush1.bf16.msra.mxu1 %v655_v9  ;;  %v1448_v0 = vld [vmem:[#allocation52_spill] sm:$0xff]  ;;  %v1467_v56 = vld [vmem:[#allocation94_spill] sm:$0xff] }
  0x91   : > { %626 = vmatprep.subr.bf16.mxu0 %v625_v13  ;;  %658 = vmatprep.subr.bf16.mxu1 %v657_v11  ;;  %v631_v9 = vpack.c.bf16 %v1448_v0, %v1447_v3  ;;  %v1452_v13 = vld [vmem:[#allocation61_spill] sm:$0xff]  ;;  %v1461_v0 = vld [vmem:[#allocation67_spill] sm:$0xff] }
  0x92   : > { %v633_v11 = vpack.c.bf16 %v1452_v13, %v1451_v52  ;;  %v1459_v3 = vld [vmem:[#allocation65_spill] sm:$0xff]  ;;  %v669_v8 = vpack.c.bf16 %v1462_v50, %v1461_v0  ;;  %v1463_v52 = vld [vmem:[#allocation64_spill] sm:$0xff]  ;;  %v1465_v13 = vld [vmem:[#allocation66_spill] sm:$0xff] }
  0x93   : > { %v671_v10 = vpack.c.bf16 %v1466_v6, %v1465_v13 }
  0x94   : > { %628 = vmatpush1.bf16.msra.mxu0 %v627_v4  ;;  %660 = vmatpush1.bf16.msra.mxu1 %v659_v51  ;;  %v1455_v4 = vld [vmem:[#allocation56_spill] sm:$0xff] }
  0x95   : > { %630 = vmatprep.subr.bf16.mxu0 %v629_v12  ;;  %662 = vmatprep.subr.bf16.mxu1 %v661_v54  ;;  %v635_v51 = vpack.c.bf16 %v1456_v7, %v1455_v4  ;;  %v1460_v12 = vld [vmem:[#allocation69_spill] sm:$0xff] }
  0x96   : > { %v637_v54 = vpack.c.bf16 %v1460_v12, %v1459_v3 }
  0x98   : > { %632 = vmatpush1.bf16.msra.mxu0 %v631_v9  ;;  %664 = vmatpush1.bf16.msra.mxu1 %v663_v5  ;;  %v1464_v9 = vld [vmem:[#allocation68_spill] sm:$0xff] }
  0x99   : > { %634 = vmatprep.subr.bf16.mxu0 %v633_v11  ;;  %666 = vmatprep.subr.bf16.mxu1 %v665_v2  ;;  %v639_v5 = vpack.c.bf16 %v1464_v9, %v1463_v52  ;;  %v184_v11 = vld [vmem:[%s183_s18] sm:$0xf]  ;;  %v470_v2 = vlaneseq }
  0x9b   : > { %v471_v4 = vshrl.u32 %v470_v2, 7 }
  0x9c   : > { %636 = vmatpush1.bf16.msra.mxu0 %v635_v51  ;;  %668 = vmatpush1.bf16.msra.mxu1 %v667_v1 }
  0x9d   : > { %638 = vmatprep.subr.bf16.mxu0 %v637_v54  ;;  %670 = vmatprep.subr.bf16.mxu1 %v669_v8  ;;  %v472_v7 = vsub.s32 0, %v471_v4  ;;  %v476_v51 = vsub.s32 1, %v471_v4  ;;  %v484_v54 = vsub.s32 3, %v471_v4  ;;  %v480_v6 = vsub.s32 2, %v471_v4 }
  0x9f   : > { %v473_v14 = vrot.slane %v1467_v56, %v472_v7  ;;  %v477_v1 = vrot.slane %v1467_v56, %v476_v51  ;;  %v485_v13 = vrot.slane %v1467_v56, %v484_v54 }
  0xa0   : > { %640 = vmatpush1.bf16.msra.mxu0 %v639_v5  ;;  %672 = vmatpush1.bf16.msra.mxu1 %v671_v10 }
  0xa3   : > { %392 = vmatmul.mubr.f32.vlgmr.msra.gmra.mrb[0].mxu0 %v184_v11  ;;  %463 = vmatmul.mubr.f32.vlgmr.msra.gmra.mrb[0].mxu1 %v184_v11  ;;  %v481_v11 = vrot.slane %v1467_v56, %v480_v6 }
 0x176   : > { %v393_v3 = vpop.f32.mrb[0].mxu0  ;;  %v464_v12 = vpop.f32.mrb[0].mxu1 }
 0x177   : > { %v490_v0 = vadd.f32 %v473_v14, %v393_v3  ;;  %v395_v50 = vpop.f32.mrb[1].mxu0  ;;  %v466_v8 = vpop.f32.mrb[1].mxu1  ;;  %v492_v7 = vadd.f32 %v481_v11, %v464_v12 }
 0x178   : > { %v491_v52 = vadd.f32 %v477_v1, %v395_v50  ;;  %v493_v10 = vadd.f32 %v485_v13, %v466_v8  ;;  %v1468_v8 = vld [vmem:[#allocation95_spill] sm:$0xff] }
 0x179   : > { %v542_v9 = vmul.f32 -1.442695, %v490_v0 }
 0x17a   : > { %v543_v5 = vmul.f32 -1.442695, %v491_v52  ;;  %v544_v2 = vmul.f32 -1.442695, %v493_v10 }
 0x17b   : > { %706 = vpow2.f32 %v542_v9 }
 0x17c   : > { %708 = vpow2.f32 %v543_v5 }
 0x17d   : > { %710 = vpow2.f32 %v544_v2 }
 0x17e   : > { %712 = vtanh.f32 %v492_v7 }
 0x185   : > { %v707_v51 = vpop.eup %706 }
 0x186   : > { %v709_v15 = vpop.eup %708  ;;  %v497_v16 = vadd.f32 1.0, %v707_v51 }
 0x187   : > { %v503_v14 = vadd.f32 1.0, %v709_v15  ;;  %v711_v1 = vpop.eup %710 }
 0x188   : > { %714 = vrcp.f32 %v497_v16  ;;  %v713_v3 = vpop.eup %712  ;;  %v510_v50 = vadd.f32 1.0, %v711_v1 }
 0x189   : > { %716 = vrcp.f32 %v503_v14 }
 0x18a   : > { %718 = vrcp.f32 %v510_v50 }
 0x192   : > { %v715_v54 = vpop.eup %714 }
 0x193   : > { %v717_v0 = vpop.eup %716  ;;  %v514_v4 = vmul.f32 %v715_v54, %v713_v3 }
 0x194   : > { %v513_v52 = vmul.f32 %v1468_v8, %v717_v0  ;;  %v719_v12 = vpop.eup %718 }
 0x196   : > { %v515_v6 = vadd.f32 %v514_v4, %v513_v52  }
 0x198   : > { %720 = vtanh.f32 %v515_v6 }
 0x19f   :  { %178 = sbr.rel (!%p176_p2) target bundleno = 96 (0x60), region = 53 }
 0x1a2   : > { %v721_v9 = vpop.eup %720 }
 0x1a3   : > { %v517_v2 = vmul.f32 %v721_v9, %v719_v12  }
 0x1a5   : > { %519 = vst [vmem:[%s518_s21] sm:$0xf] %v517_v2 }
 0x1a6   :  { %524 = vsyncpa [#allocation3], 1 }
 0x1a7   :  { %525 = vsyncpa [#allocation5], 1 }

// kernel: lstm_model_pallas.9
= control target key start
LH: loop header
LB: loop body
LE: loop exit
PB: predicated region body
PF: predicated region fallthrough
CT: control target
= control target key end

     0   :  { %s1844_s6 = smov 0   ;;  %s2075_s0 = inlined_call_operand.vmem [shape: f32[8,4,256], index: 0, kind: input, shape index: {}]   ;;  %s2076_s1 = inlined_call_operand.vmem [shape: f32[256,512], index: 1, kind: input, shape index: {}]   ;;  %s2077_s4 = inlined_call_operand.vmem [shape: f32[8,4,128], index: 4, kind: output, shape index: {}]   ;;  %s2078_s2 = inlined_call_operand.vmem [shape: f32[128,512], index: 2, kind: input, shape index: {}]   ;;  %s2079_s3 = inlined_call_operand.vmem [shape: f32[1,512], index: 3, kind: input, shape index: {}]  }
   0x1   :  { %v878_v0 = vld [vmem:[%s2076_s1] sm:$0xff]  ;;  %v883_v1 = vld [vmem:[%s2076_s1 + $0x8] sm:$0xff]  ;;  %v888_v2 = vld [vmem:[%s2076_s1 + $0x10] sm:$0xff] }
   0x2   :  { %2082 = vst [vmem:[#allocation2_spill] sm:$0xff] %v878_v0  ;;  %2083 = vst [vmem:[#allocation3_spill] sm:$0xff] %v883_v1  ;;  %v893_v3 = vld [vmem:[%s2076_s1 + $0x18] sm:$0xff]  ;;  %v898_v4 = vld [vmem:[%s2076_s1 + $0x20] sm:$0xff] }
   0x3   :  { %2084 = vst [vmem:[#allocation4_spill] sm:$0xff] %v888_v2  ;;  %2085 = vst [vmem:[#allocation5_spill] sm:$0xff] %v893_v3  ;;  %v903_v5 = vld [vmem:[%s2076_s1 + $0x28] sm:$0xff]  ;;  %v908_v6 = vld [vmem:[%s2076_s1 + $0x30] sm:$0xff] }
   0x4   :  { %2086 = vst [vmem:[#allocation6_spill] sm:$0xff] %v898_v4  ;;  %2087 = vst [vmem:[#allocation7_spill] sm:$0xff] %v903_v5  ;;  %v913_v7 = vld [vmem:[%s2076_s1 + $0x38] sm:$0xff]  ;;  %v918_v8 = vld [vmem:[%s2076_s1 + $0x40] sm:$0xff] }
   0x5   :  { %2088 = vst [vmem:[#allocation8_spill] sm:$0xff] %v908_v6  ;;  %2089 = vst [vmem:[#allocation9_spill] sm:$0xff] %v913_v7  ;;  %v923_v9 = vld [vmem:[%s2076_s1 + $0x48] sm:$0xff]  ;;  %v928_v10 = vld [vmem:[%s2076_s1 + $0x50] sm:$0xff] }
   0x6   :  { %2090 = vst [vmem:[#allocation10_spill] sm:$0xff] %v918_v8  ;;  %2091 = vst [vmem:[#allocation11_spill] sm:$0xff] %v923_v9  ;;  %v933_v11 = vld [vmem:[%s2076_s1 + $0x58] sm:$0xff]  ;;  %v938_v12 = vld [vmem:[%s2076_s1 + $0x60] sm:$0xff] }
   0x7   :  { %2092 = vst [vmem:[#allocation12_spill] sm:$0xff] %v928_v10  ;;  %2093 = vst [vmem:[#allocation13_spill] sm:$0xff] %v933_v11  ;;  %v943_v13 = vld [vmem:[%s2076_s1 + $0x68] sm:$0xff]  ;;  %v948_v14 = vld [vmem:[%s2076_s1 + $0x70] sm:$0xff] }
   0x8   :  { %2094 = vst [vmem:[#allocation14_spill] sm:$0xff] %v938_v12  ;;  %2095 = vst [vmem:[#allocation15_spill] sm:$0xff] %v943_v13  ;;  %v953_v15 = vld [vmem:[%s2076_s1 + $0x78] sm:$0xff]  ;;  %v958_v16 = vld [vmem:[%s2076_s1 + $0x80] sm:$0xff] }
   0x9   :  { %2096 = vst [vmem:[#allocation16_spill] sm:$0xff] %v948_v14  ;;  %2097 = vst [vmem:[#allocation17_spill] sm:$0xff] %v953_v15  ;;  %v963_v17 = vld [vmem:[%s2076_s1 + $0x88] sm:$0xff]  ;;  %v968_v18 = vld [vmem:[%s2076_s1 + $0x90] sm:$0xff] }
   0xa   :  { %2098 = vst [vmem:[#allocation18_spill] sm:$0xff] %v958_v16  ;;  %2099 = vst [vmem:[#allocation19_spill] sm:$0xff] %v963_v17  ;;  %v973_v19 = vld [vmem:[%s2076_s1 + $0x98] sm:$0xff]  ;;  %v978_v20 = vld [vmem:[%s2076_s1 + $0xa0] sm:$0xff] }
   0xb   :  { %2100 = vst [vmem:[#allocation20_spill] sm:$0xff] %v968_v18  ;;  %2101 = vst [vmem:[#allocation21_spill] sm:$0xff] %v973_v19  ;;  %v983_v21 = vld [vmem:[%s2076_s1 + $0xa8] sm:$0xff]  ;;  %v988_v22 = vld [vmem:[%s2076_s1 + $0xb0] sm:$0xff] }
   0xc   :  { %2102 = vst [vmem:[#allocation22_spill] sm:$0xff] %v978_v20  ;;  %2103 = vst [vmem:[#allocation23_spill] sm:$0xff] %v983_v21  ;;  %v993_v23 = vld [vmem:[%s2076_s1 + $0xb8] sm:$0xff]  ;;  %v998_v24 = vld [vmem:[%s2076_s1 + $0xc0] sm:$0xff] }
   0xd   :  { %2104 = vst [vmem:[#allocation24_spill] sm:$0xff] %v988_v22  ;;  %2105 = vst [vmem:[#allocation25_spill] sm:$0xff] %v993_v23  ;;  %v1003_v25 = vld [vmem:[%s2076_s1 + $0xc8] sm:$0xff]  ;;  %v1008_v26 = vld [vmem:[%s2076_s1 + $0xd0] sm:$0xff] }
   0xe   :  { %2106 = vst [vmem:[#allocation26_spill] sm:$0xff] %v998_v24  ;;  %2107 = vst [vmem:[#allocation27_spill] sm:$0xff] %v1003_v25  ;;  %v1013_v27 = vld [vmem:[%s2076_s1 + $0xd8] sm:$0xff]  ;;  %v1018_v28 = vld [vmem:[%s2076_s1 + $0xe0] sm:$0xff] }
   0xf   :  { %2108 = vst [vmem:[#allocation28_spill] sm:$0xff] %v1008_v26  ;;  %2109 = vst [vmem:[#allocation29_spill] sm:$0xff] %v1013_v27  ;;  %v1023_v29 = vld [vmem:[%s2076_s1 + $0xe8] sm:$0xff]  ;;  %v1028_v30 = vld [vmem:[%s2076_s1 + $0xf0] sm:$0xff] }
  0x10   :  { %2110 = vst [vmem:[#allocation30_spill] sm:$0xff] %v1018_v28  ;;  %2111 = vst [vmem:[#allocation31_spill] sm:$0xff] %v1023_v29  ;;  %v1033_v31 = vld [vmem:[%s2076_s1 + $0xf8] sm:$0xff]  ;;  %v1038_v32 = vld [vmem:[%s2076_s1 + $0x100] sm:$0xff] }
  0x11   :  { %2112 = vst [vmem:[#allocation32_spill] sm:$0xff] %v1028_v30  ;;  %2113 = vst [vmem:[#allocation33_spill] sm:$0xff] %v1033_v31  ;;  %v1043_v33 = vld [vmem:[%s2076_s1 + $0x108] sm:$0xff]  ;;  %v1048_v34 = vld [vmem:[%s2076_s1 + $0x110] sm:$0xff] }
  0x12   :  { %2114 = vst [vmem:[#allocation34_spill] sm:$0xff] %v1038_v32  ;;  %2115 = vst [vmem:[#allocation35_spill] sm:$0xff] %v1043_v33  ;;  %v1053_v35 = vld [vmem:[%s2076_s1 + $0x118] sm:$0xff]  ;;  %v1058_v36 = vld [vmem:[%s2076_s1 + $0x120] sm:$0xff] }
  0x13   :  { %2116 = vst [vmem:[#allocation36_spill] sm:$0xff] %v1048_v34  ;;  %2117 = vst [vmem:[#allocation37_spill] sm:$0xff] %v1053_v35  ;;  %v1063_v37 = vld [vmem:[%s2076_s1 + $0x128] sm:$0xff]  ;;  %v1068_v38 = vld [vmem:[%s2076_s1 + $0x130] sm:$0xff] }
  0x14   :  { %2118 = vst [vmem:[#allocation38_spill] sm:$0xff] %v1058_v36  ;;  %2119 = vst [vmem:[#allocation39_spill] sm:$0xff] %v1063_v37  ;;  %v1073_v39 = vld [vmem:[%s2076_s1 + $0x138] sm:$0xff]  ;;  %v1078_v40 = vld [vmem:[%s2076_s1 + $0x140] sm:$0xff] }
  0x15   :  { %2120 = vst [vmem:[#allocation40_spill] sm:$0xff] %v1068_v38  ;;  %2121 = vst [vmem:[#allocation41_spill] sm:$0xff] %v1073_v39  ;;  %v1083_v41 = vld [vmem:[%s2076_s1 + $0x148] sm:$0xff]  ;;  %v1088_v42 = vld [vmem:[%s2076_s1 + $0x150] sm:$0xff] }
  0x16   :  { %2122 = vst [vmem:[#allocation42_spill] sm:$0xff] %v1078_v40  ;;  %2123 = vst [vmem:[#allocation43_spill] sm:$0xff] %v1083_v41  ;;  %v1093_v43 = vld [vmem:[%s2076_s1 + $0x158] sm:$0xff]  ;;  %v1098_v44 = vld [vmem:[%s2076_s1 + $0x160] sm:$0xff] }
  0x17   :  { %2124 = vst [vmem:[#allocation44_spill] sm:$0xff] %v1088_v42  ;;  %2125 = vst [vmem:[#allocation45_spill] sm:$0xff] %v1093_v43  ;;  %v1103_v45 = vld [vmem:[%s2076_s1 + $0x168] sm:$0xff]  ;;  %v1108_v46 = vld [vmem:[%s2076_s1 + $0x170] sm:$0xff] }
  0x18   :  { %2126 = vst [vmem:[#allocation46_spill] sm:$0xff] %v1098_v44  ;;  %2127 = vst [vmem:[#allocation47_spill] sm:$0xff] %v1103_v45  ;;  %v1113_v47 = vld [vmem:[%s2076_s1 + $0x178] sm:$0xff]  ;;  %v1118_v48 = vld [vmem:[%s2076_s1 + $0x180] sm:$0xff] }
  0x19   :  { %2128 = vst [vmem:[#allocation48_spill] sm:$0xff] %v1108_v46  ;;  %2129 = vst [vmem:[#allocation49_spill] sm:$0xff] %v1113_v47  ;;  %v1123_v49 = vld [vmem:[%s2076_s1 + $0x188] sm:$0xff]  ;;  %v1128_v50 = vld [vmem:[%s2076_s1 + $0x190] sm:$0xff] }
  0x1a   :  { %2130 = vst [vmem:[#allocation50_spill] sm:$0xff] %v1118_v48  ;;  %2131 = vst [vmem:[#allocation51_spill] sm:$0xff] %v1123_v49  ;;  %v1133_v51 = vld [vmem:[%s2076_s1 + $0x198] sm:$0xff]  ;;  %v1138_v52 = vld [vmem:[%s2076_s1 + $0x1a0] sm:$0xff] }
  0x1b   :  { %2132 = vst [vmem:[#allocation52_spill] sm:$0xff] %v1128_v50  ;;  %2133 = vst [vmem:[#allocation53_spill] sm:$0xff] %v1133_v51  ;;  %v1143_v53 = vld [vmem:[%s2076_s1 + $0x1a8] sm:$0xff]  ;;  %v1148_v54 = vld [vmem:[%s2076_s1 + $0x1b0] sm:$0xff] }
  0x1c   :  { %2134 = vst [vmem:[#allocation54_spill] sm:$0xff] %v1138_v52  ;;  %2135 = vst [vmem:[#allocation55_spill] sm:$0xff] %v1143_v53  ;;  %v1153_v55 = vld [vmem:[%s2076_s1 + $0x1b8] sm:$0xff]  ;;  %v1158_v56 = vld [vmem:[%s2076_s1 + $0x1c0] sm:$0xff] }
  0x1d   :  { %2136 = vst [vmem:[#allocation56_spill] sm:$0xff] %v1148_v54  ;;  %2137 = vst [vmem:[#allocation57_spill] sm:$0xff] %v1153_v55  ;;  %v1163_v57 = vld [vmem:[%s2076_s1 + $0x1c8] sm:$0xff]  ;;  %v1168_v58 = vld [vmem:[%s2076_s1 + $0x1d0] sm:$0xff] }
  0x1e   :  { %2138 = vst [vmem:[#allocation58_spill] sm:$0xff] %v1158_v56  ;;  %2139 = vst [vmem:[#allocation59_spill] sm:$0xff] %v1163_v57  ;;  %v1173_v59 = vld [vmem:[%s2076_s1 + $0x1d8] sm:$0xff]  ;;  %v1178_v60 = vld [vmem:[%s2076_s1 + $0x1e0] sm:$0xff] }
  0x1f   :  { %2140 = vst [vmem:[#allocation60_spill] sm:$0xff] %v1168_v58  ;;  %2141 = vst [vmem:[#allocation61_spill] sm:$0xff] %v1173_v59  ;;  %v1183_v61 = vld [vmem:[%s2076_s1 + $0x1e8] sm:$0xff]  ;;  %v1188_v62 = vld [vmem:[%s2076_s1 + $0x1f0] sm:$0xff] }
  0x20   :  { %2142 = vst [vmem:[#allocation62_spill] sm:$0xff] %v1178_v60  ;;  %2143 = vst [vmem:[#allocation63_spill] sm:$0xff] %v1183_v61  ;;  %v1193_v63 = vld [vmem:[%s2076_s1 + $0x1f8] sm:$0xff]  ;;  %v1198_v58 = vld [vmem:[%s2076_s1 + $0x200] sm:$0xff] }
  0x21   :  { %2144 = vst [vmem:[#allocation64_spill] sm:$0xff] %v1188_v62  ;;  %2145 = vst [vmem:[#allocation65_spill] sm:$0xff] %v1193_v63  ;;  %v1203_v60 = vld [vmem:[%s2076_s1 + $0x208] sm:$0xff]  ;;  %v1208_v56 = vld [vmem:[%s2076_s1 + $0x210] sm:$0xff] }
  0x22   :  { %2146 = vst [vmem:[#allocation66_spill] sm:$0xff] %v1198_v58  ;;  %2147 = vst [vmem:[#allocation67_spill] sm:$0xff] %v1203_v60  ;;  %v1213_v62 = vld [vmem:[%s2076_s1 + $0x218] sm:$0xff]  ;;  %v1218_v63 = vld [vmem:[%s2076_s1 + $0x220] sm:$0xff] }
  0x23   :  { %2148 = vst [vmem:[#allocation68_spill] sm:$0xff] %v1208_v56  ;;  %2149 = vst [vmem:[#allocation69_spill] sm:$0xff] %v1213_v62  ;;  %v1223_v58 = vld [vmem:[%s2076_s1 + $0x228] sm:$0xff]  ;;  %v1228_v60 = vld [vmem:[%s2076_s1 + $0x230] sm:$0xff] }
  0x24   :  { %2150 = vst [vmem:[#allocation70_spill] sm:$0xff] %v1218_v63  ;;  %2151 = vst [vmem:[#allocation71_spill] sm:$0xff] %v1223_v58  ;;  %v1233_v56 = vld [vmem:[%s2076_s1 + $0x238] sm:$0xff]  ;;  %v1238_v62 = vld [vmem:[%s2076_s1 + $0x240] sm:$0xff] }
  0x25   :  { %2152 = vst [vmem:[#allocation72_spill] sm:$0xff] %v1228_v60  ;;  %2153 = vst [vmem:[#allocation73_spill] sm:$0xff] %v1233_v56  ;;  %v1243_v63 = vld [vmem:[%s2076_s1 + $0x248] sm:$0xff]  ;;  %v1248_v58 = vld [vmem:[%s2076_s1 + $0x250] sm:$0xff] }
  0x26   :  { %2154 = vst [vmem:[#allocation74_spill] sm:$0xff] %v1238_v62  ;;  %2155 = vst [vmem:[#allocation75_spill] sm:$0xff] %v1243_v63  ;;  %v1253_v60 = vld [vmem:[%s2076_s1 + $0x258] sm:$0xff]  ;;  %v1258_v56 = vld [vmem:[%s2076_s1 + $0x260] sm:$0xff] }
  0x27   :  { %2156 = vst [vmem:[#allocation76_spill] sm:$0xff] %v1248_v58  ;;  %2157 = vst [vmem:[#allocation77_spill] sm:$0xff] %v1253_v60  ;;  %v1263_v62 = vld [vmem:[%s2076_s1 + $0x268] sm:$0xff]  ;;  %v1268_v63 = vld [vmem:[%s2076_s1 + $0x270] sm:$0xff] }
  0x28   :  { %2158 = vst [vmem:[#allocation78_spill] sm:$0xff] %v1258_v56  ;;  %2159 = vst [vmem:[#allocation79_spill] sm:$0xff] %v1263_v62  ;;  %v1273_v58 = vld [vmem:[%s2076_s1 + $0x278] sm:$0xff]  ;;  %v1278_v60 = vld [vmem:[%s2076_s1 + $0x280] sm:$0xff] }
  0x29   :  { %2160 = vst [vmem:[#allocation80_spill] sm:$0xff] %v1268_v63  ;;  %2161 = vst [vmem:[#allocation81_spill] sm:$0xff] %v1273_v58  ;;  %v1283_v56 = vld [vmem:[%s2076_s1 + $0x288] sm:$0xff]  ;;  %v1288_v62 = vld [vmem:[%s2076_s1 + $0x290] sm:$0xff] }
  0x2a   :  { %2162 = vst [vmem:[#allocation82_spill] sm:$0xff] %v1278_v60  ;;  %2163 = vst [vmem:[#allocation83_spill] sm:$0xff] %v1283_v56  ;;  %v1293_v63 = vld [vmem:[%s2076_s1 + $0x298] sm:$0xff]  ;;  %v1298_v58 = vld [vmem:[%s2076_s1 + $0x2a0] sm:$0xff] }
  0x2b   :  { %2164 = vst [vmem:[#allocation84_spill] sm:$0xff] %v1288_v62  ;;  %2165 = vst [vmem:[#allocation85_spill] sm:$0xff] %v1293_v63  ;;  %v1303_v60 = vld [vmem:[%s2076_s1 + $0x2a8] sm:$0xff]  ;;  %v1308_v56 = vld [vmem:[%s2076_s1 + $0x2b0] sm:$0xff] }
  0x2c   :  { %2166 = vst [vmem:[#allocation86_spill] sm:$0xff] %v1298_v58  ;;  %2167 = vst [vmem:[#allocation87_spill] sm:$0xff] %v1303_v60  ;;  %v1313_v62 = vld [vmem:[%s2076_s1 + $0x2b8] sm:$0xff]  ;;  %v1318_v63 = vld [vmem:[%s2076_s1 + $0x2c0] sm:$0xff] }
  0x2d   :  { %2168 = vst [vmem:[#allocation88_spill] sm:$0xff] %v1308_v56  ;;  %2169 = vst [vmem:[#allocation89_spill] sm:$0xff] %v1313_v62  ;;  %v1323_v58 = vld [vmem:[%s2076_s1 + $0x2c8] sm:$0xff]  ;;  %v1328_v60 = vld [vmem:[%s2076_s1 + $0x2d0] sm:$0xff] }
  0x2e   :  { %2170 = vst [vmem:[#allocation90_spill] sm:$0xff] %v1318_v63  ;;  %2171 = vst [vmem:[#allocation91_spill] sm:$0xff] %v1323_v58  ;;  %v1333_v56 = vld [vmem:[%s2076_s1 + $0x2d8] sm:$0xff]  ;;  %v1338_v62 = vld [vmem:[%s2076_s1 + $0x2e0] sm:$0xff] }
  0x2f   :  { %2172 = vst [vmem:[#allocation92_spill] sm:$0xff] %v1328_v60  ;;  %2173 = vst [vmem:[#allocation93_spill] sm:$0xff] %v1333_v56  ;;  %v1343_v63 = vld [vmem:[%s2076_s1 + $0x2e8] sm:$0xff]  ;;  %v1348_v58 = vld [vmem:[%s2076_s1 + $0x2f0] sm:$0xff] }
  0x30   :  { %2174 = vst [vmem:[#allocation94_spill] sm:$0xff] %v1338_v62  ;;  %2175 = vst [vmem:[#allocation95_spill] sm:$0xff] %v1343_v63  ;;  %v1353_v60 = vld [vmem:[%s2076_s1 + $0x2f8] sm:$0xff]  ;;  %v1358_v56 = vld [vmem:[%s2076_s1 + $0x300] sm:$0xff] }
  0x31   :  { %2176 = vst [vmem:[#allocation96_spill] sm:$0xff] %v1348_v58  ;;  %2177 = vst [vmem:[#allocation97_spill] sm:$0xff] %v1353_v60  ;;  %v1363_v62 = vld [vmem:[%s2076_s1 + $0x308] sm:$0xff]  ;;  %v1368_v63 = vld [vmem:[%s2076_s1 + $0x310] sm:$0xff] }
  0x32   :  { %2178 = vst [vmem:[#allocation98_spill] sm:$0xff] %v1358_v56  ;;  %2179 = vst [vmem:[#allocation99_spill] sm:$0xff] %v1363_v62  ;;  %v1373_v58 = vld [vmem:[%s2076_s1 + $0x318] sm:$0xff]  ;;  %v1378_v60 = vld [vmem:[%s2076_s1 + $0x320] sm:$0xff] }
  0x33   :  { %2180 = vst [vmem:[#allocation100_spill] sm:$0xff] %v1368_v63  ;;  %2181 = vst [vmem:[#allocation101_spill] sm:$0xff] %v1373_v58  ;;  %v1383_v56 = vld [vmem:[%s2076_s1 + $0x328] sm:$0xff]  ;;  %v1388_v62 = vld [vmem:[%s2076_s1 + $0x330] sm:$0xff] }
  0x34   :  { %2182 = vst [vmem:[#allocation102_spill] sm:$0xff] %v1378_v60  ;;  %2183 = vst [vmem:[#allocation103_spill] sm:$0xff] %v1383_v56  ;;  %v1393_v63 = vld [vmem:[%s2076_s1 + $0x338] sm:$0xff]  ;;  %v1398_v58 = vld [vmem:[%s2076_s1 + $0x340] sm:$0xff] }
  0x35   :  { %2184 = vst [vmem:[#allocation104_spill] sm:$0xff] %v1388_v62  ;;  %2185 = vst [vmem:[#allocation105_spill] sm:$0xff] %v1393_v63  ;;  %v1403_v60 = vld [vmem:[%s2076_s1 + $0x348] sm:$0xff]  ;;  %v1408_v56 = vld [vmem:[%s2076_s1 + $0x350] sm:$0xff] }
  0x36   :  { %2186 = vst [vmem:[#allocation106_spill] sm:$0xff] %v1398_v58  ;;  %2187 = vst [vmem:[#allocation107_spill] sm:$0xff] %v1403_v60  ;;  %v1413_v62 = vld [vmem:[%s2076_s1 + $0x358] sm:$0xff]  ;;  %v1418_v63 = vld [vmem:[%s2076_s1 + $0x360] sm:$0xff] }
  0x37   :  { %2188 = vst [vmem:[#allocation108_spill] sm:$0xff] %v1408_v56  ;;  %2189 = vst [vmem:[#allocation109_spill] sm:$0xff] %v1413_v62  ;;  %v1423_v58 = vld [vmem:[%s2076_s1 + $0x368] sm:$0xff]  ;;  %v1428_v60 = vld [vmem:[%s2076_s1 + $0x370] sm:$0xff] }
  0x38   :  { %2190 = vst [vmem:[#allocation110_spill] sm:$0xff] %v1418_v63  ;;  %2191 = vst [vmem:[#allocation111_spill] sm:$0xff] %v1423_v58  ;;  %v1433_v56 = vld [vmem:[%s2076_s1 + $0x378] sm:$0xff]  ;;  %v1438_v62 = vld [vmem:[%s2076_s1 + $0x380] sm:$0xff] }
  0x39   :  { %2192 = vst [vmem:[#allocation112_spill] sm:$0xff] %v1428_v60  ;;  %2193 = vst [vmem:[#allocation113_spill] sm:$0xff] %v1433_v56  ;;  %v1443_v63 = vld [vmem:[%s2076_s1 + $0x388] sm:$0xff]  ;;  %v1448_v58 = vld [vmem:[%s2076_s1 + $0x390] sm:$0xff] }
  0x3a   :  { %2194 = vst [vmem:[#allocation114_spill] sm:$0xff] %v1438_v62  ;;  %2195 = vst [vmem:[#allocation115_spill] sm:$0xff] %v1443_v63  ;;  %v1453_v60 = vld [vmem:[%s2076_s1 + $0x398] sm:$0xff]  ;;  %v1458_v56 = vld [vmem:[%s2076_s1 + $0x3a0] sm:$0xff] }
  0x3b   :  { %2196 = vst [vmem:[#allocation116_spill] sm:$0xff] %v1448_v58  ;;  %2197 = vst [vmem:[#allocation117_spill] sm:$0xff] %v1453_v60  ;;  %v1463_v62 = vld [vmem:[%s2076_s1 + $0x3a8] sm:$0xff]  ;;  %v1468_v63 = vld [vmem:[%s2076_s1 + $0x3b0] sm:$0xff] }
  0x3c   :  { %2198 = vst [vmem:[#allocation118_spill] sm:$0xff] %v1458_v56  ;;  %2199 = vst [vmem:[#allocation119_spill] sm:$0xff] %v1463_v62  ;;  %v1473_v58 = vld [vmem:[%s2076_s1 + $0x3b8] sm:$0xff]  ;;  %v1478_v60 = vld [vmem:[%s2076_s1 + $0x3c0] sm:$0xff] }
  0x3d   :  { %2200 = vst [vmem:[#allocation120_spill] sm:$0xff] %v1468_v63  ;;  %2201 = vst [vmem:[#allocation121_spill] sm:$0xff] %v1473_v58  ;;  %v1483_v56 = vld [vmem:[%s2076_s1 + $0x3c8] sm:$0xff]  ;;  %v1488_v62 = vld [vmem:[%s2076_s1 + $0x3d0] sm:$0xff] }
  0x3e   :  { %2202 = vst [vmem:[#allocation122_spill] sm:$0xff] %v1478_v60  ;;  %2203 = vst [vmem:[#allocation123_spill] sm:$0xff] %v1483_v56  ;;  %v1493_v63 = vld [vmem:[%s2076_s1 + $0x3d8] sm:$0xff]  ;;  %v1498_v58 = vld [vmem:[%s2076_s1 + $0x3e0] sm:$0xff] }
  0x3f   :  { %2204 = vst [vmem:[#allocation124_spill] sm:$0xff] %v1488_v62  ;;  %2205 = vst [vmem:[#allocation125_spill] sm:$0xff] %v1493_v63  ;;  %v1503_v60 = vld [vmem:[%s2076_s1 + $0x3e8] sm:$0xff]  ;;  %v1508_v56 = vld [vmem:[%s2076_s1 + $0x3f0] sm:$0xff] }
  0x40   :  { %2206 = vst [vmem:[#allocation126_spill] sm:$0xff] %v1498_v58  ;;  %2207 = vst [vmem:[#allocation127_spill] sm:$0xff] %v1503_v60  ;;  %v1513_v62 = vld [vmem:[%s2076_s1 + $0x3f8] sm:$0xff]  ;;  %v1518_v63 = vld [vmem:[%s2078_s2] sm:$0xff] }
  0x41   :  { %2208 = vst [vmem:[#allocation128_spill] sm:$0xff] %v1508_v56  ;;  %2209 = vst [vmem:[#allocation129_spill] sm:$0xff] %v1513_v62  ;;  %v1523_v58 = vld [vmem:[%s2078_s2 + $0x8] sm:$0xff]  ;;  %v1528_v60 = vld [vmem:[%s2078_s2 + $0x10] sm:$0xff] }
  0x42   :  { %2210 = vst [vmem:[#allocation130_spill] sm:$0xff] %v1523_v58  ;;  %v1533_v56 = vld [vmem:[%s2078_s2 + $0x18] sm:$0xff]  ;;  %v1538_v62 = vld [vmem:[%s2078_s2 + $0x20] sm:$0xff]  ;;  %v1543_v59 = vld [vmem:[%s2078_s2 + $0x28] sm:$0xff] }
  0x43   :  { %2211 = vst [vmem:[#allocation131_spill] sm:$0xff] %v1533_v56  ;;  %v1548_v61 = vld [vmem:[%s2078_s2 + $0x30] sm:$0xff]  ;;  %v1553_v57 = vld [vmem:[%s2078_s2 + $0x38] sm:$0xff]  ;;  %v1558_v54 = vld [vmem:[%s2078_s2 + $0x40] sm:$0xff] }
  0x44   :  { %2212 = vst [vmem:[#allocation132_spill] sm:$0xff] %v1553_v57  ;;  %v1563_v50 = vld [vmem:[%s2078_s2 + $0x48] sm:$0xff]  ;;  %v1568_v52 = vld [vmem:[%s2078_s2 + $0x50] sm:$0xff]  ;;  %v1573_v48 = vld [vmem:[%s2078_s2 + $0x58] sm:$0xff] }
  0x45   :  { %2213 = vst [vmem:[#allocation133_spill] sm:$0xff] %v1563_v50  ;;  %v1578_v55 = vld [vmem:[%s2078_s2 + $0x60] sm:$0xff]  ;;  %v1583_v51 = vld [vmem:[%s2078_s2 + $0x68] sm:$0xff]  ;;  %v1588_v53 = vld [vmem:[%s2078_s2 + $0x70] sm:$0xff] }
  0x46   :  { %2214 = vst [vmem:[#allocation134_spill] sm:$0xff] %v1583_v51  ;;  %v1593_v49 = vld [vmem:[%s2078_s2 + $0x78] sm:$0xff]  ;;  %v1598_v46 = vld [vmem:[%s2078_s2 + $0x80] sm:$0xff]  ;;  %v1603_v42 = vld [vmem:[%s2078_s2 + $0x88] sm:$0xff] }
  0x47   :  { %v1608_v44 = vld [vmem:[%s2078_s2 + $0x90] sm:$0xff]  ;;  %v1613_v40 = vld [vmem:[%s2078_s2 + $0x98] sm:$0xff]  ;;  %v1618_v47 = vld [vmem:[%s2078_s2 + $0xa0] sm:$0xff] }
  0x48   :  { %v1623_v43 = vld [vmem:[%s2078_s2 + $0xa8] sm:$0xff]  ;;  %v1628_v45 = vld [vmem:[%s2078_s2 + $0xb0] sm:$0xff]  ;;  %v1633_v41 = vld [vmem:[%s2078_s2 + $0xb8] sm:$0xff] }
  0x49   :  { %v1638_v38 = vld [vmem:[%s2078_s2 + $0xc0] sm:$0xff]  ;;  %v1643_v34 = vld [vmem:[%s2078_s2 + $0xc8] sm:$0xff]  ;;  %v1648_v36 = vld [vmem:[%s2078_s2 + $0xd0] sm:$0xff] }
  0x4a   :  { %v1653_v32 = vld [vmem:[%s2078_s2 + $0xd8] sm:$0xff]  ;;  %v1658_v39 = vld [vmem:[%s2078_s2 + $0xe0] sm:$0xff]  ;;  %v1663_v35 = vld [vmem:[%s2078_s2 + $0xe8] sm:$0xff] }
  0x4b   :  { %v1668_v37 = vld [vmem:[%s2078_s2 + $0xf0] sm:$0xff]  ;;  %v1673_v33 = vld [vmem:[%s2078_s2 + $0xf8] sm:$0xff]  ;;  %v1678_v30 = vld [vmem:[%s2078_s2 + $0x100] sm:$0xff] }
  0x4c   :  { %v1683_v26 = vld [vmem:[%s2078_s2 + $0x108] sm:$0xff]  ;;  %v1688_v28 = vld [vmem:[%s2078_s2 + $0x110] sm:$0xff]  ;;  %v1693_v24 = vld [vmem:[%s2078_s2 + $0x118] sm:$0xff] }
  0x4d   :  { %v1698_v31 = vld [vmem:[%s2078_s2 + $0x120] sm:$0xff]  ;;  %v1703_v27 = vld [vmem:[%s2078_s2 + $0x128] sm:$0xff]  ;;  %v1708_v29 = vld [vmem:[%s2078_s2 + $0x130] sm:$0xff] }
  0x4e   :  { %v1713_v25 = vld [vmem:[%s2078_s2 + $0x138] sm:$0xff]  ;;  %v1718_v22 = vld [vmem:[%s2078_s2 + $0x140] sm:$0xff]  ;;  %v1723_v18 = vld [vmem:[%s2078_s2 + $0x148] sm:$0xff] }
  0x4f   :  { %v1728_v20 = vld [vmem:[%s2078_s2 + $0x150] sm:$0xff]  ;;  %v1733_v16 = vld [vmem:[%s2078_s2 + $0x158] sm:$0xff]  ;;  %v1738_v23 = vld [vmem:[%s2078_s2 + $0x160] sm:$0xff] }
  0x50   :  { %2215 = vst [vmem:[#allocation135_spill] sm:$0xff] %v1733_v16  ;;  %v1743_v19 = vld [vmem:[%s2078_s2 + $0x168] sm:$0xff]  ;;  %v1748_v21 = vld [vmem:[%s2078_s2 + $0x170] sm:$0xff]  ;;  %v1753_v17 = vld [vmem:[%s2078_s2 + $0x178] sm:$0xff] }
  0x51   :  { %v1758_v14 = vld [vmem:[%s2078_s2 + $0x180] sm:$0xff]  ;;  %v1763_v10 = vld [vmem:[%s2078_s2 + $0x188] sm:$0xff]  ;;  %v1768_v12 = vld [vmem:[%s2078_s2 + $0x190] sm:$0xff] }
  0x52   :  { %2216 = vst [vmem:[#allocation136_spill] sm:$0xff] %v1758_v14  ;;  %2217 = vst [vmem:[#allocation137_spill] sm:$0xff] %v1763_v10  ;;  %v1773_v8 = vld [vmem:[%s2078_s2 + $0x198] sm:$0xff]  ;;  %v1778_v15 = vld [vmem:[%s2078_s2 + $0x1a0] sm:$0xff] }
  0x53   :  { %2218 = vst [vmem:[#allocation138_spill] sm:$0xff] %v1768_v12  ;;  %2219 = vst [vmem:[#allocation139_spill] sm:$0xff] %v1773_v8  ;;  %v1783_v11 = vld [vmem:[%s2078_s2 + $0x1a8] sm:$0xff]  ;;  %v1788_v13 = vld [vmem:[%s2078_s2 + $0x1b0] sm:$0xff] }
  0x54   :  { %2220 = vst [vmem:[#allocation140_spill] sm:$0xff] %v1778_v15  ;;  %2221 = vst [vmem:[#allocation141_spill] sm:$0xff] %v1783_v11  ;;  %v1793_v9 = vld [vmem:[%s2078_s2 + $0x1b8] sm:$0xff]  ;;  %v1798_v6 = vld [vmem:[%s2078_s2 + $0x1c0] sm:$0xff] }
  0x55   :  { %2222 = vst [vmem:[#allocation142_spill] sm:$0xff] %v1788_v13  ;;  %2223 = vst [vmem:[#allocation143_spill] sm:$0xff] %v1793_v9  ;;  %v1803_v2 = vld [vmem:[%s2078_s2 + $0x1c8] sm:$0xff]  ;;  %v1808_v4 = vld [vmem:[%s2078_s2 + $0x1d0] sm:$0xff] }
  0x56   :  { %2224 = vst [vmem:[#allocation144_spill] sm:$0xff] %v1798_v6  ;;  %2225 = vst [vmem:[#allocation145_spill] sm:$0xff] %v1803_v2  ;;  %v1813_v0 = vld [vmem:[%s2078_s2 + $0x1d8] sm:$0xff]  ;;  %v1818_v7 = vld [vmem:[%s2078_s2 + $0x1e0] sm:$0xff]  ;;  %v1842_v6 = vmov 0.0  }
  0x57   :  { %2226 = vst [vmem:[#allocation146_spill] sm:$0xff] %v1808_v4  ;;  %2227 = vst [vmem:[#allocation147_spill] sm:$0xff] %v1813_v0  ;;  %v1823_v3 = vld [vmem:[%s2078_s2 + $0x1e8] sm:$0xff]  ;;  %v1828_v5 = vld [vmem:[%s2078_s2 + $0x1f0] sm:$0xff] }
  0x58   :  { %2228 = vst [vmem:[#allocation148_spill] sm:$0xff] %v1818_v7  ;;  %2229 = vst [vmem:[#allocation149_spill] sm:$0xff] %v1823_v3  ;;  %v1833_v1 = vld [vmem:[%s2078_s2 + $0x1f8] sm:$0xff]  ;;  %v1838_v4 = vld [vmem:[%s2079_s3] sm:$0xf]  ;;  %v1840_v7 = vmov 0.0  }
  0x59   :  { %2230 = vst [vmem:[#allocation150_spill] sm:$0xff] %v1828_v5  ;;  %2231 = vst [vmem:[#allocation151_spill] sm:$0xff] %v1833_v1 }
  0x5a   :  { %2232 = vst [vmem:[#allocation152_spill] sm:$0xff] %v1838_v4 }
  0x5b LB: > { %2233 = vst [vmem:[#allocation153_spill] sm:$0xff] %v839_v7  ;;  %2234 = vst [vmem:[#allocation154_spill] sm:$0xff] %v843_v6  ;;  %v2235_v58 = vld [vmem:[#allocation130_spill] sm:$0xff]  ;;  %v2236_v56 = vld [vmem:[#allocation131_spill] sm:$0xff]  ;;  %v589_v1 = vpack.c.bf16 %v1538_v62, %v1518_v63  ;;  %v621_v0 = vpack.c.bf16 %v1548_v61, %v1528_v60  ;;  %v623_v6 = vpack.c.bf16 %v1593_v49, %v1573_v48  ;;  %s586_s2 = sshll.u32 %s847_s6, 3  ;;  %s585_s9 = sshll.u32 %s847_s6, 2  ;;  %s847_s6 = sphi %s1844_s6, %s215_s6   ;;  %v843_v6 = vphi %v1842_v6, %v557_v6   ;;  %v839_v7 = vphi %v1840_v7, %v555_v7  }
  0x5c   : > { %v587_v4 = vpack.c.bf16 %v1543_v59, %v2235_v58  ;;  %v2237_v57 = vld [vmem:[#allocation132_spill] sm:$0xff]  ;;  %v2238_v50 = vld [vmem:[#allocation133_spill] sm:$0xff]  ;;  %v2239_v51 = vld [vmem:[#allocation134_spill] sm:$0xff]  ;;  %v593_v58 = vpack.c.bf16 %v1578_v55, %v1558_v54  ;;  %s220_s8 = scalar_lea.vmem %s2075_s0, %s586_s2  ;;  %s559_s12 = scalar_lea.vmem %s2077_s4, %s585_s9 }
  0x5d   : > { %v619_v5 = vpack.c.bf16 %v2237_v57, %v2236_v56  ;;  %v591_v7 = vpack.c.bf16 %v2239_v51, %v2238_v50  ;;  %v625_v56 = vpack.c.bf16 %v1588_v53, %v1568_v52  ;;  %v595_v57 = vpack.c.bf16 %v1623_v43, %v1603_v42  ;;  %v2240_v16 = vld [vmem:[#allocation135_spill] sm:$0xff]  ;;  %v2241_v10 = vld [vmem:[#allocation137_spill] sm:$0xff]  ;;  %v2245_v14 = vld [vmem:[#allocation136_spill] sm:$0xff]  ;;  %s215_s6 = sadd.s32 1, %s847_s6  }
  0x5e   : > { %588 = vmatprep.subr.bf16.mxu0 %v587_v4  ;;  %v627_v50 = vpack.c.bf16 %v1633_v41, %v1613_v40  ;;  %v849_v51 = vmov 0.0   ;;  %v599_v4 = vpack.c.bf16 %v1663_v35, %v1643_v34  ;;  %v2242_v11 = vld [vmem:[#allocation141_spill] sm:$0xff]  ;;  %v2243_v8 = vld [vmem:[#allocation139_spill] sm:$0xff]  ;;  %v2246_v15 = vld [vmem:[#allocation140_spill] sm:$0xff]  ;;  %p212_p0 = scmp.ge.s32.totalorder %s215_s6, 8  }
  0x5f   : > { %620 = vmatprep.subr.bf16.mxu1 %v619_v5  ;;  %590 = vmatpush1.bf16.msra.mxu0 %v589_v1  ;;  %v629_v1 = vpack.c.bf16 %v1628_v45, %v1608_v44  ;;  %v631_v5 = vpack.c.bf16 %v1673_v33, %v1653_v32  ;;  %v2244_v9 = vld [vmem:[#allocation143_spill] sm:$0xff]  ;;  %v2247_v12 = vld [vmem:[#allocation138_spill] sm:$0xff]  ;;  %v2249_v2 = vld [vmem:[#allocation145_spill] sm:$0xff] }
  0x60   : > { %622 = vmatpush1.bf16.msra.mxu1 %v621_v0  ;;  %592 = vmatprep.subr.bf16.mxu0 %v591_v7  ;;  %v597_v0 = vpack.c.bf16 %v1618_v47, %v1598_v46  ;;  %v633_v7 = vpack.c.bf16 %v1668_v37, %v1648_v36  ;;  %v2248_v13 = vld [vmem:[#allocation142_spill] sm:$0xff]  ;;  %v2250_v3 = vld [vmem:[#allocation149_spill] sm:$0xff] }
  0x61   : > { %624 = vmatprep.subr.bf16.mxu1 %v623_v6  ;;  %286 = vmatprep.mubr.f32.mxu0 %v849_v51  ;;  %v601_v6 = vpack.c.bf16 %v1658_v39, %v1638_v38 }
  0x62   : > { %357 = vmatprep.mubr.f32.mxu1 %v849_v51  ;;  %v603_v51 = vpack.c.bf16 %v1703_v27, %v1683_v26 }
  0x63   : > { %594 = vmatpush1.bf16.msra.mxu0 %v593_v58  ;;  %v607_v58 = vpack.c.bf16 %v1743_v19, %v1723_v18 }
  0x64   : > { %626 = vmatpush1.bf16.msra.mxu1 %v625_v56  ;;  %596 = vmatprep.subr.bf16.mxu0 %v595_v57  ;;  %v605_v56 = vpack.c.bf16 %v1698_v31, %v1678_v30  ;;  %v637_v57 = vpack.c.bf16 %v1708_v29, %v1688_v28 }
  0x65   : > { %628 = vmatprep.subr.bf16.mxu1 %v627_v50  ;;  %v635_v50 = vpack.c.bf16 %v1713_v25, %v1693_v24 }
  0x67   : > { %598 = vmatpush1.bf16.msra.mxu0 %v597_v0  ;;  %v639_v0 = vpack.c.bf16 %v1753_v17, %v2240_v16 }
  0x68   : > { %630 = vmatpush1.bf16.msra.mxu1 %v629_v1  ;;  %600 = vmatprep.subr.bf16.mxu0 %v599_v4  ;;  %v609_v1 = vpack.c.bf16 %v1738_v23, %v1718_v22  ;;  %v641_v4 = vpack.c.bf16 %v1748_v21, %v1728_v20 }
  0x69   : > { %632 = vmatprep.subr.bf16.mxu1 %v631_v5  ;;  %v611_v5 = vpack.c.bf16 %v2242_v11, %v2241_v10 }
  0x6b   : > { %602 = vmatpush1.bf16.msra.mxu0 %v601_v6  ;;  %v643_v6 = vpack.c.bf16 %v2244_v9, %v2243_v8  ;;  %v2255_v8 = vld [vmem:[#allocation146_spill] sm:$0xff] }
  0x6c   : > { %634 = vmatpush1.bf16.msra.mxu1 %v633_v7  ;;  %604 = vmatprep.subr.bf16.mxu0 %v603_v51  ;;  %v613_v7 = vpack.c.bf16 %v2246_v15, %v2245_v14  ;;  %v645_v51 = vpack.c.bf16 %v2248_v13, %v2247_v12  ;;  %v2256_v9 = vld [vmem:[#allocation150_spill] sm:$0xff]  ;;  %v2267_v13 = vld [vmem:[#allocation13_spill] sm:$0xff]  ;;  %v2280_v14 = vld [vmem:[#allocation20_spill] sm:$0xff] }
  0x6d   : > { %636 = vmatprep.subr.bf16.mxu1 %v635_v50  ;;  %v615_v50 = vpack.c.bf16 %v2250_v3, %v2249_v2  ;;  %v649_v10 = vpack.c.bf16 %v2256_v9, %v2255_v8  ;;  %v2259_v3 = vld [vmem:[#allocation5_spill] sm:$0xff]  ;;  %v2263_v8 = vld [vmem:[#allocation4_spill] sm:$0xff] }
  0x6e   : > { %v2264_v9 = vld [vmem:[#allocation8_spill] sm:$0xff] }
  0x6f   : > { %606 = vmatpush1.bf16.msra.mxu0 %v605_v56  ;;  %v2251_v56 = vld [vmem:[#allocation147_spill] sm:$0xff]  ;;  %v717_v11 = vpack.c.bf16 %v2264_v9, %v2263_v8 }
  0x70   : > { %638 = vmatpush1.bf16.msra.mxu1 %v637_v57  ;;  %608 = vmatprep.subr.bf16.mxu0 %v607_v58  ;;  %v2252_v57 = vld [vmem:[#allocation151_spill] sm:$0xff] }
  0x71   : > { %640 = vmatprep.subr.bf16.mxu1 %v639_v0  ;;  %v647_v58 = vpack.c.bf16 %v2252_v57, %v2251_v56  ;;  %v2253_v0 = vld [vmem:[#allocation144_spill] sm:$0xff]  ;;  %v2260_v56 = vld [vmem:[#allocation9_spill] sm:$0xff]  ;;  %v2274_v8 = vld [vmem:[#allocation19_spill] sm:$0xff] }
  0x72   : > { %v715_v57 = vpack.c.bf16 %v2260_v56, %v2259_v3  ;;  %v2269_v56 = vld [vmem:[#allocation154_spill] sm:$0xff]  ;;  %v2275_v9 = vld [vmem:[#allocation23_spill] sm:$0xff] }
  0x73   : > { %610 = vmatpush1.bf16.msra.mxu0 %v609_v1  ;;  %v2254_v1 = vld [vmem:[#allocation148_spill] sm:$0xff] }
  0x74   : > { %642 = vmatpush1.bf16.msra.mxu1 %v641_v4  ;;  %612 = vmatprep.subr.bf16.mxu0 %v611_v5  ;;  %v617_v4 = vpack.c.bf16 %v2254_v1, %v2253_v0  ;;  %v2257_v5 = vld [vmem:[#allocation3_spill] sm:$0xff]  ;;  %v2262_v0 = vld [vmem:[#allocation6_spill] sm:$0xff] }
  0x75   : > { %644 = vmatprep.subr.bf16.mxu1 %v643_v6  ;;  %v2258_v6 = vld [vmem:[#allocation7_spill] sm:$0xff] }
  0x76   : > { %v651_v2 = vpack.c.bf16 %v2258_v6, %v2257_v5  ;;  %v2268_v5 = vld [vmem:[#allocation17_spill] sm:$0xff] }
  0x77   : > { %614 = vmatpush1.bf16.msra.mxu0 %v613_v7  ;;  %v1927_v7 = vld [vmem:[%s220_s8] sm:$0xff]  ;;  %v719_v6 = vpack.c.bf16 %v2268_v5, %v2267_v13  ;;  %v659_v13 = vpack.c.bf16 %v2275_v9, %v2274_v8  ;;  %v2285_v8 = vld [vmem:[#allocation33_spill] sm:$0xff] }
  0x78   : > { %646 = vmatpush1.bf16.msra.mxu1 %v645_v51  ;;  %616 = vmatprep.subr.bf16.mxu0 %v615_v50  ;;  %v2261_v51 = vld [vmem:[#allocation2_spill] sm:$0xff]  ;;  %v2265_v50 = vld [vmem:[#allocation11_spill] sm:$0xff]  ;;  %v365_v3 = vcombine.high %v1927_v7, %v1927_v7 }
  0x79   : > { %648 = vmatprep.subr.bf16.mxu1 %v647_v58  ;;  %v653_v1 = vpack.c.bf16 %v2262_v0, %v2261_v51  ;;  %v2266_v58 = vld [vmem:[#allocation15_spill] sm:$0xff] }
  0x7a   : > { %v655_v12 = vpack.c.bf16 %v2266_v58, %v2265_v50  ;;  %v2276_v50 = vld [vmem:[#allocation21_spill] sm:$0xff] }
  0x7b   : > { %618 = vmatpush1.bf16.msra.mxu0 %v617_v4  ;;  %v2271_v4 = vld [vmem:[#allocation14_spill] sm:$0xff]  ;;  %v2277_v58 = vld [vmem:[#allocation25_spill] sm:$0xff] }
  0x7c   : > { %650 = vmatpush1.bf16.msra.mxu1 %v649_v10  ;;  %652 = vmatprep.subr.bf16.mxu0 %v651_v2  ;;  %v2270_v10 = vld [vmem:[#allocation10_spill] sm:$0xff]  ;;  %v2272_v2 = vld [vmem:[#allocation12_spill] sm:$0xff]  ;;  %v723_v5 = vpack.c.bf16 %v2277_v58, %v2276_v50 }
  0x7d   : > { %716 = vmatprep.subr.bf16.mxu1 %v715_v57  ;;  %v657_v51 = vpack.c.bf16 %v2271_v4, %v2270_v10  ;;  %v2273_v57 = vld [vmem:[#allocation16_spill] sm:$0xff]  ;;  %v2286_v50 = vld [vmem:[#allocation26_spill] sm:$0xff] }
  0x7e   : > { %287 = vmatmul.mubr.f32.vlgmr.msra.gmra.mrb[0].mxu0 %v2269_v56  ;;  %v721_v0 = vpack.c.bf16 %v2273_v57, %v2272_v2  ;;  %v2281_v10 = vld [vmem:[#allocation24_spill] sm:$0xff]  ;;  %v2284_v57 = vld [vmem:[#allocation29_spill] sm:$0xff] }
  0x7f   : > { %358 = vmatmul.mubr.f32.vlgmr.msra.gmra.mrb[0].mxu1 %v2269_v56  ;;  %654 = vmatpush1.bf16.msra.mxu0 %v653_v1  ;;  %v2278_v1 = vld [vmem:[#allocation18_spill] sm:$0xff]  ;;  %v725_v4 = vpack.c.bf16 %v2281_v10, %v2280_v14  ;;  %v727_v9 = vpack.c.bf16 %v2285_v8, %v2284_v57  ;;  %v2289_v58 = vld [vmem:[#allocation32_spill] sm:$0xff]  ;;  %v2291_v14 = vld [vmem:[#allocation39_spill] sm:$0xff] }
  0x80   : > { %718 = vmatpush1.bf16.msra.mxu1 %v717_v11  ;;  %656 = vmatprep.subr.bf16.mxu0 %v655_v12  ;;  %v2279_v11 = vld [vmem:[#allocation22_spill] sm:$0xff]  ;;  %v2282_v12 = vld [vmem:[#allocation27_spill] sm:$0xff]  ;;  %v2297_v57 = vld [vmem:[#allocation40_spill] sm:$0xff] }
  0x81   : > { %720 = vmatprep.subr.bf16.mxu1 %v719_v6  ;;  %431 = vmatprep.mubr.f32.mxu0 %v365_v3  ;;  %v661_v56 = vpack.c.bf16 %v2279_v11, %v2278_v1  ;;  %v2283_v6 = vld [vmem:[#allocation31_spill] sm:$0xff]  ;;  %v2293_v11 = vld [vmem:[#allocation41_spill] sm:$0xff] }
  0x82   : > { %502 = vmatprep.mubr.f32.mxu1 %v365_v3  ;;  %v663_v2 = vpack.c.bf16 %v2283_v6, %v2282_v12  ;;  %v2287_v3 = vld [vmem:[#allocation30_spill] sm:$0xff]  ;;  %v2290_v1 = vld [vmem:[#allocation35_spill] sm:$0xff] }
  0x83   : > { %658 = vmatpush1.bf16.msra.mxu0 %v657_v51  ;;  %v665_v51 = vpack.c.bf16 %v2287_v3, %v2286_v50  ;;  %v2294_v12 = vld [vmem:[#allocation34_spill] sm:$0xff]  ;;  %v2298_v50 = vld [vmem:[#allocation43_spill] sm:$0xff] }
  0x84   : > { %722 = vmatpush1.bf16.msra.mxu1 %v721_v0  ;;  %660 = vmatprep.subr.bf16.mxu0 %v659_v13  ;;  %v2288_v0 = vld [vmem:[#allocation28_spill] sm:$0xff]  ;;  %v667_v13 = vpack.c.bf16 %v2291_v14, %v2290_v1  ;;  %v2295_v6 = vld [vmem:[#allocation38_spill] sm:$0xff]  ;;  %v2299_v3 = vld [vmem:[#allocation47_spill] sm:$0xff] }
  0x85   : > { %724 = vmatprep.subr.bf16.mxu1 %v723_v5  ;;  %v729_v15 = vpack.c.bf16 %v2289_v58, %v2288_v0  ;;  %v2292_v5 = vld [vmem:[#allocation37_spill] sm:$0xff]  ;;  %v2302_v1 = vld [vmem:[#allocation42_spill] sm:$0xff] }
  0x86   : > { %v731_v10 = vpack.c.bf16 %v2293_v11, %v2292_v5  ;;  %v2301_v0 = vld [vmem:[#allocation49_spill] sm:$0xff]  ;;  %v2303_v14 = vld [vmem:[#allocation46_spill] sm:$0xff]  ;;  %v2305_v5 = vld [vmem:[#allocation48_spill] sm:$0xff] }
  0x87   : > { %662 = vmatpush1.bf16.msra.mxu0 %v661_v56  ;;  %v669_v56 = vpack.c.bf16 %v2295_v6, %v2294_v12  ;;  %v2306_v12 = vld [vmem:[#allocation51_spill] sm:$0xff] }
  0x88   : > { %726 = vmatpush1.bf16.msra.mxu1 %v725_v4  ;;  %664 = vmatprep.subr.bf16.mxu0 %v663_v2  ;;  %v2296_v4 = vld [vmem:[#allocation36_spill] sm:$0xff]  ;;  %v671_v2 = vpack.c.bf16 %v2299_v3, %v2298_v50  ;;  %v2307_v6 = vld [vmem:[#allocation55_spill] sm:$0xff]  ;;  %v2310_v50 = vld [vmem:[#allocation50_spill] sm:$0xff] }
  0x89   : > { %728 = vmatprep.subr.bf16.mxu1 %v727_v9  ;;  %v733_v8 = vpack.c.bf16 %v2297_v57, %v2296_v4  ;;  %v2300_v9 = vld [vmem:[#allocation45_spill] sm:$0xff]  ;;  %v2311_v3 = vld [vmem:[#allocation54_spill] sm:$0xff] }
  0x8a   : > { %v735_v58 = vpack.c.bf16 %v2301_v0, %v2300_v9  ;;  %v2309_v4 = vld [vmem:[#allocation57_spill] sm:$0xff]  ;;  %v2313_v9 = vld [vmem:[#allocation56_spill] sm:$0xff] }
  0x8b   : > { %666 = vmatpush1.bf16.msra.mxu0 %v665_v51  ;;  %v673_v51 = vpack.c.bf16 %v2303_v14, %v2302_v1  ;;  %v2314_v1 = vld [vmem:[#allocation59_spill] sm:$0xff] }
  0x8c   : > { %730 = vmatpush1.bf16.msra.mxu1 %v729_v15  ;;  %668 = vmatprep.subr.bf16.mxu0 %v667_v13  ;;  %v2304_v15 = vld [vmem:[#allocation44_spill] sm:$0xff]  ;;  %v675_v13 = vpack.c.bf16 %v2307_v6, %v2306_v12  ;;  %v2315_v14 = vld [vmem:[#allocation63_spill] sm:$0xff]  ;;  %v2318_v12 = vld [vmem:[#allocation58_spill] sm:$0xff] }
  0x8d   : > { %732 = vmatprep.subr.bf16.mxu1 %v731_v10  ;;  %v737_v11 = vpack.c.bf16 %v2305_v5, %v2304_v15  ;;  %v2308_v10 = vld [vmem:[#allocation53_spill] sm:$0xff]  ;;  %v2319_v6 = vld [vmem:[#allocation62_spill] sm:$0xff] }
  0x8e   : > { %v739_v57 = vpack.c.bf16 %v2309_v4, %v2308_v10  ;;  %v2317_v15 = vld [vmem:[#allocation65_spill] sm:$0xff]  ;;  %v2321_v10 = vld [vmem:[#allocation64_spill] sm:$0xff] }
  0x8f   : > { %670 = vmatpush1.bf16.msra.mxu0 %v669_v56  ;;  %v677_v56 = vpack.c.bf16 %v2311_v3, %v2310_v50  ;;  %v2322_v50 = vld [vmem:[#allocation67_spill] sm:$0xff] }
  0x90   : > { %734 = vmatpush1.bf16.msra.mxu1 %v733_v8  ;;  %672 = vmatprep.subr.bf16.mxu0 %v671_v2  ;;  %v2312_v8 = vld [vmem:[#allocation52_spill] sm:$0xff]  ;;  %v679_v2 = vpack.c.bf16 %v2315_v14, %v2314_v1  ;;  %v2323_v3 = vld [vmem:[#allocation71_spill] sm:$0xff]  ;;  %v2326_v1 = vld [vmem:[#allocation66_spill] sm:$0xff] }
  0x91   : > { %736 = vmatprep.subr.bf16.mxu1 %v735_v58  ;;  %v741_v0 = vpack.c.bf16 %v2313_v9, %v2312_v8  ;;  %v2316_v58 = vld [vmem:[#allocation61_spill] sm:$0xff]  ;;  %v2327_v14 = vld [vmem:[#allocation70_spill] sm:$0xff] }
  0x92   : > { %v743_v5 = vpack.c.bf16 %v2317_v15, %v2316_v58  ;;  %v2325_v8 = vld [vmem:[#allocation73_spill] sm:$0xff]  ;;  %v2329_v58 = vld [vmem:[#allocation72_spill] sm:$0xff] }
  0x93   : > { %674 = vmatpush1.bf16.msra.mxu0 %v673_v51  ;;  %v681_v51 = vpack.c.bf16 %v2319_v6, %v2318_v12  ;;  %v2330_v12 = vld [vmem:[#allocation75_spill] sm:$0xff] }
  0x94   : > { %738 = vmatpush1.bf16.msra.mxu1 %v737_v11  ;;  %676 = vmatprep.subr.bf16.mxu0 %v675_v13  ;;  %v2320_v11 = vld [vmem:[#allocation60_spill] sm:$0xff]  ;;  %v683_v13 = vpack.c.bf16 %v2323_v3, %v2322_v50  ;;  %v2331_v6 = vld [vmem:[#allocation79_spill] sm:$0xff]  ;;  %v2334_v50 = vld [vmem:[#allocation74_spill] sm:$0xff] }
  0x95   : > { %740 = vmatprep.subr.bf16.mxu1 %v739_v57  ;;  %v745_v4 = vpack.c.bf16 %v2321_v10, %v2320_v11  ;;  %v2324_v57 = vld [vmem:[#allocation69_spill] sm:$0xff]  ;;  %v2335_v3 = vld [vmem:[#allocation78_spill] sm:$0xff] }
  0x96   : > { %v747_v9 = vpack.c.bf16 %v2325_v8, %v2324_v57  ;;  %v2333_v11 = vld [vmem:[#allocation81_spill] sm:$0xff]  ;;  %v2337_v57 = vld [vmem:[#allocation80_spill] sm:$0xff] }
  0x97   : > { %678 = vmatpush1.bf16.msra.mxu0 %v677_v56  ;;  %v685_v56 = vpack.c.bf16 %v2327_v14, %v2326_v1  ;;  %v2338_v1 = vld [vmem:[#allocation83_spill] sm:$0xff] }
  0x98   : > { %742 = vmatpush1.bf16.msra.mxu1 %v741_v0  ;;  %680 = vmatprep.subr.bf16.mxu0 %v679_v2  ;;  %v2328_v0 = vld [vmem:[#allocation68_spill] sm:$0xff]  ;;  %v687_v2 = vpack.c.bf16 %v2331_v6, %v2330_v12  ;;  %v2339_v14 = vld [vmem:[#allocation87_spill] sm:$0xff]  ;;  %v2342_v12 = vld [vmem:[#allocation82_spill] sm:$0xff] }
  0x99   : > { %744 = vmatprep.subr.bf16.mxu1 %v743_v5  ;;  %v749_v15 = vpack.c.bf16 %v2329_v58, %v2328_v0  ;;  %v2332_v5 = vld [vmem:[#allocation77_spill] sm:$0xff]  ;;  %v2343_v6 = vld [vmem:[#allocation86_spill] sm:$0xff] }
  0x9a   : > { %v751_v10 = vpack.c.bf16 %v2333_v11, %v2332_v5  ;;  %v2341_v0 = vld [vmem:[#allocation89_spill] sm:$0xff]  ;;  %v2345_v5 = vld [vmem:[#allocation88_spill] sm:$0xff] }
  0x9b   : > { %682 = vmatpush1.bf16.msra.mxu0 %v681_v51  ;;  %v689_v51 = vpack.c.bf16 %v2335_v3, %v2334_v50  ;;  %v2346_v50 = vld [vmem:[#allocation91_spill] sm:$0xff] }
  0x9c   : > { %746 = vmatpush1.bf16.msra.mxu1 %v745_v4  ;;  %684 = vmatprep.subr.bf16.mxu0 %v683_v13  ;;  %v2336_v4 = vld [vmem:[#allocation76_spill] sm:$0xff]  ;;  %v691_v13 = vpack.c.bf16 %v2339_v14, %v2338_v1  ;;  %v2347_v3 = vld [vmem:[#allocation95_spill] sm:$0xff]  ;;  %v2350_v1 = vld [vmem:[#allocation90_spill] sm:$0xff] }
  0x9d   : > { %748 = vmatprep.subr.bf16.mxu1 %v747_v9  ;;  %v753_v8 = vpack.c.bf16 %v2337_v57, %v2336_v4  ;;  %v2340_v9 = vld [vmem:[#allocation85_spill] sm:$0xff]  ;;  %v2351_v14 = vld [vmem:[#allocation94_spill] sm:$0xff] }
  0x9e   : > { %v755_v58 = vpack.c.bf16 %v2341_v0, %v2340_v9  ;;  %v2349_v4 = vld [vmem:[#allocation97_spill] sm:$0xff]  ;;  %v2353_v9 = vld [vmem:[#allocation96_spill] sm:$0xff] }
  0x9f   : > { %686 = vmatpush1.bf16.msra.mxu0 %v685_v56  ;;  %v693_v56 = vpack.c.bf16 %v2343_v6, %v2342_v12  ;;  %v2354_v12 = vld [vmem:[#allocation99_spill] sm:$0xff] }
  0xa0   : > { %750 = vmatpush1.bf16.msra.mxu1 %v749_v15  ;;  %688 = vmatprep.subr.bf16.mxu0 %v687_v2  ;;  %v2344_v15 = vld [vmem:[#allocation84_spill] sm:$0xff]  ;;  %v695_v2 = vpack.c.bf16 %v2347_v3, %v2346_v50  ;;  %v2355_v6 = vld [vmem:[#allocation103_spill] sm:$0xff]  ;;  %v2358_v50 = vld [vmem:[#allocation98_spill] sm:$0xff] }
  0xa1   : > { %752 = vmatprep.subr.bf16.mxu1 %v751_v10  ;;  %v757_v11 = vpack.c.bf16 %v2345_v5, %v2344_v15  ;;  %v2348_v10 = vld [vmem:[#allocation93_spill] sm:$0xff]  ;;  %v2359_v3 = vld [vmem:[#allocation102_spill] sm:$0xff] }
  0xa2   : > { %v759_v57 = vpack.c.bf16 %v2349_v4, %v2348_v10  ;;  %v2357_v15 = vld [vmem:[#allocation105_spill] sm:$0xff]  ;;  %v2361_v10 = vld [vmem:[#allocation104_spill] sm:$0xff] }
  0xa3   : > { %690 = vmatpush1.bf16.msra.mxu0 %v689_v51  ;;  %v697_v51 = vpack.c.bf16 %v2351_v14, %v2350_v1  ;;  %v2362_v1 = vld [vmem:[#allocation107_spill] sm:$0xff] }
  0xa4   : > { %754 = vmatpush1.bf16.msra.mxu1 %v753_v8  ;;  %692 = vmatprep.subr.bf16.mxu0 %v691_v13  ;;  %v2352_v8 = vld [vmem:[#allocation92_spill] sm:$0xff]  ;;  %v699_v13 = vpack.c.bf16 %v2355_v6, %v2354_v12  ;;  %v2363_v14 = vld [vmem:[#allocation111_spill] sm:$0xff]  ;;  %v2366_v12 = vld [vmem:[#allocation106_spill] sm:$0xff] }
  0xa5   : > { %756 = vmatprep.subr.bf16.mxu1 %v755_v58  ;;  %v761_v0 = vpack.c.bf16 %v2353_v9, %v2352_v8  ;;  %v2356_v58 = vld [vmem:[#allocation101_spill] sm:$0xff]  ;;  %v2367_v6 = vld [vmem:[#allocation110_spill] sm:$0xff] }
  0xa6   : > { %v763_v5 = vpack.c.bf16 %v2357_v15, %v2356_v58  ;;  %v2365_v8 = vld [vmem:[#allocation113_spill] sm:$0xff]  ;;  %v2369_v58 = vld [vmem:[#allocation112_spill] sm:$0xff] }
  0xa7   : > { %694 = vmatpush1.bf16.msra.mxu0 %v693_v56  ;;  %v701_v56 = vpack.c.bf16 %v2359_v3, %v2358_v50  ;;  %v2370_v50 = vld [vmem:[#allocation115_spill] sm:$0xff] }
  0xa8   : > { %758 = vmatpush1.bf16.msra.mxu1 %v757_v11  ;;  %696 = vmatprep.subr.bf16.mxu0 %v695_v2  ;;  %v2360_v11 = vld [vmem:[#allocation100_spill] sm:$0xff]  ;;  %v703_v2 = vpack.c.bf16 %v2363_v14, %v2362_v1  ;;  %v2371_v3 = vld [vmem:[#allocation119_spill] sm:$0xff]  ;;  %v2374_v1 = vld [vmem:[#allocation114_spill] sm:$0xff] }
  0xa9   : > { %760 = vmatprep.subr.bf16.mxu1 %v759_v57  ;;  %v765_v4 = vpack.c.bf16 %v2361_v10, %v2360_v11  ;;  %v2364_v57 = vld [vmem:[#allocation109_spill] sm:$0xff]  ;;  %v2375_v14 = vld [vmem:[#allocation118_spill] sm:$0xff] }
  0xaa   : > { %v767_v9 = vpack.c.bf16 %v2365_v8, %v2364_v57  ;;  %v2373_v11 = vld [vmem:[#allocation121_spill] sm:$0xff]  ;;  %v2377_v57 = vld [vmem:[#allocation120_spill] sm:$0xff] }
  0xab   : > { %698 = vmatpush1.bf16.msra.mxu0 %v697_v51  ;;  %v705_v51 = vpack.c.bf16 %v2367_v6, %v2366_v12  ;;  %v2378_v12 = vld [vmem:[#allocation123_spill] sm:$0xff] }
  0xac   : > { %762 = vmatpush1.bf16.msra.mxu1 %v761_v0  ;;  %700 = vmatprep.subr.bf16.mxu0 %v699_v13  ;;  %v2368_v0 = vld [vmem:[#allocation108_spill] sm:$0xff]  ;;  %v707_v13 = vpack.c.bf16 %v2371_v3, %v2370_v50  ;;  %v2379_v6 = vld [vmem:[#allocation127_spill] sm:$0xff]  ;;  %v2382_v50 = vld [vmem:[#allocation122_spill] sm:$0xff] }
  0xad   : > { %764 = vmatprep.subr.bf16.mxu1 %v763_v5  ;;  %v769_v15 = vpack.c.bf16 %v2369_v58, %v2368_v0  ;;  %v2372_v5 = vld [vmem:[#allocation117_spill] sm:$0xff]  ;;  %v2383_v3 = vld [vmem:[#allocation126_spill] sm:$0xff] }
  0xae   : > { %v771_v10 = vpack.c.bf16 %v2373_v11, %v2372_v5  ;;  %v2381_v0 = vld [vmem:[#allocation129_spill] sm:$0xff]  ;;  %v2385_v5 = vld [vmem:[#allocation128_spill] sm:$0xff] }
  0xaf   : > { %702 = vmatpush1.bf16.msra.mxu0 %v701_v56  ;;  %v709_v56 = vpack.c.bf16 %v2375_v14, %v2374_v1 }
  0xb0   : > { %766 = vmatpush1.bf16.msra.mxu1 %v765_v4  ;;  %704 = vmatprep.subr.bf16.mxu0 %v703_v2  ;;  %v2376_v4 = vld [vmem:[#allocation116_spill] sm:$0xff]  ;;  %v711_v2 = vpack.c.bf16 %v2379_v6, %v2378_v12 }
  0xb1   : > { %768 = vmatprep.subr.bf16.mxu1 %v767_v9  ;;  %v773_v8 = vpack.c.bf16 %v2377_v57, %v2376_v4  ;;  %v2380_v9 = vld [vmem:[#allocation125_spill] sm:$0xff] }
  0xb2   : > { %v775_v58 = vpack.c.bf16 %v2381_v0, %v2380_v9 }
  0xb3   : > { %706 = vmatpush1.bf16.msra.mxu0 %v705_v51  ;;  %v713_v51 = vpack.c.bf16 %v2383_v3, %v2382_v50 }
  0xb4   : > { %770 = vmatpush1.bf16.msra.mxu1 %v769_v15  ;;  %708 = vmatprep.subr.bf16.mxu0 %v707_v13  ;;  %v2384_v15 = vld [vmem:[#allocation124_spill] sm:$0xff]  ;;  %v510_v13 = vlaneseq }
  0xb5   : > { %772 = vmatprep.subr.bf16.mxu1 %v771_v10  ;;  %v777_v11 = vpack.c.bf16 %v2385_v5, %v2384_v15 }
  0xb6   : > { %v511_v10 = vshrl.u32 %v510_v13, 7 }
  0xb7   : > { %710 = vmatpush1.bf16.msra.mxu0 %v709_v56  ;;  %v2386_v56 = vld [vmem:[#allocation152_spill] sm:$0xff] }
  0xb8   : > { %774 = vmatpush1.bf16.msra.mxu1 %v773_v8  ;;  %712 = vmatprep.subr.bf16.mxu0 %v711_v2  ;;  %v512_v1 = vsub.s32 0, %v511_v10  ;;  %v516_v14 = vsub.s32 1, %v511_v10  ;;  %v524_v6 = vsub.s32 3, %v511_v10 }
  0xb9   : > { %776 = vmatprep.subr.bf16.mxu1 %v775_v58 }
  0xba   : > { %v513_v4 = vrot.slane %v2386_v56, %v512_v1  ;;  %v517_v57 = vrot.slane %v2386_v56, %v516_v14 }
  0xbb   : > { %714 = vmatpush1.bf16.msra.mxu0 %v713_v51  ;;  %v525_v51 = vrot.slane %v2386_v56, %v524_v6 }
  0xbc   : > { %778 = vmatpush1.bf16.msra.mxu1 %v777_v11 }
  0xbe   : > { %432 = vmatmul.mubr.f32.vlgmr.msra.gmra.mrb[0].mxu0 %v1927_v7 }
  0xbf   : > { %503 = vmatmul.mubr.f32.vlgmr.msra.gmra.mrb[0].mxu1 %v1927_v7  ;;  %v520_v7 = vsub.s32 2, %v511_v10 }
  0xc1   : > { %v521_v5 = vrot.slane %v2386_v56, %v520_v7 }
 0x191   : > { %v433_v8 = vpop.f32.mrb[0].mxu0 }
 0x192   : > { %v504_v12 = vpop.f32.mrb[0].mxu1  ;;  %v530_v9 = vadd.f32 %v513_v4, %v433_v8  ;;  %v435_v2 = vpop.f32.mrb[1].mxu0 }
 0x193   : > { %v506_v0 = vpop.f32.mrb[1].mxu1  ;;  %v531_v58 = vadd.f32 %v517_v57, %v435_v2  ;;  %v532_v13 = vadd.f32 %v521_v5, %v504_v12 }
 0x194   : > { %v582_v50 = vmul.f32 -1.442695, %v530_v9  ;;  %v533_v15 = vadd.f32 %v525_v51, %v506_v0  ;;  %v2387_v0 = vld [vmem:[#allocation153_spill] sm:$0xff] }
 0x195   : > { %v583_v3 = vmul.f32 -1.442695, %v531_v58 }
 0x196   : > { %809 = vpow2.f32 %v582_v50  ;;  %v584_v11 = vmul.f32 -1.442695, %v533_v15 }
 0x197   : > { %811 = vpow2.f32 %v583_v3 }
 0x198   : > { %813 = vpow2.f32 %v584_v11 }
 0x199   : > { %815 = vtanh.f32 %v532_v13 }
 0x1a0   : > { %v810_v1 = vpop.eup %809 }
 0x1a1   : > { %v812_v14 = vpop.eup %811  ;;  %v537_v16 = vadd.f32 1.0, %v810_v1 }
 0x1a2   : > { %v543_v4 = vadd.f32 1.0, %v812_v14  ;;  %v814_v57 = vpop.eup %813 }
 0x1a3   : > { %817 = vrcp.f32 %v537_v16  ;;  %v816_v8 = vpop.eup %815  ;;  %v550_v2 = vadd.f32 1.0, %v814_v57 }
 0x1a4   : > { %819 = vrcp.f32 %v543_v4 }
 0x1a5   : > { %821 = vrcp.f32 %v550_v2 }
 0x1ad   : > { %v818_v6 = vpop.eup %817 }
 0x1ae   : > { %v820_v9 = vpop.eup %819  ;;  %v554_v10 = vmul.f32 %v818_v6, %v816_v8 }
 0x1af   : > { %v553_v58 = vmul.f32 %v2387_v0, %v820_v9  ;;  %v822_v12 = vpop.eup %821 }
 0x1b1   : > { %v555_v7 = vadd.f32 %v554_v10, %v553_v58  }
 0x1b3   : > { %823 = vtanh.f32 %v555_v7 }
 0x1ba   :  { %214 = sbr.rel (!%p212_p0) target bundleno = 91 (0x5b), region = 45 }
 0x1bd   : > { %v824_v50 = vpop.eup %823 }
 0x1be   : > { %v557_v6 = vmul.f32 %v824_v50, %v822_v12  }
 0x1c0   : > { %560 = vst [vmem:[%s559_s12] sm:$0xf] %v557_v6 }

// kernel: lstm_model_pallas.11
= control target key start
LH: loop header
LB: loop body
LE: loop exit
PB: predicated region body
PF: predicated region fallthrough
CT: control target
= control target key end

     0   :  { %s2049_s18 = smov 0   ;;  %s2330_s0 = inlined_call_operand.vmem [shape: f32[8,4,256], index: 0, kind: input, shape index: {}]   ;;  %s2331_s1 = inlined_call_operand.vmem [shape: f32[256,512], index: 1, kind: input, shape index: {}]   ;;  %s2332_s4 = inlined_call_operand.vmem [shape: f32[128,64], index: 4, kind: input, shape index: {}]   ;;  %s2333_s5 = inlined_call_operand.vmem [shape: f32[1,64], index: 5, kind: input, shape index: {}]   ;;  %s2334_s6 = inlined_call_operand.vmem [shape: f32[4,1], index: 6, kind: output, shape index: {}]   ;;  %s2335_s2 = inlined_call_operand.vmem [shape: f32[128,512], index: 2, kind: input, shape index: {}]   ;;  %s2336_s3 = inlined_call_operand.vmem [shape: f32[1,512], index: 3, kind: input, shape index: {}]  }
   0x1   :  { %v1083_v0 = vld [vmem:[%s2331_s1] sm:$0xff]  ;;  %v1088_v1 = vld [vmem:[%s2331_s1 + $0x8] sm:$0xff]  ;;  %v1093_v2 = vld [vmem:[%s2331_s1 + $0x10] sm:$0xff] }
   0x2   :  { %2339 = vst [vmem:[#allocation2_spill] sm:$0xff] %v1083_v0  ;;  %2340 = vst [vmem:[#allocation3_spill] sm:$0xff] %v1088_v1  ;;  %v1098_v3 = vld [vmem:[%s2331_s1 + $0x18] sm:$0xff]  ;;  %v1103_v4 = vld [vmem:[%s2331_s1 + $0x20] sm:$0xff] }
   0x3   :  { %2341 = vst [vmem:[#allocation4_spill] sm:$0xff] %v1093_v2  ;;  %2342 = vst [vmem:[#allocation5_spill] sm:$0xff] %v1098_v3  ;;  %v1108_v5 = vld [vmem:[%s2331_s1 + $0x28] sm:$0xff]  ;;  %v1113_v6 = vld [vmem:[%s2331_s1 + $0x30] sm:$0xff] }
   0x4   :  { %2343 = vst [vmem:[#allocation6_spill] sm:$0xff] %v1103_v4  ;;  %2344 = vst [vmem:[#allocation7_spill] sm:$0xff] %v1108_v5  ;;  %v1118_v7 = vld [vmem:[%s2331_s1 + $0x38] sm:$0xff]  ;;  %v1123_v8 = vld [vmem:[%s2331_s1 + $0x40] sm:$0xff] }
   0x5   :  { %2345 = vst [vmem:[#allocation8_spill] sm:$0xff] %v1113_v6  ;;  %2346 = vst [vmem:[#allocation9_spill] sm:$0xff] %v1118_v7  ;;  %v1128_v9 = vld [vmem:[%s2331_s1 + $0x48] sm:$0xff]  ;;  %v1133_v10 = vld [vmem:[%s2331_s1 + $0x50] sm:$0xff] }
   0x6   :  { %2347 = vst [vmem:[#allocation10_spill] sm:$0xff] %v1123_v8  ;;  %2348 = vst [vmem:[#allocation11_spill] sm:$0xff] %v1128_v9  ;;  %v1138_v11 = vld [vmem:[%s2331_s1 + $0x58] sm:$0xff]  ;;  %v1143_v12 = vld [vmem:[%s2331_s1 + $0x60] sm:$0xff] }
   0x7   :  { %2349 = vst [vmem:[#allocation12_spill] sm:$0xff] %v1133_v10  ;;  %2350 = vst [vmem:[#allocation13_spill] sm:$0xff] %v1138_v11  ;;  %v1148_v13 = vld [vmem:[%s2331_s1 + $0x68] sm:$0xff]  ;;  %v1153_v14 = vld [vmem:[%s2331_s1 + $0x70] sm:$0xff] }
   0x8   :  { %2351 = vst [vmem:[#allocation14_spill] sm:$0xff] %v1143_v12  ;;  %2352 = vst [vmem:[#allocation15_spill] sm:$0xff] %v1148_v13  ;;  %v1158_v15 = vld [vmem:[%s2331_s1 + $0x78] sm:$0xff]  ;;  %v1163_v16 = vld [vmem:[%s2331_s1 + $0x80] sm:$0xff] }
   0x9   :  { %2353 = vst [vmem:[#allocation16_spill] sm:$0xff] %v1153_v14  ;;  %2354 = vst [vmem:[#allocation17_spill] sm:$0xff] %v1158_v15  ;;  %v1168_v17 = vld [vmem:[%s2331_s1 + $0x88] sm:$0xff]  ;;  %v1173_v18 = vld [vmem:[%s2331_s1 + $0x90] sm:$0xff] }
   0xa   :  { %2355 = vst [vmem:[#allocation18_spill] sm:$0xff] %v1163_v16  ;;  %2356 = vst [vmem:[#allocation19_spill] sm:$0xff] %v1168_v17  ;;  %v1178_v19 = vld [vmem:[%s2331_s1 + $0x98] sm:$0xff]  ;;  %v1183_v20 = vld [vmem:[%s2331_s1 + $0xa0] sm:$0xff] }
   0xb   :  { %2357 = vst [vmem:[#allocation20_spill] sm:$0xff] %v1173_v18  ;;  %2358 = vst [vmem:[#allocation21_spill] sm:$0xff] %v1178_v19  ;;  %v1188_v21 = vld [vmem:[%s2331_s1 + $0xa8] sm:$0xff]  ;;  %v1193_v22 = vld [vmem:[%s2331_s1 + $0xb0] sm:$0xff] }
   0xc   :  { %2359 = vst [vmem:[#allocation22_spill] sm:$0xff] %v1183_v20  ;;  %2360 = vst [vmem:[#allocation23_spill] sm:$0xff] %v1188_v21  ;;  %v1198_v23 = vld [vmem:[%s2331_s1 + $0xb8] sm:$0xff]  ;;  %v1203_v24 = vld [vmem:[%s2331_s1 + $0xc0] sm:$0xff] }
   0xd   :  { %2361 = vst [vmem:[#allocation24_spill] sm:$0xff] %v1193_v22  ;;  %2362 = vst [vmem:[#allocation25_spill] sm:$0xff] %v1198_v23  ;;  %v1208_v25 = vld [vmem:[%s2331_s1 + $0xc8] sm:$0xff]  ;;  %v1213_v26 = vld [vmem:[%s2331_s1 + $0xd0] sm:$0xff] }
   0xe   :  { %2363 = vst [vmem:[#allocation26_spill] sm:$0xff] %v1203_v24  ;;  %2364 = vst [vmem:[#allocation27_spill] sm:$0xff] %v1208_v25  ;;  %v1218_v27 = vld [vmem:[%s2331_s1 + $0xd8] sm:$0xff]  ;;  %v1223_v28 = vld [vmem:[%s2331_s1 + $0xe0] sm:$0xff] }
   0xf   :  { %2365 = vst [vmem:[#allocation28_spill] sm:$0xff] %v1213_v26  ;;  %2366 = vst [vmem:[#allocation29_spill] sm:$0xff] %v1218_v27  ;;  %v1228_v29 = vld [vmem:[%s2331_s1 + $0xe8] sm:$0xff]  ;;  %v1233_v30 = vld [vmem:[%s2331_s1 + $0xf0] sm:$0xff] }
  0x10   :  { %2367 = vst [vmem:[#allocation30_spill] sm:$0xff] %v1223_v28  ;;  %2368 = vst [vmem:[#allocation31_spill] sm:$0xff] %v1228_v29  ;;  %v1238_v31 = vld [vmem:[%s2331_s1 + $0xf8] sm:$0xff]  ;;  %v1243_v32 = vld [vmem:[%s2331_s1 + $0x100] sm:$0xff] }
  0x11   :  { %2369 = vst [vmem:[#allocation32_spill] sm:$0xff] %v1233_v30  ;;  %2370 = vst [vmem:[#allocation33_spill] sm:$0xff] %v1238_v31  ;;  %v1248_v33 = vld [vmem:[%s2331_s1 + $0x108] sm:$0xff]  ;;  %v1253_v34 = vld [vmem:[%s2331_s1 + $0x110] sm:$0xff] }
  0x12   :  { %2371 = vst [vmem:[#allocation34_spill] sm:$0xff] %v1243_v32  ;;  %2372 = vst [vmem:[#allocation35_spill] sm:$0xff] %v1248_v33  ;;  %v1258_v35 = vld [vmem:[%s2331_s1 + $0x118] sm:$0xff]  ;;  %v1263_v36 = vld [vmem:[%s2331_s1 + $0x120] sm:$0xff] }
  0x13   :  { %2373 = vst [vmem:[#allocation36_spill] sm:$0xff] %v1253_v34  ;;  %2374 = vst [vmem:[#allocation37_spill] sm:$0xff] %v1258_v35  ;;  %v1268_v37 = vld [vmem:[%s2331_s1 + $0x128] sm:$0xff]  ;;  %v1273_v38 = vld [vmem:[%s2331_s1 + $0x130] sm:$0xff] }
  0x14   :  { %2375 = vst [vmem:[#allocation38_spill] sm:$0xff] %v1263_v36  ;;  %2376 = vst [vmem:[#allocation39_spill] sm:$0xff] %v1268_v37  ;;  %v1278_v39 = vld [vmem:[%s2331_s1 + $0x138] sm:$0xff]  ;;  %v1283_v40 = vld [vmem:[%s2331_s1 + $0x140] sm:$0xff] }
  0x15   :  { %2377 = vst [vmem:[#allocation40_spill] sm:$0xff] %v1273_v38  ;;  %2378 = vst [vmem:[#allocation41_spill] sm:$0xff] %v1278_v39  ;;  %v1288_v41 = vld [vmem:[%s2331_s1 + $0x148] sm:$0xff]  ;;  %v1293_v42 = vld [vmem:[%s2331_s1 + $0x150] sm:$0xff] }
  0x16   :  { %2379 = vst [vmem:[#allocation42_spill] sm:$0xff] %v1283_v40  ;;  %2380 = vst [vmem:[#allocation43_spill] sm:$0xff] %v1288_v41  ;;  %v1298_v43 = vld [vmem:[%s2331_s1 + $0x158] sm:$0xff]  ;;  %v1303_v44 = vld [vmem:[%s2331_s1 + $0x160] sm:$0xff] }
  0x17   :  { %2381 = vst [vmem:[#allocation44_spill] sm:$0xff] %v1293_v42  ;;  %2382 = vst [vmem:[#allocation45_spill] sm:$0xff] %v1298_v43  ;;  %v1308_v45 = vld [vmem:[%s2331_s1 + $0x168] sm:$0xff]  ;;  %v1313_v46 = vld [vmem:[%s2331_s1 + $0x170] sm:$0xff] }
  0x18   :  { %2383 = vst [vmem:[#allocation46_spill] sm:$0xff] %v1303_v44  ;;  %2384 = vst [vmem:[#allocation47_spill] sm:$0xff] %v1308_v45  ;;  %v1318_v47 = vld [vmem:[%s2331_s1 + $0x178] sm:$0xff]  ;;  %v1323_v48 = vld [vmem:[%s2331_s1 + $0x180] sm:$0xff] }
  0x19   :  { %2385 = vst [vmem:[#allocation48_spill] sm:$0xff] %v1313_v46  ;;  %2386 = vst [vmem:[#allocation49_spill] sm:$0xff] %v1318_v47  ;;  %v1328_v49 = vld [vmem:[%s2331_s1 + $0x188] sm:$0xff]  ;;  %v1333_v50 = vld [vmem:[%s2331_s1 + $0x190] sm:$0xff] }
  0x1a   :  { %2387 = vst [vmem:[#allocation50_spill] sm:$0xff] %v1323_v48  ;;  %2388 = vst [vmem:[#allocation51_spill] sm:$0xff] %v1328_v49  ;;  %v1338_v51 = vld [vmem:[%s2331_s1 + $0x198] sm:$0xff]  ;;  %v1343_v52 = vld [vmem:[%s2331_s1 + $0x1a0] sm:$0xff] }
  0x1b   :  { %2389 = vst [vmem:[#allocation52_spill] sm:$0xff] %v1333_v50  ;;  %2390 = vst [vmem:[#allocation53_spill] sm:$0xff] %v1338_v51  ;;  %v1348_v53 = vld [vmem:[%s2331_s1 + $0x1a8] sm:$0xff]  ;;  %v1353_v54 = vld [vmem:[%s2331_s1 + $0x1b0] sm:$0xff] }
  0x1c   :  { %2391 = vst [vmem:[#allocation54_spill] sm:$0xff] %v1343_v52  ;;  %2392 = vst [vmem:[#allocation55_spill] sm:$0xff] %v1348_v53  ;;  %v1358_v55 = vld [vmem:[%s2331_s1 + $0x1b8] sm:$0xff]  ;;  %v1363_v56 = vld [vmem:[%s2331_s1 + $0x1c0] sm:$0xff] }
  0x1d   :  { %2393 = vst [vmem:[#allocation56_spill] sm:$0xff] %v1353_v54  ;;  %2394 = vst [vmem:[#allocation57_spill] sm:$0xff] %v1358_v55  ;;  %v1368_v57 = vld [vmem:[%s2331_s1 + $0x1c8] sm:$0xff]  ;;  %v1373_v58 = vld [vmem:[%s2331_s1 + $0x1d0] sm:$0xff] }
  0x1e   :  { %2395 = vst [vmem:[#allocation58_spill] sm:$0xff] %v1363_v56  ;;  %2396 = vst [vmem:[#allocation59_spill] sm:$0xff] %v1368_v57  ;;  %v1378_v59 = vld [vmem:[%s2331_s1 + $0x1d8] sm:$0xff]  ;;  %v1383_v60 = vld [vmem:[%s2331_s1 + $0x1e0] sm:$0xff] }
  0x1f   :  { %2397 = vst [vmem:[#allocation60_spill] sm:$0xff] %v1373_v58  ;;  %2398 = vst [vmem:[#allocation61_spill] sm:$0xff] %v1378_v59  ;;  %v1388_v61 = vld [vmem:[%s2331_s1 + $0x1e8] sm:$0xff]  ;;  %v1393_v62 = vld [vmem:[%s2331_s1 + $0x1f0] sm:$0xff] }
  0x20   :  { %2399 = vst [vmem:[#allocation62_spill] sm:$0xff] %v1383_v60  ;;  %2400 = vst [vmem:[#allocation63_spill] sm:$0xff] %v1388_v61  ;;  %v1398_v63 = vld [vmem:[%s2331_s1 + $0x1f8] sm:$0xff]  ;;  %v1403_v58 = vld [vmem:[%s2331_s1 + $0x200] sm:$0xff] }
  0x21   :  { %2401 = vst [vmem:[#allocation64_spill] sm:$0xff] %v1393_v62  ;;  %2402 = vst [vmem:[#allocation65_spill] sm:$0xff] %v1398_v63  ;;  %v1408_v60 = vld [vmem:[%s2331_s1 + $0x208] sm:$0xff]  ;;  %v1413_v56 = vld [vmem:[%s2331_s1 + $0x210] sm:$0xff] }
  0x22   :  { %2403 = vst [vmem:[#allocation66_spill] sm:$0xff] %v1403_v58  ;;  %2404 = vst [vmem:[#allocation67_spill] sm:$0xff] %v1408_v60  ;;  %v1418_v62 = vld [vmem:[%s2331_s1 + $0x218] sm:$0xff]  ;;  %v1423_v63 = vld [vmem:[%s2331_s1 + $0x220] sm:$0xff] }
  0x23   :  { %2405 = vst [vmem:[#allocation68_spill] sm:$0xff] %v1413_v56  ;;  %2406 = vst [vmem:[#allocation69_spill] sm:$0xff] %v1418_v62  ;;  %v1428_v58 = vld [vmem:[%s2331_s1 + $0x228] sm:$0xff]  ;;  %v1433_v60 = vld [vmem:[%s2331_s1 + $0x230] sm:$0xff] }
  0x24   :  { %2407 = vst [vmem:[#allocation70_spill] sm:$0xff] %v1423_v63  ;;  %2408 = vst [vmem:[#allocation71_spill] sm:$0xff] %v1428_v58  ;;  %v1438_v56 = vld [vmem:[%s2331_s1 + $0x238] sm:$0xff]  ;;  %v1443_v62 = vld [vmem:[%s2331_s1 + $0x240] sm:$0xff] }
  0x25   :  { %2409 = vst [vmem:[#allocation72_spill] sm:$0xff] %v1433_v60  ;;  %2410 = vst [vmem:[#allocation73_spill] sm:$0xff] %v1438_v56  ;;  %v1448_v63 = vld [vmem:[%s2331_s1 + $0x248] sm:$0xff]  ;;  %v1453_v58 = vld [vmem:[%s2331_s1 + $0x250] sm:$0xff] }
  0x26   :  { %2411 = vst [vmem:[#allocation74_spill] sm:$0xff] %v1443_v62  ;;  %2412 = vst [vmem:[#allocation75_spill] sm:$0xff] %v1448_v63  ;;  %v1458_v60 = vld [vmem:[%s2331_s1 + $0x258] sm:$0xff]  ;;  %v1463_v56 = vld [vmem:[%s2331_s1 + $0x260] sm:$0xff] }
  0x27   :  { %2413 = vst [vmem:[#allocation76_spill] sm:$0xff] %v1453_v58  ;;  %2414 = vst [vmem:[#allocation77_spill] sm:$0xff] %v1458_v60  ;;  %v1468_v62 = vld [vmem:[%s2331_s1 + $0x268] sm:$0xff]  ;;  %v1473_v63 = vld [vmem:[%s2331_s1 + $0x270] sm:$0xff] }
  0x28   :  { %2415 = vst [vmem:[#allocation78_spill] sm:$0xff] %v1463_v56  ;;  %2416 = vst [vmem:[#allocation79_spill] sm:$0xff] %v1468_v62  ;;  %v1478_v58 = vld [vmem:[%s2331_s1 + $0x278] sm:$0xff]  ;;  %v1483_v60 = vld [vmem:[%s2331_s1 + $0x280] sm:$0xff] }
  0x29   :  { %2417 = vst [vmem:[#allocation80_spill] sm:$0xff] %v1473_v63  ;;  %2418 = vst [vmem:[#allocation81_spill] sm:$0xff] %v1478_v58  ;;  %v1488_v56 = vld [vmem:[%s2331_s1 + $0x288] sm:$0xff]  ;;  %v1493_v62 = vld [vmem:[%s2331_s1 + $0x290] sm:$0xff] }
  0x2a   :  { %2419 = vst [vmem:[#allocation82_spill] sm:$0xff] %v1483_v60  ;;  %2420 = vst [vmem:[#allocation83_spill] sm:$0xff] %v1488_v56  ;;  %v1498_v63 = vld [vmem:[%s2331_s1 + $0x298] sm:$0xff]  ;;  %v1503_v58 = vld [vmem:[%s2331_s1 + $0x2a0] sm:$0xff] }
  0x2b   :  { %2421 = vst [vmem:[#allocation84_spill] sm:$0xff] %v1493_v62  ;;  %2422 = vst [vmem:[#allocation85_spill] sm:$0xff] %v1498_v63  ;;  %v1508_v60 = vld [vmem:[%s2331_s1 + $0x2a8] sm:$0xff]  ;;  %v1513_v56 = vld [vmem:[%s2331_s1 + $0x2b0] sm:$0xff] }
  0x2c   :  { %2423 = vst [vmem:[#allocation86_spill] sm:$0xff] %v1503_v58  ;;  %2424 = vst [vmem:[#allocation87_spill] sm:$0xff] %v1508_v60  ;;  %v1518_v62 = vld [vmem:[%s2331_s1 + $0x2b8] sm:$0xff]  ;;  %v1523_v63 = vld [vmem:[%s2331_s1 + $0x2c0] sm:$0xff] }
  0x2d   :  { %2425 = vst [vmem:[#allocation88_spill] sm:$0xff] %v1513_v56  ;;  %2426 = vst [vmem:[#allocation89_spill] sm:$0xff] %v1518_v62  ;;  %v1528_v58 = vld [vmem:[%s2331_s1 + $0x2c8] sm:$0xff]  ;;  %v1533_v60 = vld [vmem:[%s2331_s1 + $0x2d0] sm:$0xff] }
  0x2e   :  { %2427 = vst [vmem:[#allocation90_spill] sm:$0xff] %v1523_v63  ;;  %2428 = vst [vmem:[#allocation91_spill] sm:$0xff] %v1528_v58  ;;  %v1538_v56 = vld [vmem:[%s2331_s1 + $0x2d8] sm:$0xff]  ;;  %v1543_v62 = vld [vmem:[%s2331_s1 + $0x2e0] sm:$0xff] }
  0x2f   :  { %2429 = vst [vmem:[#allocation92_spill] sm:$0xff] %v1533_v60  ;;  %2430 = vst [vmem:[#allocation93_spill] sm:$0xff] %v1538_v56  ;;  %v1548_v63 = vld [vmem:[%s2331_s1 + $0x2e8] sm:$0xff]  ;;  %v1553_v58 = vld [vmem:[%s2331_s1 + $0x2f0] sm:$0xff] }
  0x30   :  { %2431 = vst [vmem:[#allocation94_spill] sm:$0xff] %v1543_v62  ;;  %2432 = vst [vmem:[#allocation95_spill] sm:$0xff] %v1548_v63  ;;  %v1558_v60 = vld [vmem:[%s2331_s1 + $0x2f8] sm:$0xff]  ;;  %v1563_v56 = vld [vmem:[%s2331_s1 + $0x300] sm:$0xff] }
  0x31   :  { %2433 = vst [vmem:[#allocation96_spill] sm:$0xff] %v1553_v58  ;;  %2434 = vst [vmem:[#allocation97_spill] sm:$0xff] %v1558_v60  ;;  %v1568_v62 = vld [vmem:[%s2331_s1 + $0x308] sm:$0xff]  ;;  %v1573_v63 = vld [vmem:[%s2331_s1 + $0x310] sm:$0xff] }
  0x32   :  { %2435 = vst [vmem:[#allocation98_spill] sm:$0xff] %v1563_v56  ;;  %2436 = vst [vmem:[#allocation99_spill] sm:$0xff] %v1568_v62  ;;  %v1578_v58 = vld [vmem:[%s2331_s1 + $0x318] sm:$0xff]  ;;  %v1583_v60 = vld [vmem:[%s2331_s1 + $0x320] sm:$0xff] }
  0x33   :  { %2437 = vst [vmem:[#allocation100_spill] sm:$0xff] %v1573_v63  ;;  %2438 = vst [vmem:[#allocation101_spill] sm:$0xff] %v1578_v58  ;;  %v1588_v56 = vld [vmem:[%s2331_s1 + $0x328] sm:$0xff]  ;;  %v1593_v62 = vld [vmem:[%s2331_s1 + $0x330] sm:$0xff] }
  0x34   :  { %2439 = vst [vmem:[#allocation102_spill] sm:$0xff] %v1583_v60  ;;  %2440 = vst [vmem:[#allocation103_spill] sm:$0xff] %v1588_v56  ;;  %v1598_v63 = vld [vmem:[%s2331_s1 + $0x338] sm:$0xff]  ;;  %v1603_v58 = vld [vmem:[%s2331_s1 + $0x340] sm:$0xff] }
  0x35   :  { %2441 = vst [vmem:[#allocation104_spill] sm:$0xff] %v1593_v62  ;;  %2442 = vst [vmem:[#allocation105_spill] sm:$0xff] %v1598_v63  ;;  %v1608_v60 = vld [vmem:[%s2331_s1 + $0x348] sm:$0xff]  ;;  %v1613_v56 = vld [vmem:[%s2331_s1 + $0x350] sm:$0xff] }
  0x36   :  { %2443 = vst [vmem:[#allocation106_spill] sm:$0xff] %v1603_v58  ;;  %2444 = vst [vmem:[#allocation107_spill] sm:$0xff] %v1608_v60  ;;  %v1618_v62 = vld [vmem:[%s2331_s1 + $0x358] sm:$0xff]  ;;  %v1623_v63 = vld [vmem:[%s2331_s1 + $0x360] sm:$0xff] }
  0x37   :  { %2445 = vst [vmem:[#allocation108_spill] sm:$0xff] %v1613_v56  ;;  %2446 = vst [vmem:[#allocation109_spill] sm:$0xff] %v1618_v62  ;;  %v1628_v58 = vld [vmem:[%s2331_s1 + $0x368] sm:$0xff]  ;;  %v1633_v60 = vld [vmem:[%s2331_s1 + $0x370] sm:$0xff] }
  0x38   :  { %2447 = vst [vmem:[#allocation110_spill] sm:$0xff] %v1623_v63  ;;  %2448 = vst [vmem:[#allocation111_spill] sm:$0xff] %v1628_v58  ;;  %v1638_v56 = vld [vmem:[%s2331_s1 + $0x378] sm:$0xff]  ;;  %v1643_v62 = vld [vmem:[%s2331_s1 + $0x380] sm:$0xff] }
  0x39   :  { %2449 = vst [vmem:[#allocation112_spill] sm:$0xff] %v1633_v60  ;;  %2450 = vst [vmem:[#allocation113_spill] sm:$0xff] %v1638_v56  ;;  %v1648_v63 = vld [vmem:[%s2331_s1 + $0x388] sm:$0xff]  ;;  %v1653_v58 = vld [vmem:[%s2331_s1 + $0x390] sm:$0xff] }
  0x3a   :  { %2451 = vst [vmem:[#allocation114_spill] sm:$0xff] %v1643_v62  ;;  %2452 = vst [vmem:[#allocation115_spill] sm:$0xff] %v1648_v63  ;;  %v1658_v60 = vld [vmem:[%s2331_s1 + $0x398] sm:$0xff]  ;;  %v1663_v56 = vld [vmem:[%s2331_s1 + $0x3a0] sm:$0xff] }
  0x3b   :  { %2453 = vst [vmem:[#allocation116_spill] sm:$0xff] %v1653_v58  ;;  %2454 = vst [vmem:[#allocation117_spill] sm:$0xff] %v1658_v60  ;;  %v1668_v62 = vld [vmem:[%s2331_s1 + $0x3a8] sm:$0xff]  ;;  %v1673_v63 = vld [vmem:[%s2331_s1 + $0x3b0] sm:$0xff] }
  0x3c   :  { %2455 = vst [vmem:[#allocation118_spill] sm:$0xff] %v1663_v56  ;;  %2456 = vst [vmem:[#allocation119_spill] sm:$0xff] %v1668_v62  ;;  %v1678_v58 = vld [vmem:[%s2331_s1 + $0x3b8] sm:$0xff]  ;;  %v1683_v60 = vld [vmem:[%s2331_s1 + $0x3c0] sm:$0xff] }
  0x3d   :  { %2457 = vst [vmem:[#allocation120_spill] sm:$0xff] %v1673_v63  ;;  %2458 = vst [vmem:[#allocation121_spill] sm:$0xff] %v1678_v58  ;;  %v1688_v56 = vld [vmem:[%s2331_s1 + $0x3c8] sm:$0xff]  ;;  %v1693_v62 = vld [vmem:[%s2331_s1 + $0x3d0] sm:$0xff] }
  0x3e   :  { %2459 = vst [vmem:[#allocation122_spill] sm:$0xff] %v1683_v60  ;;  %2460 = vst [vmem:[#allocation123_spill] sm:$0xff] %v1688_v56  ;;  %v1698_v63 = vld [vmem:[%s2331_s1 + $0x3d8] sm:$0xff]  ;;  %v1703_v58 = vld [vmem:[%s2331_s1 + $0x3e0] sm:$0xff] }
  0x3f   :  { %2461 = vst [vmem:[#allocation124_spill] sm:$0xff] %v1693_v62  ;;  %2462 = vst [vmem:[#allocation125_spill] sm:$0xff] %v1698_v63  ;;  %v1708_v60 = vld [vmem:[%s2331_s1 + $0x3e8] sm:$0xff]  ;;  %v1713_v56 = vld [vmem:[%s2331_s1 + $0x3f0] sm:$0xff] }
  0x40   :  { %2463 = vst [vmem:[#allocation126_spill] sm:$0xff] %v1703_v58  ;;  %2464 = vst [vmem:[#allocation127_spill] sm:$0xff] %v1708_v60  ;;  %v1718_v62 = vld [vmem:[%s2331_s1 + $0x3f8] sm:$0xff]  ;;  %v1723_v63 = vld [vmem:[%s2335_s2] sm:$0xff] }
  0x41   :  { %2465 = vst [vmem:[#allocation128_spill] sm:$0xff] %v1713_v56  ;;  %2466 = vst [vmem:[#allocation129_spill] sm:$0xff] %v1718_v62  ;;  %v1728_v58 = vld [vmem:[%s2335_s2 + $0x8] sm:$0xff]  ;;  %v1733_v60 = vld [vmem:[%s2335_s2 + $0x10] sm:$0xff] }
  0x42   :  { %2467 = vst [vmem:[#allocation130_spill] sm:$0xff] %v1728_v58  ;;  %v1738_v56 = vld [vmem:[%s2335_s2 + $0x18] sm:$0xff]  ;;  %v1743_v62 = vld [vmem:[%s2335_s2 + $0x20] sm:$0xff]  ;;  %v1748_v59 = vld [vmem:[%s2335_s2 + $0x28] sm:$0xff] }
  0x43   :  { %2468 = vst [vmem:[#allocation131_spill] sm:$0xff] %v1738_v56  ;;  %v1753_v61 = vld [vmem:[%s2335_s2 + $0x30] sm:$0xff]  ;;  %v1758_v57 = vld [vmem:[%s2335_s2 + $0x38] sm:$0xff]  ;;  %v1763_v54 = vld [vmem:[%s2335_s2 + $0x40] sm:$0xff] }
  0x44   :  { %2469 = vst [vmem:[#allocation132_spill] sm:$0xff] %v1758_v57  ;;  %v1768_v50 = vld [vmem:[%s2335_s2 + $0x48] sm:$0xff]  ;;  %v1773_v52 = vld [vmem:[%s2335_s2 + $0x50] sm:$0xff]  ;;  %v1778_v48 = vld [vmem:[%s2335_s2 + $0x58] sm:$0xff] }
  0x45   :  { %2470 = vst [vmem:[#allocation133_spill] sm:$0xff] %v1768_v50  ;;  %v1783_v55 = vld [vmem:[%s2335_s2 + $0x60] sm:$0xff]  ;;  %v1788_v51 = vld [vmem:[%s2335_s2 + $0x68] sm:$0xff]  ;;  %v1793_v53 = vld [vmem:[%s2335_s2 + $0x70] sm:$0xff] }
  0x46   :  { %2471 = vst [vmem:[#allocation134_spill] sm:$0xff] %v1788_v51  ;;  %v1798_v49 = vld [vmem:[%s2335_s2 + $0x78] sm:$0xff]  ;;  %v1803_v46 = vld [vmem:[%s2335_s2 + $0x80] sm:$0xff]  ;;  %v1808_v42 = vld [vmem:[%s2335_s2 + $0x88] sm:$0xff] }
  0x47   :  { %v1813_v44 = vld [vmem:[%s2335_s2 + $0x90] sm:$0xff]  ;;  %v1818_v40 = vld [vmem:[%s2335_s2 + $0x98] sm:$0xff]  ;;  %v1823_v47 = vld [vmem:[%s2335_s2 + $0xa0] sm:$0xff] }
  0x48   :  { %v1828_v43 = vld [vmem:[%s2335_s2 + $0xa8] sm:$0xff]  ;;  %v1833_v45 = vld [vmem:[%s2335_s2 + $0xb0] sm:$0xff]  ;;  %v1838_v41 = vld [vmem:[%s2335_s2 + $0xb8] sm:$0xff] }
  0x49   :  { %v1843_v38 = vld [vmem:[%s2335_s2 + $0xc0] sm:$0xff]  ;;  %v1848_v34 = vld [vmem:[%s2335_s2 + $0xc8] sm:$0xff]  ;;  %v1853_v36 = vld [vmem:[%s2335_s2 + $0xd0] sm:$0xff] }
  0x4a   :  { %v1858_v32 = vld [vmem:[%s2335_s2 + $0xd8] sm:$0xff]  ;;  %v1863_v39 = vld [vmem:[%s2335_s2 + $0xe0] sm:$0xff]  ;;  %v1868_v35 = vld [vmem:[%s2335_s2 + $0xe8] sm:$0xff] }
  0x4b   :  { %v1873_v37 = vld [vmem:[%s2335_s2 + $0xf0] sm:$0xff]  ;;  %v1878_v33 = vld [vmem:[%s2335_s2 + $0xf8] sm:$0xff]  ;;  %v1883_v30 = vld [vmem:[%s2335_s2 + $0x100] sm:$0xff] }
  0x4c   :  { %v1888_v26 = vld [vmem:[%s2335_s2 + $0x108] sm:$0xff]  ;;  %v1893_v28 = vld [vmem:[%s2335_s2 + $0x110] sm:$0xff]  ;;  %v1898_v24 = vld [vmem:[%s2335_s2 + $0x118] sm:$0xff] }
  0x4d   :  { %v1903_v31 = vld [vmem:[%s2335_s2 + $0x120] sm:$0xff]  ;;  %v1908_v27 = vld [vmem:[%s2335_s2 + $0x128] sm:$0xff]  ;;  %v1913_v29 = vld [vmem:[%s2335_s2 + $0x130] sm:$0xff] }
  0x4e   :  { %v1918_v25 = vld [vmem:[%s2335_s2 + $0x138] sm:$0xff]  ;;  %v1923_v22 = vld [vmem:[%s2335_s2 + $0x140] sm:$0xff]  ;;  %v1928_v18 = vld [vmem:[%s2335_s2 + $0x148] sm:$0xff] }
  0x4f   :  { %v1933_v20 = vld [vmem:[%s2335_s2 + $0x150] sm:$0xff]  ;;  %v1938_v16 = vld [vmem:[%s2335_s2 + $0x158] sm:$0xff]  ;;  %v1943_v23 = vld [vmem:[%s2335_s2 + $0x160] sm:$0xff] }
  0x50   :  { %2472 = vst [vmem:[#allocation135_spill] sm:$0xff] %v1938_v16  ;;  %v1948_v19 = vld [vmem:[%s2335_s2 + $0x168] sm:$0xff]  ;;  %v1953_v21 = vld [vmem:[%s2335_s2 + $0x170] sm:$0xff]  ;;  %v1958_v17 = vld [vmem:[%s2335_s2 + $0x178] sm:$0xff] }
  0x51   :  { %v1963_v14 = vld [vmem:[%s2335_s2 + $0x180] sm:$0xff]  ;;  %v1968_v10 = vld [vmem:[%s2335_s2 + $0x188] sm:$0xff]  ;;  %v1973_v12 = vld [vmem:[%s2335_s2 + $0x190] sm:$0xff] }
  0x52   :  { %2473 = vst [vmem:[#allocation136_spill] sm:$0xff] %v1963_v14  ;;  %2474 = vst [vmem:[#allocation137_spill] sm:$0xff] %v1968_v10  ;;  %v1978_v8 = vld [vmem:[%s2335_s2 + $0x198] sm:$0xff]  ;;  %v1983_v15 = vld [vmem:[%s2335_s2 + $0x1a0] sm:$0xff] }
  0x53   :  { %2475 = vst [vmem:[#allocation138_spill] sm:$0xff] %v1973_v12  ;;  %2476 = vst [vmem:[#allocation139_spill] sm:$0xff] %v1978_v8  ;;  %v1988_v11 = vld [vmem:[%s2335_s2 + $0x1a8] sm:$0xff]  ;;  %v1993_v13 = vld [vmem:[%s2335_s2 + $0x1b0] sm:$0xff] }
  0x54   :  { %2477 = vst [vmem:[#allocation140_spill] sm:$0xff] %v1983_v15  ;;  %2478 = vst [vmem:[#allocation141_spill] sm:$0xff] %v1988_v11  ;;  %v1998_v9 = vld [vmem:[%s2335_s2 + $0x1b8] sm:$0xff]  ;;  %v2003_v6 = vld [vmem:[%s2335_s2 + $0x1c0] sm:$0xff] }
  0x55   :  { %2479 = vst [vmem:[#allocation142_spill] sm:$0xff] %v1993_v13  ;;  %2480 = vst [vmem:[#allocation143_spill] sm:$0xff] %v1998_v9  ;;  %v2008_v2 = vld [vmem:[%s2335_s2 + $0x1c8] sm:$0xff]  ;;  %v2013_v4 = vld [vmem:[%s2335_s2 + $0x1d0] sm:$0xff] }
  0x56   :  { %2481 = vst [vmem:[#allocation144_spill] sm:$0xff] %v2003_v6  ;;  %2482 = vst [vmem:[#allocation145_spill] sm:$0xff] %v2008_v2  ;;  %v2018_v0 = vld [vmem:[%s2335_s2 + $0x1d8] sm:$0xff]  ;;  %v2023_v7 = vld [vmem:[%s2335_s2 + $0x1e0] sm:$0xff]  ;;  %v2047_v6 = vmov 0.0  }
  0x57   :  { %2483 = vst [vmem:[#allocation146_spill] sm:$0xff] %v2013_v4  ;;  %2484 = vst [vmem:[#allocation147_spill] sm:$0xff] %v2018_v0  ;;  %v2028_v3 = vld [vmem:[%s2335_s2 + $0x1e8] sm:$0xff]  ;;  %v2033_v5 = vld [vmem:[%s2335_s2 + $0x1f0] sm:$0xff] }
  0x58   :  { %2485 = vst [vmem:[#allocation148_spill] sm:$0xff] %v2023_v7  ;;  %2486 = vst [vmem:[#allocation149_spill] sm:$0xff] %v2028_v3  ;;  %v2038_v1 = vld [vmem:[%s2335_s2 + $0x1f8] sm:$0xff]  ;;  %v2043_v4 = vld [vmem:[%s2336_s3] sm:$0xf]  ;;  %v2045_v7 = vmov 0.0  }
  0x59   :  { %2487 = vst [vmem:[#allocation150_spill] sm:$0xff] %v2033_v5  ;;  %2488 = vst [vmem:[#allocation151_spill] sm:$0xff] %v2038_v1 }
  0x5a   :  { %2489 = vst [vmem:[#allocation152_spill] sm:$0xff] %v2043_v4 }
  0x5b LB: > { %2490 = vst [vmem:[#allocation153_spill] sm:$0xff] %v1031_v7  ;;  %2491 = vst [vmem:[#allocation154_spill] sm:$0xff] %v1035_v6  ;;  %v2492_v58 = vld [vmem:[#allocation130_spill] sm:$0xff]  ;;  %v2493_v56 = vld [vmem:[#allocation131_spill] sm:$0xff]  ;;  %v750_v1 = vpack.c.bf16 %v1743_v62, %v1723_v63  ;;  %v782_v0 = vpack.c.bf16 %v1753_v61, %v1733_v60  ;;  %v784_v6 = vpack.c.bf16 %v1798_v49, %v1778_v48  ;;  %s695_s2 = sshll.u32 %s1039_s18, 3  ;;  %s221_s18 = sadd.s32 1, %s1039_s18   ;;  %s1039_s18 = sphi %s2049_s18, %s221_s18   ;;  %v1035_v6 = vphi %v2047_v6, %v2645_v6   ;;  %v1031_v7 = vphi %v2045_v7, %v561_v7  }
  0x5c   : > { %v748_v4 = vpack.c.bf16 %v1748_v59, %v2492_v58  ;;  %v2494_v57 = vld [vmem:[#allocation132_spill] sm:$0xff]  ;;  %v2495_v50 = vld [vmem:[#allocation133_spill] sm:$0xff]  ;;  %v2496_v51 = vld [vmem:[#allocation134_spill] sm:$0xff]  ;;  %v754_v58 = vpack.c.bf16 %v1783_v55, %v1763_v54  ;;  %s226_s20 = scalar_lea.vmem %s2330_s0, %s695_s2  ;;  %p218_p0 = scmp.ge.s32.totalorder %s221_s18, 8  }
  0x5d   : > { %v780_v5 = vpack.c.bf16 %v2494_v57, %v2493_v56  ;;  %v752_v7 = vpack.c.bf16 %v2496_v51, %v2495_v50  ;;  %v786_v56 = vpack.c.bf16 %v1793_v53, %v1773_v52  ;;  %v756_v57 = vpack.c.bf16 %v1828_v43, %v1808_v42  ;;  %v2497_v16 = vld [vmem:[#allocation135_spill] sm:$0xff]  ;;  %v2498_v10 = vld [vmem:[#allocation137_spill] sm:$0xff]  ;;  %v2502_v14 = vld [vmem:[#allocation136_spill] sm:$0xff] }
  0x5e   : > { %749 = vmatprep.subr.bf16.mxu0 %v748_v4  ;;  %v788_v50 = vpack.c.bf16 %v1838_v41, %v1818_v40  ;;  %v1041_v51 = vmov 0.0   ;;  %v760_v4 = vpack.c.bf16 %v1868_v35, %v1848_v34  ;;  %v2499_v11 = vld [vmem:[#allocation141_spill] sm:$0xff]  ;;  %v2500_v8 = vld [vmem:[#allocation139_spill] sm:$0xff]  ;;  %v2503_v15 = vld [vmem:[#allocation140_spill] sm:$0xff]  ;;  %vm1043_vm0 = vmmov (%p218_p0), 0  }
  0x5f   : > { %781 = vmatprep.subr.bf16.mxu1 %v780_v5  ;;  %751 = vmatpush1.bf16.msra.mxu0 %v750_v1  ;;  %v790_v1 = vpack.c.bf16 %v1833_v45, %v1813_v44  ;;  %v792_v5 = vpack.c.bf16 %v1878_v33, %v1858_v32  ;;  %v2501_v9 = vld [vmem:[#allocation143_spill] sm:$0xff]  ;;  %v2504_v12 = vld [vmem:[#allocation138_spill] sm:$0xff]  ;;  %v2506_v2 = vld [vmem:[#allocation145_spill] sm:$0xff]  ;;  %vm659_vm1 = vcmask (%p218_p0), 519168   ;;  %vm669_vm2 = vcmask (%p218_p0), 3072  }
  0x60   : > { %783 = vmatpush1.bf16.msra.mxu1 %v782_v0  ;;  %753 = vmatprep.subr.bf16.mxu0 %v752_v7  ;;  %v758_v0 = vpack.c.bf16 %v1823_v47, %v1803_v46  ;;  %v794_v7 = vpack.c.bf16 %v1873_v37, %v1853_v36  ;;  %v2505_v13 = vld [vmem:[#allocation142_spill] sm:$0xff]  ;;  %v2507_v3 = vld [vmem:[#allocation149_spill] sm:$0xff]  ;;  %v577_v32 = vld [vmem:[%s2332_s4 + $0x68] sm:$0xff] (%p218_p0) }
  0x61   : > { %785 = vmatprep.subr.bf16.mxu1 %v784_v6  ;;  %292 = vmatprep.mubr.f32.mxu0 %v1041_v51  ;;  %v762_v6 = vpack.c.bf16 %v1863_v39, %v1843_v38  ;;  %v578_v34 = vld [vmem:[%s2332_s4 + $0x70] sm:$0xff] (%p218_p0)  ;;  %v579_v35 = vld [vmem:[%s2332_s4 + $0x78] sm:$0xff] (%p218_p0)  ;;  %v693_v38 = vld [vmem:[%s2333_s5] ss:$0 sm:$0xff] (%p218_p0) }
  0x62   : > { %363 = vmatprep.mubr.f32.mxu1 %v1041_v51  ;;  %v764_v51 = vpack.c.bf16 %v1908_v27, %v1888_v26  ;;  %v573_v26 = vld [vmem:[%s2332_s4 + $0x48] sm:$0xff] (%p218_p0)  ;;  %v962_v36 = vpack.c.bf16 (%p218_p0), %v579_v35, %v578_v34 }
  0x63   : > { %755 = vmatpush1.bf16.msra.mxu0 %v754_v58  ;;  %v768_v58 = vpack.c.bf16 %v1948_v19, %v1928_v18  ;;  %v568_v19 = vld [vmem:[%s2332_s4 + $0x20] sm:$0xff] (%p218_p0) }
  0x64   : > { %787 = vmatpush1.bf16.msra.mxu1 %v786_v56  ;;  %757 = vmatprep.subr.bf16.mxu0 %v756_v57  ;;  %v766_v56 = vpack.c.bf16 %v1903_v31, %v1883_v30  ;;  %v798_v57 = vpack.c.bf16 %v1913_v29, %v1893_v28  ;;  %v574_v28 = vld [vmem:[%s2332_s4 + $0x50] sm:$0xff] (%p218_p0)  ;;  %v575_v29 = vld [vmem:[%s2332_s4 + $0x58] sm:$0xff] (%p218_p0)  ;;  %v576_v31 = vld [vmem:[%s2332_s4 + $0x60] sm:$0xff] (%p218_p0) }
  0x65   : > { %789 = vmatprep.subr.bf16.mxu1 %v788_v50  ;;  %v796_v50 = vpack.c.bf16 %v1918_v25, %v1898_v24  ;;  %v572_v25 = vld [vmem:[%s2332_s4 + $0x40] sm:$0xff] (%p218_p0)  ;;  %v956_v30 = vpack.c.bf16 (%p218_p0), %v575_v29, %v574_v28  ;;  %v959_v33 = vpack.c.bf16 (%p218_p0), %v577_v32, %v576_v31 }
  0x66   :  { %v953_v27 = vpack.c.bf16 (%p218_p0), %v573_v26, %v572_v25 }
  0x67   : > { %759 = vmatpush1.bf16.msra.mxu0 %v758_v0  ;;  %v800_v0 = vpack.c.bf16 %v1958_v17, %v2497_v16  ;;  %v1044_v17 = vmov (%p218_p0), 0.0  }
  0x68   : > { %791 = vmatpush1.bf16.msra.mxu1 %v790_v1  ;;  %761 = vmatprep.subr.bf16.mxu0 %v760_v4  ;;  %v770_v1 = vpack.c.bf16 %v1943_v23, %v1923_v22  ;;  %v802_v4 = vpack.c.bf16 %v1953_v21, %v1933_v20  ;;  %v569_v20 = vld [vmem:[%s2332_s4 + $0x28] sm:$0xff] (%p218_p0)  ;;  %v570_v22 = vld [vmem:[%s2332_s4 + $0x30] sm:$0xff] (%p218_p0)  ;;  %v571_v23 = vld [vmem:[%s2332_s4 + $0x38] sm:$0xff] (%p218_p0) }
  0x69   : > { %793 = vmatprep.subr.bf16.mxu1 %v792_v5  ;;  %v772_v5 = vpack.c.bf16 %v2499_v11, %v2498_v10  ;;  %v947_v21 = vpack.c.bf16 (%p218_p0), %v569_v20, %v568_v19  ;;  %v950_v24 = vpack.c.bf16 (%p218_p0), %v571_v23, %v570_v22 }
  0x6b   : > { %763 = vmatpush1.bf16.msra.mxu0 %v762_v6  ;;  %v804_v6 = vpack.c.bf16 %v2501_v9, %v2500_v8  ;;  %v2512_v8 = vld [vmem:[#allocation146_spill] sm:$0xff] }
  0x6c   : > { %795 = vmatpush1.bf16.msra.mxu1 %v794_v7  ;;  %765 = vmatprep.subr.bf16.mxu0 %v764_v51  ;;  %v774_v7 = vpack.c.bf16 %v2503_v15, %v2502_v14  ;;  %v806_v51 = vpack.c.bf16 %v2505_v13, %v2504_v12  ;;  %v2513_v9 = vld [vmem:[#allocation150_spill] sm:$0xff]  ;;  %v2524_v13 = vld [vmem:[#allocation13_spill] sm:$0xff]  ;;  %v2537_v14 = vld [vmem:[#allocation20_spill] sm:$0xff] }
  0x6d   : > { %797 = vmatprep.subr.bf16.mxu1 %v796_v50  ;;  %v776_v50 = vpack.c.bf16 %v2507_v3, %v2506_v2  ;;  %v810_v10 = vpack.c.bf16 %v2513_v9, %v2512_v8  ;;  %v2516_v3 = vld [vmem:[#allocation5_spill] sm:$0xff]  ;;  %v2520_v8 = vld [vmem:[#allocation4_spill] sm:$0xff] }
  0x6e   : > { %v2521_v9 = vld [vmem:[#allocation8_spill] sm:$0xff] }
  0x6f   : > { %767 = vmatpush1.bf16.msra.mxu0 %v766_v56  ;;  %v2508_v56 = vld [vmem:[#allocation147_spill] sm:$0xff]  ;;  %v878_v11 = vpack.c.bf16 %v2521_v9, %v2520_v8 }
  0x70   : > { %799 = vmatpush1.bf16.msra.mxu1 %v798_v57  ;;  %769 = vmatprep.subr.bf16.mxu0 %v768_v58  ;;  %v2509_v57 = vld [vmem:[#allocation151_spill] sm:$0xff] }
  0x71   : > { %801 = vmatprep.subr.bf16.mxu1 %v800_v0  ;;  %v808_v58 = vpack.c.bf16 %v2509_v57, %v2508_v56  ;;  %v2510_v0 = vld [vmem:[#allocation144_spill] sm:$0xff]  ;;  %v2517_v56 = vld [vmem:[#allocation9_spill] sm:$0xff]  ;;  %v2531_v8 = vld [vmem:[#allocation19_spill] sm:$0xff] }
  0x72   : > { %v876_v57 = vpack.c.bf16 %v2517_v56, %v2516_v3  ;;  %v2526_v56 = vld [vmem:[#allocation154_spill] sm:$0xff]  ;;  %v2532_v9 = vld [vmem:[#allocation23_spill] sm:$0xff] }
  0x73   : > { %771 = vmatpush1.bf16.msra.mxu0 %v770_v1  ;;  %v2511_v1 = vld [vmem:[#allocation148_spill] sm:$0xff] }
  0x74   : > { %803 = vmatpush1.bf16.msra.mxu1 %v802_v4  ;;  %773 = vmatprep.subr.bf16.mxu0 %v772_v5  ;;  %v778_v4 = vpack.c.bf16 %v2511_v1, %v2510_v0  ;;  %v2514_v5 = vld [vmem:[#allocation3_spill] sm:$0xff]  ;;  %v2519_v0 = vld [vmem:[#allocation6_spill] sm:$0xff] }
  0x75   : > { %805 = vmatprep.subr.bf16.mxu1 %v804_v6  ;;  %v2515_v6 = vld [vmem:[#allocation7_spill] sm:$0xff] }
  0x76   : > { %v812_v2 = vpack.c.bf16 %v2515_v6, %v2514_v5  ;;  %v2525_v5 = vld [vmem:[#allocation17_spill] sm:$0xff] }
  0x77   : > { %775 = vmatpush1.bf16.msra.mxu0 %v774_v7  ;;  %v2132_v7 = vld [vmem:[%s226_s20] sm:$0xff]  ;;  %v880_v6 = vpack.c.bf16 %v2525_v5, %v2524_v13  ;;  %v820_v13 = vpack.c.bf16 %v2532_v9, %v2531_v8  ;;  %v2542_v8 = vld [vmem:[#allocation33_spill] sm:$0xff] }
  0x78   : > { %807 = vmatpush1.bf16.msra.mxu1 %v806_v51  ;;  %777 = vmatprep.subr.bf16.mxu0 %v776_v50  ;;  %v2518_v51 = vld [vmem:[#allocation2_spill] sm:$0xff]  ;;  %v2522_v50 = vld [vmem:[#allocation11_spill] sm:$0xff]  ;;  %v371_v3 = vcombine.high %v2132_v7, %v2132_v7 }
  0x79   : > { %809 = vmatprep.subr.bf16.mxu1 %v808_v58  ;;  %v814_v1 = vpack.c.bf16 %v2519_v0, %v2518_v51  ;;  %v2523_v58 = vld [vmem:[#allocation15_spill] sm:$0xff] }
  0x7a   : > { %v816_v12 = vpack.c.bf16 %v2523_v58, %v2522_v50  ;;  %v2533_v50 = vld [vmem:[#allocation21_spill] sm:$0xff] }
  0x7b   : > { %779 = vmatpush1.bf16.msra.mxu0 %v778_v4  ;;  %v2528_v4 = vld [vmem:[#allocation14_spill] sm:$0xff]  ;;  %v2534_v58 = vld [vmem:[#allocation25_spill] sm:$0xff] }
  0x7c   : > { %811 = vmatpush1.bf16.msra.mxu1 %v810_v10  ;;  %813 = vmatprep.subr.bf16.mxu0 %v812_v2  ;;  %v2527_v10 = vld [vmem:[#allocation10_spill] sm:$0xff]  ;;  %v2529_v2 = vld [vmem:[#allocation12_spill] sm:$0xff]  ;;  %v884_v5 = vpack.c.bf16 %v2534_v58, %v2533_v50 }
  0x7d   : > { %877 = vmatprep.subr.bf16.mxu1 %v876_v57  ;;  %v818_v51 = vpack.c.bf16 %v2528_v4, %v2527_v10  ;;  %v2530_v57 = vld [vmem:[#allocation16_spill] sm:$0xff]  ;;  %v2543_v50 = vld [vmem:[#allocation26_spill] sm:$0xff] }
  0x7e   : > { %293 = vmatmul.mubr.f32.vlgmr.msra.gmra.mrb[0].mxu0 %v2526_v56  ;;  %v882_v0 = vpack.c.bf16 %v2530_v57, %v2529_v2  ;;  %v2538_v10 = vld [vmem:[#allocation24_spill] sm:$0xff]  ;;  %v2541_v57 = vld [vmem:[#allocation29_spill] sm:$0xff] }
  0x7f   : > { %364 = vmatmul.mubr.f32.vlgmr.msra.gmra.mrb[0].mxu1 %v2526_v56  ;;  %815 = vmatpush1.bf16.msra.mxu0 %v814_v1  ;;  %v2535_v1 = vld [vmem:[#allocation18_spill] sm:$0xff]  ;;  %v886_v4 = vpack.c.bf16 %v2538_v10, %v2537_v14  ;;  %v888_v9 = vpack.c.bf16 %v2542_v8, %v2541_v57  ;;  %v2546_v58 = vld [vmem:[#allocation32_spill] sm:$0xff]  ;;  %v2548_v14 = vld [vmem:[#allocation39_spill] sm:$0xff] }
  0x80   : > { %879 = vmatpush1.bf16.msra.mxu1 %v878_v11  ;;  %817 = vmatprep.subr.bf16.mxu0 %v816_v12  ;;  %v2536_v11 = vld [vmem:[#allocation22_spill] sm:$0xff]  ;;  %v2539_v12 = vld [vmem:[#allocation27_spill] sm:$0xff]  ;;  %v2554_v57 = vld [vmem:[#allocation40_spill] sm:$0xff] }
  0x81   : > { %881 = vmatprep.subr.bf16.mxu1 %v880_v6  ;;  %437 = vmatprep.mubr.f32.mxu0 %v371_v3  ;;  %v822_v56 = vpack.c.bf16 %v2536_v11, %v2535_v1  ;;  %v2540_v6 = vld [vmem:[#allocation31_spill] sm:$0xff]  ;;  %v2550_v11 = vld [vmem:[#allocation41_spill] sm:$0xff] }
  0x82   : > { %508 = vmatprep.mubr.f32.mxu1 %v371_v3  ;;  %v824_v2 = vpack.c.bf16 %v2540_v6, %v2539_v12  ;;  %v2544_v3 = vld [vmem:[#allocation30_spill] sm:$0xff]  ;;  %v2547_v1 = vld [vmem:[#allocation35_spill] sm:$0xff] }
  0x83   : > { %819 = vmatpush1.bf16.msra.mxu0 %v818_v51  ;;  %v826_v51 = vpack.c.bf16 %v2544_v3, %v2543_v50  ;;  %v2551_v12 = vld [vmem:[#allocation34_spill] sm:$0xff]  ;;  %v2555_v50 = vld [vmem:[#allocation43_spill] sm:$0xff] }
  0x84   : > { %883 = vmatpush1.bf16.msra.mxu1 %v882_v0  ;;  %821 = vmatprep.subr.bf16.mxu0 %v820_v13  ;;  %v2545_v0 = vld [vmem:[#allocation28_spill] sm:$0xff]  ;;  %v828_v13 = vpack.c.bf16 %v2548_v14, %v2547_v1  ;;  %v2552_v6 = vld [vmem:[#allocation38_spill] sm:$0xff]  ;;  %v2556_v3 = vld [vmem:[#allocation47_spill] sm:$0xff] }
  0x85   : > { %885 = vmatprep.subr.bf16.mxu1 %v884_v5  ;;  %v890_v15 = vpack.c.bf16 %v2546_v58, %v2545_v0  ;;  %v2549_v5 = vld [vmem:[#allocation37_spill] sm:$0xff]  ;;  %v2559_v1 = vld [vmem:[#allocation42_spill] sm:$0xff] }
  0x86   : > { %v892_v10 = vpack.c.bf16 %v2550_v11, %v2549_v5  ;;  %v2558_v0 = vld [vmem:[#allocation49_spill] sm:$0xff]  ;;  %v2560_v14 = vld [vmem:[#allocation46_spill] sm:$0xff]  ;;  %v2562_v5 = vld [vmem:[#allocation48_spill] sm:$0xff] }
  0x87   : > { %823 = vmatpush1.bf16.msra.mxu0 %v822_v56  ;;  %v830_v56 = vpack.c.bf16 %v2552_v6, %v2551_v12  ;;  %v2563_v12 = vld [vmem:[#allocation51_spill] sm:$0xff] }
  0x88   : > { %887 = vmatpush1.bf16.msra.mxu1 %v886_v4  ;;  %825 = vmatprep.subr.bf16.mxu0 %v824_v2  ;;  %v2553_v4 = vld [vmem:[#allocation36_spill] sm:$0xff]  ;;  %v832_v2 = vpack.c.bf16 %v2556_v3, %v2555_v50  ;;  %v2564_v6 = vld [vmem:[#allocation55_spill] sm:$0xff]  ;;  %v2567_v50 = vld [vmem:[#allocation50_spill] sm:$0xff] }
  0x89   : > { %889 = vmatprep.subr.bf16.mxu1 %v888_v9  ;;  %v894_v8 = vpack.c.bf16 %v2554_v57, %v2553_v4  ;;  %v2557_v9 = vld [vmem:[#allocation45_spill] sm:$0xff]  ;;  %v2568_v3 = vld [vmem:[#allocation54_spill] sm:$0xff] }
  0x8a   : > { %v896_v58 = vpack.c.bf16 %v2558_v0, %v2557_v9  ;;  %v2566_v4 = vld [vmem:[#allocation57_spill] sm:$0xff]  ;;  %v2570_v9 = vld [vmem:[#allocation56_spill] sm:$0xff] }
  0x8b   : > { %827 = vmatpush1.bf16.msra.mxu0 %v826_v51  ;;  %v834_v51 = vpack.c.bf16 %v2560_v14, %v2559_v1  ;;  %v2571_v1 = vld [vmem:[#allocation59_spill] sm:$0xff] }
  0x8c   : > { %891 = vmatpush1.bf16.msra.mxu1 %v890_v15  ;;  %829 = vmatprep.subr.bf16.mxu0 %v828_v13  ;;  %v2561_v15 = vld [vmem:[#allocation44_spill] sm:$0xff]  ;;  %v836_v13 = vpack.c.bf16 %v2564_v6, %v2563_v12  ;;  %v2572_v14 = vld [vmem:[#allocation63_spill] sm:$0xff]  ;;  %v2575_v12 = vld [vmem:[#allocation58_spill] sm:$0xff] }
  0x8d   : > { %893 = vmatprep.subr.bf16.mxu1 %v892_v10  ;;  %v898_v11 = vpack.c.bf16 %v2562_v5, %v2561_v15  ;;  %v2565_v10 = vld [vmem:[#allocation53_spill] sm:$0xff]  ;;  %v2576_v6 = vld [vmem:[#allocation62_spill] sm:$0xff] }
  0x8e   : > { %v900_v57 = vpack.c.bf16 %v2566_v4, %v2565_v10  ;;  %v2574_v15 = vld [vmem:[#allocation65_spill] sm:$0xff]  ;;  %v2578_v10 = vld [vmem:[#allocation64_spill] sm:$0xff] }
  0x8f   : > { %831 = vmatpush1.bf16.msra.mxu0 %v830_v56  ;;  %v838_v56 = vpack.c.bf16 %v2568_v3, %v2567_v50  ;;  %v2579_v50 = vld [vmem:[#allocation67_spill] sm:$0xff] }
  0x90   : > { %895 = vmatpush1.bf16.msra.mxu1 %v894_v8  ;;  %833 = vmatprep.subr.bf16.mxu0 %v832_v2  ;;  %v2569_v8 = vld [vmem:[#allocation52_spill] sm:$0xff]  ;;  %v840_v2 = vpack.c.bf16 %v2572_v14, %v2571_v1  ;;  %v2580_v3 = vld [vmem:[#allocation71_spill] sm:$0xff]  ;;  %v2583_v1 = vld [vmem:[#allocation66_spill] sm:$0xff] }
  0x91   : > { %897 = vmatprep.subr.bf16.mxu1 %v896_v58  ;;  %v902_v0 = vpack.c.bf16 %v2570_v9, %v2569_v8  ;;  %v2573_v58 = vld [vmem:[#allocation61_spill] sm:$0xff]  ;;  %v2584_v14 = vld [vmem:[#allocation70_spill] sm:$0xff] }
  0x92   : > { %v904_v5 = vpack.c.bf16 %v2574_v15, %v2573_v58  ;;  %v2582_v8 = vld [vmem:[#allocation73_spill] sm:$0xff]  ;;  %v2586_v58 = vld [vmem:[#allocation72_spill] sm:$0xff] }
  0x93   : > { %835 = vmatpush1.bf16.msra.mxu0 %v834_v51  ;;  %v842_v51 = vpack.c.bf16 %v2576_v6, %v2575_v12  ;;  %v2587_v12 = vld [vmem:[#allocation75_spill] sm:$0xff] }
  0x94   : > { %899 = vmatpush1.bf16.msra.mxu1 %v898_v11  ;;  %837 = vmatprep.subr.bf16.mxu0 %v836_v13  ;;  %v2577_v11 = vld [vmem:[#allocation60_spill] sm:$0xff]  ;;  %v844_v13 = vpack.c.bf16 %v2580_v3, %v2579_v50  ;;  %v2588_v6 = vld [vmem:[#allocation79_spill] sm:$0xff]  ;;  %v2591_v50 = vld [vmem:[#allocation74_spill] sm:$0xff] }
  0x95   : > { %901 = vmatprep.subr.bf16.mxu1 %v900_v57  ;;  %v906_v4 = vpack.c.bf16 %v2578_v10, %v2577_v11  ;;  %v2581_v57 = vld [vmem:[#allocation69_spill] sm:$0xff]  ;;  %v2592_v3 = vld [vmem:[#allocation78_spill] sm:$0xff] }
  0x96   : > { %v908_v9 = vpack.c.bf16 %v2582_v8, %v2581_v57  ;;  %v2590_v11 = vld [vmem:[#allocation81_spill] sm:$0xff]  ;;  %v2594_v57 = vld [vmem:[#allocation80_spill] sm:$0xff] }
  0x97   : > { %839 = vmatpush1.bf16.msra.mxu0 %v838_v56  ;;  %v846_v56 = vpack.c.bf16 %v2584_v14, %v2583_v1  ;;  %v2595_v1 = vld [vmem:[#allocation83_spill] sm:$0xff] }
  0x98   : > { %903 = vmatpush1.bf16.msra.mxu1 %v902_v0  ;;  %841 = vmatprep.subr.bf16.mxu0 %v840_v2  ;;  %v2585_v0 = vld [vmem:[#allocation68_spill] sm:$0xff]  ;;  %v848_v2 = vpack.c.bf16 %v2588_v6, %v2587_v12  ;;  %v2596_v14 = vld [vmem:[#allocation87_spill] sm:$0xff]  ;;  %v2599_v12 = vld [vmem:[#allocation82_spill] sm:$0xff] }
  0x99   : > { %905 = vmatprep.subr.bf16.mxu1 %v904_v5  ;;  %v910_v15 = vpack.c.bf16 %v2586_v58, %v2585_v0  ;;  %v2589_v5 = vld [vmem:[#allocation77_spill] sm:$0xff]  ;;  %v2600_v6 = vld [vmem:[#allocation86_spill] sm:$0xff] }
  0x9a   : > { %v912_v10 = vpack.c.bf16 %v2590_v11, %v2589_v5  ;;  %v2598_v0 = vld [vmem:[#allocation89_spill] sm:$0xff]  ;;  %v2602_v5 = vld [vmem:[#allocation88_spill] sm:$0xff] }
  0x9b   : > { %843 = vmatpush1.bf16.msra.mxu0 %v842_v51  ;;  %v850_v51 = vpack.c.bf16 %v2592_v3, %v2591_v50  ;;  %v2603_v50 = vld [vmem:[#allocation91_spill] sm:$0xff] }
  0x9c   : > { %907 = vmatpush1.bf16.msra.mxu1 %v906_v4  ;;  %845 = vmatprep.subr.bf16.mxu0 %v844_v13  ;;  %v2593_v4 = vld [vmem:[#allocation76_spill] sm:$0xff]  ;;  %v852_v13 = vpack.c.bf16 %v2596_v14, %v2595_v1  ;;  %v2604_v3 = vld [vmem:[#allocation95_spill] sm:$0xff]  ;;  %v2607_v1 = vld [vmem:[#allocation90_spill] sm:$0xff] }
  0x9d   : > { %909 = vmatprep.subr.bf16.mxu1 %v908_v9  ;;  %v914_v8 = vpack.c.bf16 %v2594_v57, %v2593_v4  ;;  %v2597_v9 = vld [vmem:[#allocation85_spill] sm:$0xff]  ;;  %v2608_v14 = vld [vmem:[#allocation94_spill] sm:$0xff] }
  0x9e   : > { %v916_v58 = vpack.c.bf16 %v2598_v0, %v2597_v9  ;;  %v2606_v4 = vld [vmem:[#allocation97_spill] sm:$0xff]  ;;  %v2610_v9 = vld [vmem:[#allocation96_spill] sm:$0xff] }
  0x9f   : > { %847 = vmatpush1.bf16.msra.mxu0 %v846_v56  ;;  %v854_v56 = vpack.c.bf16 %v2600_v6, %v2599_v12  ;;  %v2611_v12 = vld [vmem:[#allocation99_spill] sm:$0xff] }
  0xa0   : > { %911 = vmatpush1.bf16.msra.mxu1 %v910_v15  ;;  %849 = vmatprep.subr.bf16.mxu0 %v848_v2  ;;  %v2601_v15 = vld [vmem:[#allocation84_spill] sm:$0xff]  ;;  %v856_v2 = vpack.c.bf16 %v2604_v3, %v2603_v50  ;;  %v2612_v6 = vld [vmem:[#allocation103_spill] sm:$0xff]  ;;  %v2615_v50 = vld [vmem:[#allocation98_spill] sm:$0xff] }
  0xa1   : > { %913 = vmatprep.subr.bf16.mxu1 %v912_v10  ;;  %v918_v11 = vpack.c.bf16 %v2602_v5, %v2601_v15  ;;  %v2605_v10 = vld [vmem:[#allocation93_spill] sm:$0xff]  ;;  %v2616_v3 = vld [vmem:[#allocation102_spill] sm:$0xff] }
  0xa2   : > { %v920_v57 = vpack.c.bf16 %v2606_v4, %v2605_v10  ;;  %v2614_v15 = vld [vmem:[#allocation105_spill] sm:$0xff]  ;;  %v2618_v10 = vld [vmem:[#allocation104_spill] sm:$0xff] }
  0xa3   : > { %851 = vmatpush1.bf16.msra.mxu0 %v850_v51  ;;  %v858_v51 = vpack.c.bf16 %v2608_v14, %v2607_v1  ;;  %v2619_v1 = vld [vmem:[#allocation107_spill] sm:$0xff] }
  0xa4   : > { %915 = vmatpush1.bf16.msra.mxu1 %v914_v8  ;;  %853 = vmatprep.subr.bf16.mxu0 %v852_v13  ;;  %v2609_v8 = vld [vmem:[#allocation92_spill] sm:$0xff]  ;;  %v860_v13 = vpack.c.bf16 %v2612_v6, %v2611_v12  ;;  %v2620_v14 = vld [vmem:[#allocation111_spill] sm:$0xff]  ;;  %v2623_v12 = vld [vmem:[#allocation106_spill] sm:$0xff] }
  0xa5   : > { %917 = vmatprep.subr.bf16.mxu1 %v916_v58  ;;  %v922_v0 = vpack.c.bf16 %v2610_v9, %v2609_v8  ;;  %v2613_v58 = vld [vmem:[#allocation101_spill] sm:$0xff]  ;;  %v2624_v6 = vld [vmem:[#allocation110_spill] sm:$0xff] }
  0xa6   : > { %v924_v5 = vpack.c.bf16 %v2614_v15, %v2613_v58  ;;  %v2622_v8 = vld [vmem:[#allocation113_spill] sm:$0xff]  ;;  %v2626_v58 = vld [vmem:[#allocation112_spill] sm:$0xff] }
  0xa7   : > { %855 = vmatpush1.bf16.msra.mxu0 %v854_v56  ;;  %v862_v56 = vpack.c.bf16 %v2616_v3, %v2615_v50  ;;  %v2627_v50 = vld [vmem:[#allocation115_spill] sm:$0xff] }
  0xa8   : > { %919 = vmatpush1.bf16.msra.mxu1 %v918_v11  ;;  %857 = vmatprep.subr.bf16.mxu0 %v856_v2  ;;  %v2617_v11 = vld [vmem:[#allocation100_spill] sm:$0xff]  ;;  %v864_v2 = vpack.c.bf16 %v2620_v14, %v2619_v1  ;;  %v2628_v3 = vld [vmem:[#allocation119_spill] sm:$0xff]  ;;  %v2631_v1 = vld [vmem:[#allocation114_spill] sm:$0xff] }
  0xa9   : > { %921 = vmatprep.subr.bf16.mxu1 %v920_v57  ;;  %v926_v4 = vpack.c.bf16 %v2618_v10, %v2617_v11  ;;  %v2621_v57 = vld [vmem:[#allocation109_spill] sm:$0xff]  ;;  %v2632_v14 = vld [vmem:[#allocation118_spill] sm:$0xff] }
  0xaa   : > { %v928_v9 = vpack.c.bf16 %v2622_v8, %v2621_v57  ;;  %v2630_v11 = vld [vmem:[#allocation121_spill] sm:$0xff]  ;;  %v2634_v57 = vld [vmem:[#allocation120_spill] sm:$0xff] }
  0xab   : > { %859 = vmatpush1.bf16.msra.mxu0 %v858_v51  ;;  %v866_v51 = vpack.c.bf16 %v2624_v6, %v2623_v12  ;;  %v2635_v12 = vld [vmem:[#allocation123_spill] sm:$0xff] }
  0xac   : > { %923 = vmatpush1.bf16.msra.mxu1 %v922_v0  ;;  %861 = vmatprep.subr.bf16.mxu0 %v860_v13  ;;  %v2625_v0 = vld [vmem:[#allocation108_spill] sm:$0xff]  ;;  %v868_v13 = vpack.c.bf16 %v2628_v3, %v2627_v50  ;;  %v2636_v6 = vld [vmem:[#allocation127_spill] sm:$0xff]  ;;  %v2639_v50 = vld [vmem:[#allocation122_spill] sm:$0xff] }
  0xad   : > { %925 = vmatprep.subr.bf16.mxu1 %v924_v5  ;;  %v930_v15 = vpack.c.bf16 %v2626_v58, %v2625_v0  ;;  %v2629_v5 = vld [vmem:[#allocation117_spill] sm:$0xff]  ;;  %v2640_v3 = vld [vmem:[#allocation126_spill] sm:$0xff] }
  0xae   : > { %v932_v10 = vpack.c.bf16 %v2630_v11, %v2629_v5  ;;  %v2638_v0 = vld [vmem:[#allocation129_spill] sm:$0xff]  ;;  %v2642_v5 = vld [vmem:[#allocation128_spill] sm:$0xff] }
  0xaf   : > { %863 = vmatpush1.bf16.msra.mxu0 %v862_v56  ;;  %v870_v56 = vpack.c.bf16 %v2632_v14, %v2631_v1 }
  0xb0   : > { %927 = vmatpush1.bf16.msra.mxu1 %v926_v4  ;;  %865 = vmatprep.subr.bf16.mxu0 %v864_v2  ;;  %v2633_v4 = vld [vmem:[#allocation116_spill] sm:$0xff]  ;;  %v872_v2 = vpack.c.bf16 %v2636_v6, %v2635_v12 }
  0xb1   : > { %929 = vmatprep.subr.bf16.mxu1 %v928_v9  ;;  %v934_v8 = vpack.c.bf16 %v2634_v57, %v2633_v4  ;;  %v2637_v9 = vld [vmem:[#allocation125_spill] sm:$0xff] }
  0xb2   : > { %v936_v58 = vpack.c.bf16 %v2638_v0, %v2637_v9 }
  0xb3   : > { %867 = vmatpush1.bf16.msra.mxu0 %v866_v51  ;;  %v874_v51 = vpack.c.bf16 %v2640_v3, %v2639_v50 }
  0xb4   : > { %931 = vmatpush1.bf16.msra.mxu1 %v930_v15  ;;  %869 = vmatprep.subr.bf16.mxu0 %v868_v13  ;;  %v2641_v15 = vld [vmem:[#allocation124_spill] sm:$0xff]  ;;  %v516_v13 = vlaneseq }
  0xb5   : > { %933 = vmatprep.subr.bf16.mxu1 %v932_v10  ;;  %v938_v11 = vpack.c.bf16 %v2642_v5, %v2641_v15 }
  0xb6   : > { %v517_v10 = vshrl.u32 %v516_v13, 7 }
  0xb7   : > { %871 = vmatpush1.bf16.msra.mxu0 %v870_v56  ;;  %v2643_v56 = vld [vmem:[#allocation152_spill] sm:$0xff] }
  0xb8   : > { %935 = vmatpush1.bf16.msra.mxu1 %v934_v8  ;;  %873 = vmatprep.subr.bf16.mxu0 %v872_v2  ;;  %v518_v1 = vsub.s32 0, %v517_v10  ;;  %v522_v14 = vsub.s32 1, %v517_v10  ;;  %v530_v6 = vsub.s32 3, %v517_v10 }
  0xb9   : > { %937 = vmatprep.subr.bf16.mxu1 %v936_v58 }
  0xba   : > { %v519_v4 = vrot.slane %v2643_v56, %v518_v1  ;;  %v523_v57 = vrot.slane %v2643_v56, %v522_v14 }
  0xbb   : > { %875 = vmatpush1.bf16.msra.mxu0 %v874_v51  ;;  %v531_v51 = vrot.slane %v2643_v56, %v530_v6 }
  0xbc   : > { %939 = vmatpush1.bf16.msra.mxu1 %v938_v11 }
  0xbe   : > { %438 = vmatmul.mubr.f32.vlgmr.msra.gmra.mrb[0].mxu0 %v2132_v7 }
  0xbf   : > { %509 = vmatmul.mubr.f32.vlgmr.msra.gmra.mrb[0].mxu1 %v2132_v7  ;;  %v526_v7 = vsub.s32 2, %v517_v10  ;;  %745 = vmatprep.mubr.msk.f32.mxu0 (%p218_p0), %vm1043_vm0, %v1044_v17 }
  0xc1   : > { %v527_v5 = vrot.slane %v2643_v56, %v526_v7 }
 0x191   : > { %v439_v8 = vpop.f32.mrb[0].mxu0 }
 0x192   : > { %v510_v12 = vpop.f32.mrb[0].mxu1  ;;  %v536_v9 = vadd.f32 %v519_v4, %v439_v8  ;;  %v441_v2 = vpop.f32.mrb[1].mxu0 }
 0x193   : > { %v512_v0 = vpop.f32.mrb[1].mxu1  ;;  %v537_v58 = vadd.f32 %v523_v57, %v441_v2  ;;  %v538_v13 = vadd.f32 %v527_v5, %v510_v12  ;;  %v1042_v5 = vmov (%p218_p0), 0.0|0.0  }
 0x194   : > { %v690_v50 = vmul.f32 -1.442695, %v536_v9  ;;  %v539_v15 = vadd.f32 %v531_v51, %v512_v0  ;;  %v565_v51 = vld [vmem:[%s2332_s4 + $0x8] sm:$0xff] (%p218_p0)  ;;  %940 = vmatprep.subr.bf16.mxu0 (%p218_p0), %v1042_v5 }
 0x195   : > { %v691_v3 = vmul.f32 -1.442695, %v537_v58  ;;  %v2644_v58 = vld [vmem:[#allocation153_spill] sm:$0xff] }
 0x196   : > { %997 = vpow2.f32 %v690_v50  ;;  %v692_v11 = vmul.f32 -1.442695, %v539_v15  ;;  %v566_v15 = vld [vmem:[%s2332_s4 + $0x10] sm:$0xff] (%p218_p0) }
 0x197   : > { %999 = vpow2.f32 %v691_v3 }
 0x198   : > { %1001 = vpow2.f32 %v692_v11 }
 0x199   : > { %1003 = vtanh.f32 %v538_v13  ;;  %v567_v13 = vld [vmem:[%s2332_s4 + $0x18] sm:$0xff] (%p218_p0) }
 0x19a   :  { %v944_v18 = vpack.c.bf16 (%p218_p0), %v567_v13, %v566_v15 }
 0x1a0   : > { %v998_v1 = vpop.eup %997 }
 0x1a1   : > { %v1000_v14 = vpop.eup %999  ;;  %v543_v16 = vadd.f32 1.0, %v998_v1 }
 0x1a2   : > { %v549_v4 = vadd.f32 1.0, %v1000_v14  ;;  %v1002_v57 = vpop.eup %1001 }
 0x1a3   : > { %1005 = vrcp.f32 %v543_v16  ;;  %v1004_v8 = vpop.eup %1003  ;;  %v556_v10 = vadd.f32 1.0, %v1002_v57  ;;  %v564_v16 = vld [vmem:[%s2332_s4] sm:$0xff] (%p218_p0) }
 0x1a4   : > { %1007 = vrcp.f32 %v549_v4  ;;  %v941_v11 = vpack.c.bf16 (%p218_p0), %v565_v51, %v564_v16 }
 0x1a5   : > { %1009 = vrcp.f32 %v556_v10 }
 0x1a6   :  { %942 = vmatpush3.bf16.msra.mxu0 (%p218_p0), %v941_v11 }
 0x1a7   :  { %943 = vmatprep.subr.bf16.mxu0 (%p218_p0), %v1042_v5 }
 0x1aa   :  { %945 = vmatpush3.bf16.msra.mxu0 (%p218_p0), %v944_v18 }
 0x1ab   :  { %946 = vmatprep.subr.bf16.mxu0 (%p218_p0), %v1042_v5 }
 0x1ad   : > { %v1006_v9 = vpop.eup %1005 }
 0x1ae   : > { %v1008_v6 = vpop.eup %1007  ;;  %v560_v2 = vmul.f32 %v1006_v9, %v1004_v8  ;;  %948 = vmatpush3.bf16.msra.mxu0 (%p218_p0), %v947_v21 }
 0x1af   : > { %v559_v0 = vmul.f32 %v2644_v58, %v1008_v6  ;;  %v1010_v12 = vpop.eup %1009  ;;  %949 = vmatprep.subr.bf16.mxu0 (%p218_p0), %v1042_v5 }
 0x1b1   : > { %v561_v7 = vadd.f32 %v560_v2, %v559_v0  }
 0x1b2   :  { %951 = vmatpush3.bf16.msra.mxu0 (%p218_p0), %v950_v24 }
 0x1b3   : > { %1011 = vtanh.f32 %v561_v7  ;;  %952 = vmatprep.subr.bf16.mxu0 (%p218_p0), %v1042_v5 }
 0x1b6   :  { %954 = vmatpush3.bf16.msra.mxu0 (%p218_p0), %v953_v27 }
 0x1b7   :  { %955 = vmatprep.subr.bf16.mxu0 (%p218_p0), %v1042_v5 }
 0x1ba   :  { %220 = sbr.rel (!%p218_p0) target bundleno = 91 (0x5b), region = 52  ;;  %957 = vmatpush3.bf16.msra.mxu0 (%p218_p0), %v956_v30 }
 0x1bb   :  { %958 = vmatprep.subr.bf16.mxu0 (%p218_p0), %v1042_v5 }
 0x1bd   : > { %v1012_v50 = vpop.eup %1011 }
 0x1be   : > { %v563_v3 = vmul.f32 %v1012_v50, %v1010_v12   ;;  %960 = vmatpush3.bf16.msra.mxu0 (%p218_p0), %v959_v33 }
 0x1bf   :  { %961 = vmatprep.subr.bf16.mxu0 (%p218_p0), %v1042_v5 }
 0x1c0   : > { %v2645_v6 = vmov %v563_v3 }
 0x1c2   :  { %963 = vmatpush3.bf16.msra.mxu0 %v962_v36 }
 0x1c5   :  { %746 = vmatmul.mubr.f32.vlgmr.msra.gmra.mrb[0].mxu0 %v563_v3 }
 0x298   :  { %v646_v37 = vpop.f32.mrb[0].mxu0 }
 0x299   :  { %v650_v39 = vmax.f32 %v646_v37, 0.0  ;;  %v747_v40 = vpop.f32.mrb[1].mxu0 }
 0x29b   :  { %v658_v41 = vmul.f32 %v693_v38, %v650_v39 }
 0x29d   :  { %v660_v42 = vsel %vm659_vm1, %v658_v41, 0.0 }
 0x29e   :  { %661 = vadd.xlane.f32.xlu0 %v660_v42 }
 0x32b   :  { %v662_v43 = vpop.xlane.xlu0 %661 }
 0x32c   :  { %v694_v44 = vmul.f32 -1.442695, %v662_v43 }
 0x32e   :  { %1013 = vpow2.f32 %v694_v44 }
 0x338   :  { %v1014_v45 = vpop.eup %1013 }
 0x339   :  { %v666_v46 = vadd.f32 1.0, %v1014_v45 }
 0x33b   :  { %1015 = vrcp.f32 %v666_v46 }
 0x345   :  { %v1016_v47 = vpop.eup %1015 }
 0x346   :  { %670 = vst.msk [vmem:[%s2334_s6] sm:$0xf] %vm669_vm2, %v1016_v47 }

</bundles_post_ra>
